<compile_context>
chip_gen: v7x
topology: tpu7x:2x2x1
jax: 0.10.0
libtpu: 0.0.40
codegen_flags: <defaults>
</compile_context>

<pallas_src>
import math

import jax
import jax.numpy as jnp
from jax import lax
from jax.experimental import pallas as pl
from jax.experimental.pallas import tpu as pltpu

HID_DIM = 256
FEAT_DIM = 4
SEQ = 75                          # per-stream sequence length (75 + 75 = 150)
NUM_FAULT = 9
N_HEADS = 4
K_HALF = HID_DIM * SEQ            # 19200 flattened features per stream
NH = (N_HEADS // 2) * NUM_FAULT   # 18 fault columns per parallel half


# ----------------------------------------------------------------------------
# Fused Pallas kernel (grid = (2,): half n=0 -> fault heads 1-2 + regress head,
#                                   half n=1 -> fault heads 3-4 + recons head)
# ----------------------------------------------------------------------------
def pred_head_kernel(dec_flat_ref, rec_flat_ref, dec2d_ref, rec2d_ref,
                     wreg_ref, breg_ref, wrec_ref, brec_ref,
                     wfd_ref, wfr_ref, bf_ref,
                     small_ref, fault_ref):
    n = pl.program_id(0)

    # ---- fault heads: bf16 x bf16, f32 accumulation -------------------------
    # Lane-dense (NH, K) weight, contraction on the minor axis of BOTH operands
    # (same pattern as attention scores q @ k.T) -> no big-tile relayout.
    dn = (((1,), (1,)), ((), ()))     # x (B, K) . w (NH, K) -> (B, NH)
    acc = lax.dot_general(dec_flat_ref[...], wfd_ref[...], dn,
                          preferred_element_type=jnp.float32)
    acc = acc + lax.dot_general(rec_flat_ref[...], wfr_ref[...], dn,
                                preferred_element_type=jnp.float32)
    fault_ref[...] = (acc + bf_ref[...]).astype(fault_ref.dtype)

    # ---- small heads: one per grid half, f32 ---------------------------------
    @pl.when(n == 0)
    def _():
        small_ref[...] = (jnp.dot(dec2d_ref[...], wreg_ref[...],
                                  preferred_element_type=jnp.float32)
                          + breg_ref[...]).astype(small_ref.dtype)

    @pl.when(n == 1)
    def _():
        small_ref[...] = (jnp.dot(rec2d_ref[...], wrec_ref[...],
                                  preferred_element_type=jnp.float32)
                          + brec_ref[...]).astype(small_ref.dtype)


# ----------------------------------------------------------------------------
# dimension_semantics: CORE_PARALLEL only on 2-TC chips (v7x); "parallel" is a
# no-op sharding-wise on 1-TC chips and is the safe default everywhere else.
# ----------------------------------------------------------------------------
def _leading_dim_semantics():
    try:
        kind = jax.devices()[0].device_kind.lower()
        if ("v7" in kind or "7x" in kind) and hasattr(pltpu, "CORE_PARALLEL"):
            return (pltpu.CORE_PARALLEL,)
    except Exception:
        pass
    return ("parallel",)


_DIM_SEMANTICS = _leading_dim_semantics()


# ----------------------------------------------------------------------------
# Forward wrapper (single pallas_call, no per-call weight repacking)
# ----------------------------------------------------------------------------
def pred_head_forward(kp, dec_out, recons_out):
    B, S, H = dec_out.shape
    assert (S, H) == (SEQ, HID_DIM)

    # Row-major reshapes of the same buffers (no copies, no concat).  The
    # flattened activations feeding the fault heads are shipped as bf16.
    dec_flat = dec_out.reshape(B, K_HALF).astype(jnp.bfloat16)
    rec_flat = recons_out.reshape(B, K_HALF).astype(jnp.bfloat16)
    dec2d = dec_out.reshape(B * S, H)
    rec2d = recons_out.reshape(B * S, H)

    small, fault = pl.pallas_call(
        pred_head_kernel,
        out_shape=(
            jax.ShapeDtypeStruct((2, B * S, FEAT_DIM), jnp.float32),
            jax.ShapeDtypeStruct((2, B, NH), jnp.float32),
        ),
        grid_spec=pltpu.PrefetchScalarGridSpec(
            num_scalar_prefetch=0,
            grid=(2,),
            in_specs=[
                pl.BlockSpec((B, K_HALF), lambda n: (0, 0)),            # dec_flat (bf16)
                pl.BlockSpec((B, K_HALF), lambda n: (0, 0)),            # rec_flat (bf16)
                pl.BlockSpec((B * S, H), lambda n: (0, 0)),             # dec2d (f32)
                pl.BlockSpec((B * S, H), lambda n: (0, 0)),             # rec2d (f32)
                pl.BlockSpec((H, FEAT_DIM), lambda n: (0, 0)),          # w_reg^T
                pl.BlockSpec((1, FEAT_DIM), lambda n: (0, 0)),          # b_reg
                pl.BlockSpec((H, FEAT_DIM), lambda n: (0, 0)),          # w_rec^T
                pl.BlockSpec((1, FEAT_DIM), lambda n: (0, 0)),          # b_rec
                pl.BlockSpec((None, NH, K_HALF), lambda n: (n, 0, 0)),  # wf dec half (bf16)
                pl.BlockSpec((None, NH, K_HALF), lambda n: (n, 0, 0)),  # wf rec half (bf16)
                pl.BlockSpec((None, 1, NH), lambda n: (n, 0, 0)),       # fault bias
            ],
            out_specs=(
                pl.BlockSpec((None, B * S, FEAT_DIM), lambda n: (n, 0, 0)),
                pl.BlockSpec((None, B, NH), lambda n: (n, 0, 0)),
            ),
        ),
        compiler_params=pltpu.CompilerParams(
            dimension_semantics=_DIM_SEMANTICS),
    )(dec_flat, rec_flat, dec2d, rec2d,
      kp["w_reg_t"], kp["b_reg"], kp["w_rec_t"], kp["b_rec"],
      kp["wf_dec"], kp["wf_rec"], kp["bf"])

    reg_output = small[0].reshape(B, S, FEAT_DIM)
    recons_output = small[1].reshape(B, S, FEAT_DIM)
    # (2, B, 18) -> (B, 4, 9): fault_sigs[:, i] == fault_sig_{i+1}
    fault_sigs = jnp.transpose(fault, (1, 0, 2)).reshape(B, N_HEADS, NUM_FAULT)
    return reg_output, recons_output, fault_sigs


# ----------------------------------------------------------------------------
# Parameter init (PyTorch nn.Linear layout) + one-time kernel repack
# ----------------------------------------------------------------------------
def init_linear(key, in_dim, out_dim):
    kw, kb = jax.random.split(key)
    bound = 1.0 / math.sqrt(in_dim)
    w = jax.random.uniform(kw, (out_dim, in_dim), jnp.float32, -bound, bound)
    b = jax.random.uniform(kb, (out_dim,), jnp.float32, -bound, bound)
    return w, b


def init_params(key):
    keys = jax.random.split(key, 6)
    p = {}
    p["regress"] = init_linear(keys[0], HID_DIM, FEAT_DIM)
    p["recons"] = init_linear(keys[1], HID_DIM, FEAT_DIM)
    for i in range(N_HEADS):
        p[f"sig{i + 1}"] = init_linear(keys[2 + i], 2 * K_HALF, NUM_FAULT)
    return p


def prepare_kernel_params(p):
    """One-time repack into kernel-friendly layouts (NOT done per forward)."""
    wr, br = p["regress"]
    wc, bc = p["recons"]
    # Stack the 4 fault heads: (36, 38400).  nn.Linear's (out, in) layout is
    # already lane-dense (K on the last axis) -> no transpose needed.
    wf = jnp.concatenate([p[f"sig{i + 1}"][0] for i in range(N_HEADS)], axis=0)
    bf = jnp.concatenate([p[f"sig{i + 1}"][1] for i in range(N_HEADS)], axis=0)
    kp = {
        "w_reg_t": wr.T,                                  # (256, 4) f32
        "b_reg": br[None, :],                             # (1, 4)   f32
        "w_rec_t": wc.T,                                  # (256, 4) f32
        "b_rec": bc[None, :],                             # (1, 4)   f32
        # column split: dec / recons part of the flattened concat;
        # row split: parallel halves (heads 1-2 / heads 3-4).  bf16 halves the
        # dominant HBM weight stream; accumulation stays f32 in the kernel.
        "wf_dec": wf[:, :K_HALF].reshape(2, NH, K_HALF).astype(jnp.bfloat16),
        "wf_rec": wf[:, K_HALF:].reshape(2, NH, K_HALF).astype(jnp.bfloat16),
        "bf": bf.reshape(2, 1, NH),                       # (2, 1, 18) f32
    }
    return {k: jnp.asarray(v) for k, v in kp.items()}


# ----------------------------------------------------------------------------
# Plain-JAX reference (matches the PyTorch forward in eval mode, f32)
# ----------------------------------------------------------------------------
def pred_head_reference(p, dec_out, recons_out):
    wr, br = p["regress"]
    wc, bc = p["recons"]
    reg = dec_out @ wr.T + br
    rec = recons_out @ wc.T + bc
    B = dec_out.shape[0]
    cat = jnp.concatenate([dec_out, recons_out], axis=1).reshape(B, -1)
    sigs = [cat @ p[f"sig{i + 1}"][0].T + p[f"sig{i + 1}"][1]
            for i in range(N_HEADS)]
    return reg, rec, sigs


# ----------------------------------------------------------------------------
if __name__ == "__main__":
    key = jax.random.PRNGKey(0)
    k_params, k_dec, k_rec = jax.random.split(key, 3)

    params = init_params(k_params)
    kparams = prepare_kernel_params(params)   # one-time weight repack (bf16 fault weights)

    B = 2
    dec_out = jax.random.normal(k_dec, (B, SEQ, HID_DIM), jnp.float32)
    recons_out = jax.random.normal(k_rec, (B, SEQ, HID_DIM), jnp.float32)

    # TODO(synk): nn.Dropout(p=0.1) is treated as identity (inference mode);
    # training-mode stochastic dropout is not implemented in the kernel.
    fwd = jax.jit(pred_head_forward)
    reg, rec, fault_sigs = fwd(kparams, dec_out, recons_out)
    jax.block_until_ready((reg, rec, fault_sigs))

    # correctness check against plain-JAX f32 reference
    reg_r, rec_r, sigs_r = pred_head_reference(params, dec_out, recons_out)
    assert reg.shape == (B, SEQ, FEAT_DIM)
    assert rec.shape == (B, SEQ, FEAT_DIM)
    assert fault_sigs.shape == (B, N_HEADS, NUM_FAULT)
    assert jnp.allclose(reg, reg_r, atol=1e-4, rtol=1e-4)
    assert jnp.allclose(rec, rec_r, atol=1e-4, rtol=1e-4)
    # fault heads run in bf16 (weights + activations) with f32 accumulation:
    # tolerance loosened vs the pure-f32 reference.
    for i in range(N_HEADS):
        assert jnp.allclose(fault_sigs[:, i], sigs_r[i], atol=5e-2, rtol=5e-2)

    print("KERNEL_OK")
</pallas_src>

<mosaic_0001>
module attributes {stable_mosaic.version = 11 : i64} {
  func.func @pred_head_kernel(%arg0: i32, %arg1: memref<2x19200xbf16, #tpu.memory_space<vmem>>, %arg2: memref<2x19200xbf16, #tpu.memory_space<vmem>>, %arg3: memref<150x256xf32, #tpu.memory_space<vmem>>, %arg4: memref<150x256xf32, #tpu.memory_space<vmem>>, %arg5: memref<256x4xf32, #tpu.memory_space<vmem>>, %arg6: memref<1x4xf32, #tpu.memory_space<vmem>>, %arg7: memref<256x4xf32, #tpu.memory_space<vmem>>, %arg8: memref<1x4xf32, #tpu.memory_space<vmem>>, %arg9: memref<1x18x19200xbf16, #tpu.memory_space<vmem>>, %arg10: memref<1x18x19200xbf16, #tpu.memory_space<vmem>>, %arg11: memref<1x1x18xf32, #tpu.memory_space<vmem>>, %arg12: memref<1x150x4xf32, #tpu.memory_space<vmem>>, %arg13: memref<1x2x18xf32, #tpu.memory_space<vmem>>) attributes {dimension_semantics = [#tpu.dimension_semantics<parallel>], iteration_bounds = array<i64: 2>, scalar_prefetch = 0 : i64, scratch_operands = 0 : i64, tpu.core_type = #tpu.core_type<tc>, window_params = [{pipeline_mode = #tpu.pipeline_mode<synchronous>, transform_indices = @transform_0, window_bounds = array<i64: 2, 19200>}, {pipeline_mode = #tpu.pipeline_mode<synchronous>, transform_indices = @transform_1, window_bounds = array<i64: 2, 19200>}, {pipeline_mode = #tpu.pipeline_mode<synchronous>, transform_indices = @transform_2, window_bounds = array<i64: 150, 256>}, {pipeline_mode = #tpu.pipeline_mode<synchronous>, transform_indices = @transform_3, window_bounds = array<i64: 150, 256>}, {pipeline_mode = #tpu.pipeline_mode<synchronous>, transform_indices = @transform_4, window_bounds = array<i64: 256, 4>}, {pipeline_mode = #tpu.pipeline_mode<synchronous>, transform_indices = @transform_5, window_bounds = array<i64: 1, 4>}, {pipeline_mode = #tpu.pipeline_mode<synchronous>, transform_indices = @transform_6, window_bounds = array<i64: 256, 4>}, {pipeline_mode = #tpu.pipeline_mode<synchronous>, transform_indices = @transform_7, window_bounds = array<i64: 1, 4>}, {transform_indices = @transform_8, window_bounds = array<i64: 1, 18, 19200>}, {transform_indices = @transform_9, window_bounds = array<i64: 1, 18, 19200>}, {transform_indices = @transform_10, window_bounds = array<i64: 1, 1, 18>}, {transform_indices = @transform_11, window_bounds = array<i64: 1, 150, 4>}, {transform_indices = @transform_12, window_bounds = array<i64: 1, 2, 18>}]} {
    %c0 = arith.constant 0 : index
    %c0_0 = arith.constant 0 : index
    %0 = vector.load %arg1[%c0, %c0_0] : memref<2x19200xbf16, #tpu.memory_space<vmem>>, vector<2x19200xbf16>
    %c0_1 = arith.constant 0 : index
    %c0_2 = arith.constant 0 : index
    %c0_3 = arith.constant 0 : index
    %1 = vector.load %arg9[%c0_1, %c0_2, %c0_3] : memref<1x18x19200xbf16, #tpu.memory_space<vmem>>, vector<1x18x19200xbf16>
    %2 = vector.shape_cast %1 : vector<1x18x19200xbf16> to vector<18x19200xbf16>
    %cst = arith.constant dense<0.000000e+00> : vector<2x18xf32>
    %3 = tpu.matmul %0, %2, %cst {dimension_numbers = #tpu.dot_dimension_numbers<[1], [1], [0], [0], [0, 0, 1, 0], [], []>} : vector<2x19200xbf16>, vector<18x19200xbf16>, vector<2x18xf32> -> vector<2x18xf32>
    %c0_4 = arith.constant 0 : index
    %c0_5 = arith.constant 0 : index
    %4 = vector.load %arg2[%c0_4, %c0_5] : memref<2x19200xbf16, #tpu.memory_space<vmem>>, vector<2x19200xbf16>
    %c0_6 = arith.constant 0 : index
    %c0_7 = arith.constant 0 : index
    %c0_8 = arith.constant 0 : index
    %5 = vector.load %arg10[%c0_6, %c0_7, %c0_8] : memref<1x18x19200xbf16, #tpu.memory_space<vmem>>, vector<1x18x19200xbf16>
    %6 = vector.shape_cast %5 : vector<1x18x19200xbf16> to vector<18x19200xbf16>
    %cst_9 = arith.constant dense<0.000000e+00> : vector<2x18xf32>
    %7 = tpu.matmul %4, %6, %cst_9 {dimension_numbers = #tpu.dot_dimension_numbers<[1], [1], [0], [0], [0, 0, 1, 0], [], []>} : vector<2x19200xbf16>, vector<18x19200xbf16>, vector<2x18xf32> -> vector<2x18xf32>
    %8 = arith.addf %3, %7 : vector<2x18xf32>
    %c0_10 = arith.constant 0 : index
    %c0_11 = arith.constant 0 : index
    %c0_12 = arith.constant 0 : index
    %9 = vector.load %arg11[%c0_10, %c0_11, %c0_12] : memref<1x1x18xf32, #tpu.memory_space<vmem>>, vector<1x1x18xf32>
    %10 = vector.shape_cast %9 : vector<1x1x18xf32> to vector<1x18xf32>
    %11 = vector.broadcast %10 : vector<1x18xf32> to vector<2x18xf32>
    %12 = arith.addf %8, %11 : vector<2x18xf32>
    %c0_13 = arith.constant 0 : index
    %c0_14 = arith.constant 0 : index
    %c0_15 = arith.constant 0 : index
    %13 = vector.load %arg13[%c0_13, %c0_14, %c0_15] : memref<1x2x18xf32, #tpu.memory_space<vmem>>, vector<1x2x18xf32>
    %14 = vector.shape_cast %13 : vector<1x2x18xf32> to vector<2x18xf32>
    %15 = vector.shape_cast %12 : vector<2x18xf32> to vector<1x2x18xf32>
    tpu.vector_store %arg13[%c0_13, %c0_14, %c0_15], %15 {strides = array<i32>} : memref<1x2x18xf32, #tpu.memory_space<vmem>>, vector<1x2x18xf32>,
    %c0_i32 = arith.constant 0 : i32
    %16 = arith.cmpi eq, %arg0, %c0_i32 : i32
    %17 = arith.extui %16 : i1 to i32
    %c0_i32_16 = arith.constant 0 : i32
    %18 = arith.cmpi ne, %17, %c0_i32_16 : i32
    scf.if %18 {
      %c0_18 = arith.constant 0 : index
      %c0_19 = arith.constant 0 : index
      %22 = vector.load %arg3[%c0_18, %c0_19] : memref<150x256xf32, #tpu.memory_space<vmem>>, vector<150x256xf32>
      %c0_20 = arith.constant 0 : index
      %c0_21 = arith.constant 0 : index
      %23 = vector.load %arg5[%c0_20, %c0_21] : memref<256x4xf32, #tpu.memory_space<vmem>>, vector<256x4xf32>
      %cst_22 = arith.constant dense<0.000000e+00> : vector<150x4xf32>
      %24 = tpu.matmul %22, %23, %cst_22 {dimension_numbers = #tpu.dot_dimension_numbers<[1], [0], [0], [1], [0, 0, 1, 1], [], []>} : vector<150x256xf32>, vector<256x4xf32>, vector<150x4xf32> -> vector<150x4xf32>
      %c0_23 = arith.constant 0 : index
      %c0_24 = arith.constant 0 : index
      %25 = vector.load %arg6[%c0_23, %c0_24] : memref<1x4xf32, #tpu.memory_space<vmem>>, vector<1x4xf32>
      %26 = vector.broadcast %25 : vector<1x4xf32> to vector<150x4xf32>
      %27 = arith.addf %24, %26 : vector<150x4xf32>
      %c0_25 = arith.constant 0 : index
      %c0_26 = arith.constant 0 : index
      %c0_27 = arith.constant 0 : index
      %28 = vector.load %arg12[%c0_25, %c0_26, %c0_27] : memref<1x150x4xf32, #tpu.memory_space<vmem>>, vector<1x150x4xf32>
      %29 = vector.shape_cast %28 : vector<1x150x4xf32> to vector<150x4xf32>
      %30 = vector.shape_cast %27 : vector<150x4xf32> to vector<1x150x4xf32>
      tpu.vector_store %arg12[%c0_25, %c0_26, %c0_27], %30 {strides = array<i32>} : memref<1x150x4xf32, #tpu.memory_space<vmem>>, vector<1x150x4xf32>,
    } else {
    }
    %c1_i32 = arith.constant 1 : i32
    %19 = arith.cmpi eq, %arg0, %c1_i32 : i32
    %20 = arith.extui %19 : i1 to i32
    %c0_i32_17 = arith.constant 0 : i32
    %21 = arith.cmpi ne, %20, %c0_i32_17 : i32
    scf.if %21 {
      %c0_18 = arith.constant 0 : index
      %c0_19 = arith.constant 0 : index
      %22 = vector.load %arg4[%c0_18, %c0_19] : memref<150x256xf32, #tpu.memory_space<vmem>>, vector<150x256xf32>
      %c0_20 = arith.constant 0 : index
      %c0_21 = arith.constant 0 : index
      %23 = vector.load %arg7[%c0_20, %c0_21] : memref<256x4xf32, #tpu.memory_space<vmem>>, vector<256x4xf32>
      %cst_22 = arith.constant dense<0.000000e+00> : vector<150x4xf32>
      %24 = tpu.matmul %22, %23, %cst_22 {dimension_numbers = #tpu.dot_dimension_numbers<[1], [0], [0], [1], [0, 0, 1, 1], [], []>} : vector<150x256xf32>, vector<256x4xf32>, vector<150x4xf32> -> vector<150x4xf32>
      %c0_23 = arith.constant 0 : index
      %c0_24 = arith.constant 0 : index
      %25 = vector.load %arg8[%c0_23, %c0_24] : memref<1x4xf32, #tpu.memory_space<vmem>>, vector<1x4xf32>
      %26 = vector.broadcast %25 : vector<1x4xf32> to vector<150x4xf32>
      %27 = arith.addf %24, %26 : vector<150x4xf32>
      %c0_25 = arith.constant 0 : index
      %c0_26 = arith.constant 0 : index
      %c0_27 = arith.constant 0 : index
      %28 = vector.load %arg12[%c0_25, %c0_26, %c0_27] : memref<1x150x4xf32, #tpu.memory_space<vmem>>, vector<1x150x4xf32>
      %29 = vector.shape_cast %28 : vector<1x150x4xf32> to vector<150x4xf32>
      %30 = vector.shape_cast %27 : vector<150x4xf32> to vector<1x150x4xf32>
      tpu.vector_store %arg12[%c0_25, %c0_26, %c0_27], %30 {strides = array<i32>} : memref<1x150x4xf32, #tpu.memory_space<vmem>>, vector<1x150x4xf32>,
    } else {
    }
    return
  }
  func.func @transform_0(%arg0: i32) -> (i32, i32) {
    %c0_i32 = arith.constant 0 : i32
    %c0_i32_0 = arith.constant 0 : i32
    %c0_i32_1 = arith.constant 0 : i32
    return %c0_i32, %c0_i32_0 : i32, i32
  }
  func.func @transform_1(%arg0: i32) -> (i32, i32) {
    %c0_i32 = arith.constant 0 : i32
    %c0_i32_0 = arith.constant 0 : i32
    %c0_i32_1 = arith.constant 0 : i32
    return %c0_i32, %c0_i32_0 : i32, i32
  }
  func.func @transform_2(%arg0: i32) -> (i32, i32) {
    %c0_i32 = arith.constant 0 : i32
    %c0_i32_0 = arith.constant 0 : i32
    %c0_i32_1 = arith.constant 0 : i32
    return %c0_i32, %c0_i32_0 : i32, i32
  }
  func.func @transform_3(%arg0: i32) -> (i32, i32) {
    %c0_i32 = arith.constant 0 : i32
    %c0_i32_0 = arith.constant 0 : i32
    %c0_i32_1 = arith.constant 0 : i32
    return %c0_i32, %c0_i32_0 : i32, i32
  }
  func.func @transform_4(%arg0: i32) -> (i32, i32) {
    %c0_i32 = arith.constant 0 : i32
    %c0_i32_0 = arith.constant 0 : i32
    %c0_i32_1 = arith.constant 0 : i32
    return %c0_i32, %c0_i32_0 : i32, i32
  }
  func.func @transform_5(%arg0: i32) -> (i32, i32) {
    %c0_i32 = arith.constant 0 : i32
    %c0_i32_0 = arith.constant 0 : i32
    %c0_i32_1 = arith.constant 0 : i32
    return %c0_i32, %c0_i32_0 : i32, i32
  }
  func.func @transform_6(%arg0: i32) -> (i32, i32) {
    %c0_i32 = arith.constant 0 : i32
    %c0_i32_0 = arith.constant 0 : i32
    %c0_i32_1 = arith.constant 0 : i32
    return %c0_i32, %c0_i32_0 : i32, i32
  }
  func.func @transform_7(%arg0: i32) -> (i32, i32) {
    %c0_i32 = arith.constant 0 : i32
    %c0_i32_0 = arith.constant 0 : i32
    %c0_i32_1 = arith.constant 0 : i32
    return %c0_i32, %c0_i32_0 : i32, i32
  }
  func.func @transform_8(%arg0: i32) -> (i32, i32, i32) {
    %c0_i32 = arith.constant 0 : i32
    %c0_i32_0 = arith.constant 0 : i32
    %c0_i32_1 = arith.constant 0 : i32
    return %arg0, %c0_i32, %c0_i32_0 : i32, i32, i32
  }
  func.func @transform_9(%arg0: i32) -> (i32, i32, i32) {
    %c0_i32 = arith.constant 0 : i32
    %c0_i32_0 = arith.constant 0 : i32
    %c0_i32_1 = arith.constant 0 : i32
    return %arg0, %c0_i32, %c0_i32_0 : i32, i32, i32
  }
  func.func @transform_10(%arg0: i32) -> (i32, i32, i32) {
    %c0_i32 = arith.constant 0 : i32
    %c0_i32_0 = arith.constant 0 : i32
    %c0_i32_1 = arith.constant 0 : i32
    return %arg0, %c0_i32, %c0_i32_0 : i32, i32, i32
  }
  func.func @transform_11(%arg0: i32) -> (i32, i32, i32) {
    %c0_i32 = arith.constant 0 : i32
    %c0_i32_0 = arith.constant 0 : i32
    %c0_i32_1 = arith.constant 0 : i32
    return %arg0, %c0_i32, %c0_i32_0 : i32, i32, i32
  }
  func.func @transform_12(%arg0: i32) -> (i32, i32, i32) {
    %c0_i32 = arith.constant 0 : i32
    %c0_i32_0 = arith.constant 0 : i32
    %c0_i32_1 = arith.constant 0 : i32
    return %arg0, %c0_i32, %c0_i32_0 : i32, i32, i32
  }
}

</mosaic_0001>

<bundles_post_ra>
// kernel: squeeze.3
= control target key start
LH: loop header
LB: loop body
LE: loop exit
PB: predicated region body
PF: predicated region fallthrough
CT: control target
= control target key end

     0   :  { %vm11_vm0 = vcmask 613376   ;;  %vm20_vm1 = vcmask 433152   ;;  %vm23_vm2 = vcmask 613800   ;;  %s85_s0 = inlined_call_operand.vmem [shape: f32[1,150,4], index: 0, kind: input, shape index: {}]   ;;  %s86_s1 = inlined_call_operand.vmem [shape: f32[2,75,4], index: 1, kind: output, shape index: {}]  }
   0x1   :  { %v51_v0 = vld [vmem:[%s85_s0 + $0x4] sm:$0xf]  ;;  %v8_v1 = vld [vmem:[%s85_s0] sm:$0xf]  ;;  %s56_s0 = smov 53  }
   0x2   :  { %7 = vst [vmem:[#allocation1 + $0x8] sm:$0xf] %v51_v0  ;;  %9 = vst [vmem:[#allocation1] sm:$0xf] %v8_v1 }
   0x9   :  { %v10_v2 = vld [vmem:[#allocation1] sm:$0xf]   ;;  %v15_v4 = vld [vmem:[#allocation1 + $0x8] sm:$0xf]  }
   0xa   :  { %v13_v3 = vld [vmem:[#allocation1] sm:$0xf]   ;;  %12 = vst.msk [vmem:[#allocation0] ss:$8 sm:$0xf] %vm11_vm0, %v10_v2  }
   0xb   :  { %v17_v5 = vsel %vm11_vm0, %v15_v4, %v13_v3 }
   0xc   :  { %18 = vrot.lane.b32.xlu0 %v17_v5, %s56_s0 }
  0x7e   :  { %v19_v6 = vpop.permute.xlu0 %18  }
  0x7f   :  { %22 = vst.msk [vmem:[#allocation0 + $0x1] ss:$8 sm:$0xf] %vm20_vm1, %v19_v6  }
  0x80   :  { %25 = vst.msk [vmem:[#allocation0 + $0x1] ss:$8 sm:$0xf] %vm23_vm2, %v19_v6  }
  0x87   :  { %v29_v7 = vld [vmem:[#allocation0] sm:$0x3]  ;;  %v33_v8 = vld [vmem:[#allocation0 + $0x8] sm:$0x3]  ;;  %v38_v9 = vld [vmem:[#allocation0 + $0x10] sm:$0x3] }
  0x88   :  { %31 = vst [vmem:[%s86_s1] sm:$0x3] %v29_v7  ;;  %52 = vst [vmem:[%s86_s1 + $0x2] sm:$0x3] %v33_v8  ;;  %v44_v10 = vld [vmem:[#allocation0 + $0x18] sm:$0x3] }
  0x89   :  { %53 = vst [vmem:[%s86_s1 + $0x4] sm:$0x3] %v38_v9  ;;  %54 = vst [vmem:[%s86_s1 + $0x6] sm:$0x3] %v44_v10 }

// kernel: pred_head_forward.1
= control target key start
LH: loop header
LB: loop body
LE: loop exit
PB: predicated region body
PF: predicated region fallthrough
CT: control target
= control target key end

     0   :  { %s13988_s21 = smov 0   ;;  %s15436_s0 = inlined_call_operand.vmem [shape: bf16[2,19200], index: 0, kind: input, shape index: {}]   ;;  %s15437_s1 = inlined_call_operand.vmem [shape: bf16[2,19200], index: 1, kind: input, shape index: {}]   ;;  %s15438_s2 = inlined_call_operand.vmem [shape: f32[150,256], index: 2, kind: input, shape index: {}]   ;;  %s15439_s3 = inlined_call_operand.vmem [shape: f32[150,256], index: 3, kind: input, shape index: {}]   ;;  %s15440_s4 = inlined_call_operand.vmem [shape: f32[256,4], index: 4, kind: input, shape index: {}]   ;;  %s15441_s5 = inlined_call_operand.vmem [shape: f32[1,4], index: 5, kind: input, shape index: {}]   ;;  %s15442_s6 = inlined_call_operand.vmem [shape: f32[256,4], index: 6, kind: input, shape index: {}]   ;;  %s15443_s7 = inlined_call_operand.vmem [shape: f32[1,4], index: 7, kind: input, shape index: {}]   ;;  %s15444_s8 = inlined_call_operand.vmem [shape: bf16[2,18,19200], index: 8, kind: input, shape index: {}]   ;;  %s15445_s9 = inlined_call_operand.vmem [shape: bf16[2,18,19200], index: 9, kind: input, shape index: {}]   ;;  %s15446_s10 = inlined_call_operand.vmem [shape: f32[2,1,18], index: 10, kind: input, shape index: {}]   ;;  %s15447_s11 = inlined_call_operand.vmem [shape: f32[2,150,4], index: 11, kind: output, shape index: {0}]   ;;  %s15448_s12 = inlined_call_operand.vmem [shape: f32[2,2,18], index: 12, kind: output, shape index: {1}]  }
   0x1 LB: > { %s13994_s22 = sadd.s32 4294967295, %s13918_s21   ;;  %p12339_p0 = scmp.ge.s32.totalorder %s13918_s21, 1  ;;  %s13918_s21 = sphi %s13988_s21, %s23_s21  }
   0x2   : > { %p383_p1 = scmp.lt.s32.totalorder %s13918_s21, 3 }
   0x4   : > { %p384_p2 = pnand %p12339_p0, %p383_p1 }
   0x5   : > { %p437_p3 = scmp.lt.s32.totalorder (!%p384_p2), %s13994_s22, 1  ;;  %v971_v0 = vlaneseq (!%p384_p2)  ;;  %v13920_v1 = vmov (!%p384_p2), 1966171168   ;;  %v704_v5 = vld [vmem:[%s15437_s1] sm:$0xff] (!%p384_p2)  ;;  %v705_v36 = vld [vmem:[%s15437_s1 + $0x8] sm:$0xff] (!%p384_p2)  ;;  %vm11702_vm0 = vcmask (!%p384_p2), 140288  }
   0x6   : > { %387 = sbr.rel (%p384_p2) target bundleno = 2006 (0x7d6), region = 64  ;;  %v969_v2 = vunpack.c.l.s4 (!%p384_p2), %v13920_v1  ;;  %v967_v13 = vcombine.high (!%p384_p2), %v704_v5, %v704_v5  ;;  %v1016_v53 = vcombine.high (!%p384_p2), %v705_v36, %v705_v36  ;;  %p12945_p4 = scmp.ne.s32.totalorder (!%p384_p2), %s13994_s22, 0 }
   0x7   : > { %v972_v3 = vshrl.u32 (!%p384_p2), %v971_v0, 7 }
   0x8   : > { %v970_v4 = vunpack.c.0.s8 (!%p384_p2), %v969_v2 }
   0xa   : > { %v14007_v6 = vsub.s32 (!%p384_p2), %v970_v4, %v972_v3 }
   0xc   : > { %v974_v8 = vrot.slane (!%p384_p2), %v704_v5, %v14007_v6  ;;  %v981_v20 = vrot.slane (!%p384_p2), %v967_v13, %v14007_v6  ;;  %v1023_v37 = vrot.slane (!%p384_p2), %v705_v36, %v14007_v6  ;;  %v1030_v54 = vrot.slane (!%p384_p2), %v1016_v53, %v14007_v6 }
   0xd   : > { %s14000_s23 = scalar_select %p437_p3, %s13994_s22, 1 }
   0xe   : > { %v982_v14 = vcombine.high %v974_v8, %v974_v8  ;;  %v983_v25 = vcombine.high %v981_v20, %v981_v20  ;;  %v990_v26 = vrot.slane %v974_v8, %v14007_v6  ;;  %v1031_v42 = vcombine.high %v1023_v37, %v1023_v37 }
   0xf   : > { %s13111_s24 = smul.u32 1800, %s14000_s23  ;;  %v997_v43 = vrot.slane %v981_v20, %v14007_v6  ;;  %v1032_v59 = vcombine.high %v1030_v54, %v1030_v54  ;;  %v1039_v60 = vrot.slane %v1023_v37, %v14007_v6  ;;  %s449_s18 = scalar_lea.vmem %s15446_s10, %s14000_s23  ;;  %vm11945_vm1 = vcmask (!%p12945_p4), 31744  }
  0x10   : > { %s13112_s27 = smul.u32 152, %s14000_s23  ;;  %v1004_v18 = vrot.slane %v982_v14, %v14007_v6  ;;  %v1011_v29 = vrot.slane %v983_v25, %v14007_v6  ;;  %v1012_v30 = vcombine.high %v990_v26, %v990_v26  ;;  %v1053_v46 = vrot.slane %v1031_v42, %v14007_v6  ;;  %s12343_s19 = sshll.u32 %s14000_s23, 1 }
  0x11   : > { %s14014_s30 = scalar_lea.vmem %s15445_s9, %s13111_s24  ;;  %v1013_v47 = vcombine.high %v997_v43, %v997_v43  ;;  %v1060_v1 = vrot.slane %v1032_v59, %v14007_v6  ;;  %v1061_v2 = vcombine.high %v1039_v60, %v1039_v60  ;;  %v1046_v14 = vrot.slane %v1030_v54, %v14007_v6  ;;  %s14337_s26 = scalar_lea.vmem %s15444_s8, %s13111_s24 }
  0x12   : > { %s14019_s15 = scalar_lea.vmem %s15447_s11, %s13112_s27  ;;  %v13124_v7 = vld [vmem:[%s14014_s30 + $0x4] ss:$600 sps:$4 sm:$0xff]   ;;  %v13128_v10 = vld [vmem:[%s14014_s30] ss:$600 sps:$4 sm:$0xff]   ;;  %v873_v12 = vld [vmem:[%s14014_s30 + $0x4b0] sm:$0x11]  ;;  %3353 = vmatprep.mubr.bf16.mxu0 %v1004_v18  ;;  %v1014_v19 = vcombine.high %v1004_v18, %v1004_v18  ;;  %v1015_v35 = vcombine.high %v1011_v29, %v1011_v29  ;;  %v1063_v52 = vcombine.high %v1053_v46, %v1053_v46  ;;  %s458_s25 = scalar_lea.vmem %s15448_s12, %s12343_s19 }
  0x13   : > { %v13126_v9 = vld [vmem:[%s14014_s30 + $0xc] ss:$600 sps:$4 sm:$0xff]   ;;  %3321 = vmatprep.subr.bf16.mxu0 %v13124_v7  ;;  %v13129_v11 = vld [vmem:[%s14014_s30 + $0x8] ss:$600 sps:$4 sm:$0xff]   ;;  %v12495_v15 = vcombine.high %v873_v12, %v873_v12  ;;  %v874_v16 = vld [vmem:[%s14014_s30 + $0x4b8] sm:$0x11]  ;;  %v12494_v21 = vcombine.low %v873_v12, %v873_v12  ;;  %v1064_v5 = vcombine.high %v1060_v1, %v1060_v1  ;;  %v1062_v20 = vcombine.high %v1046_v14, %v1046_v14 }
  0x14   : > { %3361 = vmatprep.subr.bf16.mxu1 %v13126_v9  ;;  %3322 = vmatpush1.bf16.xpose.msra.mxu0 %v13128_v10  ;;  %v12497_v17 = vcombine.high %v874_v16, %v874_v16  ;;  %v12496_v22 = vcombine.low %v874_v16, %v874_v16  ;;  %v13137_v23 = vld [vmem:[%s14014_s30 + $0x14] ss:$600 sps:$4 sm:$0xff]   ;;  %v875_v27 = vld [vmem:[%s14014_s30 + $0x4c0] sm:$0x11]  ;;  %v13135_v31 = vld [vmem:[%s14014_s30 + $0x10] ss:$600 sps:$4 sm:$0xff]  }
  0x15   : > { %3362 = vmatpush1.bf16.xpose.msra.mxu1 %v13129_v11  ;;  %3323 = vmatprep.subr.bf16.mxu0 %v12495_v15  ;;  %v13140_v24 = vld [vmem:[%s14014_s30 + $0x1c] ss:$600 sps:$4 sm:$0xff]   ;;  %v876_v28 = vld [vmem:[%s14014_s30 + $0x4c8] sm:$0x11]  ;;  %v13138_v32 = vld [vmem:[%s14014_s30 + $0x18] ss:$600 sps:$4 sm:$0xff]   ;;  %v12499_v33 = vcombine.high %v875_v27, %v875_v27  ;;  %v12498_v38 = vcombine.low %v875_v27, %v875_v27 }
  0x16   : > { %3363 = vmatprep.subr.bf16.mxu1 %v12497_v17  ;;  %3393 = vmatprep.mubr.bf16.mxu1 %v1014_v19  ;;  %v12501_v34 = vcombine.high %v876_v28, %v876_v28  ;;  %v12500_v39 = vcombine.low %v876_v28, %v876_v28  ;;  %v13147_v40 = vld [vmem:[%s14014_s30 + $0x24] ss:$600 sps:$4 sm:$0xff]   ;;  %v877_v44 = vld [vmem:[%s14014_s30 + $0x4d0] sm:$0x11]  ;;  %v13145_v48 = vld [vmem:[%s14014_s30 + $0x20] ss:$600 sps:$4 sm:$0xff]  }
  0x17   : > { %v13150_v41 = vld [vmem:[%s14014_s30 + $0x2c] ss:$600 sps:$4 sm:$0xff]   ;;  %v878_v45 = vld [vmem:[%s14014_s30 + $0x4d8] sm:$0x11]  ;;  %v13148_v49 = vld [vmem:[%s14014_s30 + $0x28] ss:$600 sps:$4 sm:$0xff]   ;;  %v12503_v50 = vcombine.high %v877_v44, %v877_v44  ;;  %v12502_v56 = vcombine.low %v877_v44, %v877_v44 }
  0x18   : > { %v12505_v51 = vcombine.high %v878_v45, %v878_v45  ;;  %v13157_v55 = vld [vmem:[%s14014_s30 + $0x34] ss:$600 sps:$4 sm:$0xff]   ;;  %v12504_v57 = vcombine.low %v878_v45, %v878_v45  ;;  %v879_v61 = vld [vmem:[%s14014_s30 + $0x4e0] sm:$0x11]  ;;  %v13155_v63 = vld [vmem:[%s14014_s30 + $0x30] ss:$600 sps:$4 sm:$0xff]  }
  0x19   : > { %v13160_v58 = vld [vmem:[%s14014_s30 + $0x3c] ss:$600 sps:$4 sm:$0xff]   ;;  %v880_v62 = vld [vmem:[%s14014_s30 + $0x4e8] sm:$0x11]  ;;  %v13158_v0 = vld [vmem:[%s14014_s30 + $0x38] ss:$600 sps:$4 sm:$0xff]   ;;  %v12507_v3 = vcombine.high %v879_v61, %v879_v61  ;;  %v12506_v11 = vcombine.low %v879_v61, %v879_v61 }
  0x1a   : > { %v12509_v4 = vcombine.high %v880_v62, %v880_v62  ;;  %v706_v7 = vld [vmem:[%s15437_s1 + $0x10] sm:$0xff]  ;;  %v13168_v9 = vld [vmem:[%s14014_s30 + $0x44] ss:$600 sps:$4 sm:$0xff]   ;;  %v12508_v12 = vcombine.low %v880_v62, %v880_v62  ;;  %v13166_v17 = vld [vmem:[%s14014_s30 + $0x40] ss:$600 sps:$4 sm:$0xff]   ;;  %vm11964_vm2 = vcmask (!%p12945_p4), 29696  }
  0x1b   : > { %v1072_v8 = vrot.slane %v706_v7, %v14007_v6  ;;  %v13171_v10 = vld [vmem:[%s14014_s30 + $0x4c] ss:$600 sps:$4 sm:$0xff]   ;;  %v881_v15 = vld [vmem:[%s14014_s30 + $0x4f0] sm:$0x11]  ;;  %v882_v16 = vld [vmem:[%s14014_s30 + $0x4f8] sm:$0x11] }
  0x1c   : > { %3324 = vmatpush1.bf16.xpose.msra.mxu0 %v12494_v21  ;;  %v13169_v18 = vld [vmem:[%s14014_s30 + $0x48] ss:$600 sps:$4 sm:$0xff]   ;;  %v12511_v21 = vcombine.high %v881_v15, %v881_v15  ;;  %v12510_v27 = vcombine.low %v881_v15, %v881_v15  ;;  %v12512_v28 = vcombine.low %v882_v16, %v882_v16  ;;  %v13179_v37 = vld [vmem:[%s14014_s30 + $0x58] ss:$600 sps:$4 sm:$0xff]   ;;  %v13189_v45 = vld [vmem:[%s14014_s30 + $0x64] ss:$600 sps:$4 sm:$0xff]  }
  0x1d   : > { %3364 = vmatpush1.bf16.xpose.msra.mxu1 %v12496_v22  ;;  %3401 = vmatprep.subr.bf16.mxu0 %v13137_v23  ;;  %v1080_v13 = vcombine.high %v1072_v8, %v1072_v8  ;;  %v12513_v22 = vcombine.high %v882_v16, %v882_v16  ;;  %v13176_v36 = vld [vmem:[%s14014_s30 + $0x50] ss:$600 sps:$4 sm:$0xff]   ;;  %v13187_v53 = vld [vmem:[%s14014_s30 + $0x60] ss:$600 sps:$4 sm:$0xff]   ;;  %v13199_v62 = vld [vmem:[%s14014_s30 + $0x74] ss:$600 sps:$4 sm:$0xff]  }
  0x1e   : > { %3441 = vmatprep.subr.bf16.mxu1 %v13140_v24  ;;  %v1065_v24 = vcombine.high %v706_v7, %v706_v7  ;;  %v13190_v54 = vld [vmem:[%s14014_s30 + $0x68] ss:$600 sps:$4 sm:$0xff]   ;;  %v13210_v16 = vld [vmem:[%s14014_s30 + $0x84] ss:$600 sps:$4 sm:$0xff]  }
  0x1f   : > { %v1102_v19 = vrot.slane %v1080_v13, %v14007_v6  ;;  %v13197_v7 = vld [vmem:[%s14014_s30 + $0x70] ss:$600 sps:$4 sm:$0xff]  }
  0x20   : > { %v1079_v25 = vrot.slane %v1065_v24, %v14007_v6  ;;  %v13208_v24 = vld [vmem:[%s14014_s30 + $0x80] ss:$600 sps:$4 sm:$0xff]  }
  0x21   : > { %v1112_v23 = vcombine.high %v1102_v19, %v1102_v19 }
  0x23   : > { %3354 = vmatmul.mubr.bf16.vlgmr.msra.gmra.mrb[0].mxu0 %v990_v26  ;;  %v13178_v26 = vld [vmem:[%s14014_s30 + $0x54] ss:$600 sps:$4 sm:$0xff]  }
  0x24   : > { %3394 = vmatmul.mubr.bf16.vlgmr.msra.gmra.mrb[0].mxu1 %v1012_v30  ;;  %3402 = vmatpush1.bf16.xpose.msra.mxu0 %v13135_v31  ;;  %v1081_v30 = vcombine.high %v1079_v25, %v1079_v25  ;;  %v1088_v31 = vrot.slane %v1072_v8, %v14007_v6  ;;  %v13200_v8 = vld [vmem:[%s14014_s30 + $0x78] ss:$600 sps:$4 sm:$0xff]  }
  0x25   : > { %3442 = vmatpush1.bf16.xpose.msra.mxu1 %v13138_v32  ;;  %3403 = vmatprep.subr.bf16.mxu0 %v12499_v33  ;;  %v883_v32 = vld [vmem:[%s14014_s30 + $0x500] sm:$0x11]  ;;  %v884_v33 = vld [vmem:[%s14014_s30 + $0x508] sm:$0x11] }
  0x26   : > { %3443 = vmatprep.subr.bf16.mxu1 %v12501_v34  ;;  %3433 = vmatprep.mubr.bf16.mxu0 %v1011_v29  ;;  %v13181_v29 = vld [vmem:[%s14014_s30 + $0x5c] ss:$600 sps:$4 sm:$0xff]   ;;  %v1109_v34 = vrot.slane %v1081_v30, %v14007_v6  ;;  %v12516_v44 = vcombine.low %v884_v33, %v884_v33 }
  0x27   : > { %3473 = vmatprep.mubr.bf16.mxu1 %v1015_v35  ;;  %v1110_v35 = vcombine.high %v1088_v31, %v1088_v31 }
  0x2c   : > { %3404 = vmatpush1.bf16.xpose.msra.mxu0 %v12498_v38  ;;  %v12515_v38 = vcombine.high %v883_v32, %v883_v32 }
  0x2d   : > { %3444 = vmatpush1.bf16.xpose.msra.mxu1 %v12500_v39  ;;  %3481 = vmatprep.subr.bf16.mxu0 %v13147_v40  ;;  %v12517_v39 = vcombine.high %v884_v33, %v884_v33  ;;  %v1113_v40 = vcombine.high %v1109_v34, %v1109_v34  ;;  %v13220_v33 = vld [vmem:[%s14014_s30 + $0x94] ss:$600 sps:$4 sm:$0xff]  }
  0x2e   : > { %3521 = vmatprep.subr.bf16.mxu1 %v13150_v41  ;;  %v707_v41 = vld [vmem:[%s15437_s1 + $0x18] sm:$0xff] }
  0x2f   : > { %v1121_v42 = vrot.slane %v707_v41, %v14007_v6 }
  0x33   : > { %3434 = vmatmul.mubr.bf16.vlgmr.msra.gmra.mrb[4].mxu0 %v997_v43  ;;  %v12514_v43 = vcombine.low %v883_v32, %v883_v32 }
  0x34   : > { %3474 = vmatmul.mubr.bf16.vlgmr.msra.gmra.mrb[4].mxu1 %v1013_v47  ;;  %3482 = vmatpush1.bf16.xpose.msra.mxu0 %v13145_v48  ;;  %v1129_v47 = vcombine.high %v1121_v42, %v1121_v42  ;;  %v1095_v48 = vrot.slane %v1079_v25, %v14007_v6  ;;  %v13211_v25 = vld [vmem:[%s14014_s30 + $0x88] ss:$600 sps:$4 sm:$0xff]  }
  0x35   : > { %3522 = vmatpush1.bf16.xpose.msra.mxu1 %v13148_v49  ;;  %3483 = vmatprep.subr.bf16.mxu0 %v12503_v50  ;;  %v885_v49 = vld [vmem:[%s14014_s30 + $0x510] sm:$0x11]  ;;  %v886_v50 = vld [vmem:[%s14014_s30 + $0x518] sm:$0x11] }
  0x36   : > { %3523 = vmatprep.subr.bf16.mxu1 %v12505_v51  ;;  %3513 = vmatprep.mubr.bf16.mxu0 %v1053_v46  ;;  %v13192_v46 = vld [vmem:[%s14014_s30 + $0x6c] ss:$600 sps:$4 sm:$0xff]   ;;  %v1151_v51 = vrot.slane %v1129_v47, %v14007_v6  ;;  %v12520_v61 = vcombine.low %v886_v50, %v886_v50 }
  0x37   : > { %3553 = vmatprep.mubr.bf16.mxu1 %v1063_v52  ;;  %v1111_v52 = vcombine.high %v1095_v48, %v1095_v48 }
  0x3c   : > { %3484 = vmatpush1.bf16.xpose.msra.mxu0 %v12502_v56  ;;  %v12521_v56 = vcombine.high %v886_v50, %v886_v50  ;;  %v13231_v50 = vld [vmem:[%s14014_s30 + $0xa4] ss:$600 sps:$4 sm:$0xff]  }
  0x3d   : > { %3524 = vmatpush1.bf16.xpose.msra.mxu1 %v12504_v57  ;;  %3561 = vmatprep.subr.bf16.mxu0 %v13157_v55  ;;  %v12519_v55 = vcombine.high %v885_v49, %v885_v49  ;;  %v1161_v57 = vcombine.high %v1151_v51, %v1151_v51 }
  0x3e   : > { %3601 = vmatprep.subr.bf16.mxu1 %v13160_v58  ;;  %v1114_v58 = vcombine.high %v707_v41, %v707_v41  ;;  %v13218_v41 = vld [vmem:[%s14014_s30 + $0x90] ss:$600 sps:$4 sm:$0xff]  }
  0x40   : > { %v1128_v59 = vrot.slane %v1114_v58, %v14007_v6  ;;  %v13229_v58 = vld [vmem:[%s14014_s30 + $0xa0] ss:$600 sps:$4 sm:$0xff]  }
  0x43   : > { %3514 = vmatmul.mubr.bf16.vlgmr.msra.gmra.mrb[8].mxu0 %v1039_v60  ;;  %v12518_v60 = vcombine.low %v885_v49, %v885_v49 }
  0x44   : > { %3554 = vmatmul.mubr.bf16.vlgmr.msra.gmra.mrb[8].mxu1 %v1061_v2  ;;  %3562 = vmatpush1.bf16.xpose.msra.mxu0 %v13155_v63  ;;  %v13202_v63 = vld [vmem:[%s14014_s30 + $0x7c] ss:$600 sps:$4 sm:$0xff]   ;;  %v887_v2 = vld [vmem:[%s14014_s30 + $0x520] sm:$0x11] }
  0x45   : > { %3602 = vmatpush1.bf16.xpose.msra.mxu1 %v13158_v0  ;;  %3563 = vmatprep.subr.bf16.mxu0 %v12507_v3  ;;  %v1130_v0 = vcombine.high %v1128_v59, %v1128_v59  ;;  %v888_v3 = vld [vmem:[%s14014_s30 + $0x528] sm:$0x11] }
  0x46   : > { %3603 = vmatprep.subr.bf16.mxu1 %v12509_v4  ;;  %3593 = vmatprep.mubr.bf16.mxu0 %v1060_v1  ;;  %v1137_v1 = vrot.slane %v1121_v42, %v14007_v6  ;;  %v12524_v15 = vcombine.low %v888_v3, %v888_v3  ;;  %v13221_v42 = vld [vmem:[%s14014_s30 + $0x98] ss:$600 sps:$4 sm:$0xff]  }
  0x47   : > { %3633 = vmatprep.mubr.bf16.mxu1 %v1064_v5  ;;  %v1158_v4 = vrot.slane %v1130_v0, %v14007_v6 }
  0x48   : > { %v1159_v5 = vcombine.high %v1137_v1, %v1137_v1 }
  0x4c   : > { %3564 = vmatpush1.bf16.xpose.msra.mxu0 %v12506_v11  ;;  %v1162_v11 = vcombine.high %v1158_v4, %v1158_v4 }
  0x4d   : > { %3604 = vmatpush1.bf16.xpose.msra.mxu1 %v12508_v12  ;;  %3641 = vmatprep.subr.bf16.mxu0 %v13168_v9  ;;  %v12523_v9 = vcombine.high %v887_v2, %v887_v2  ;;  %v708_v12 = vld [vmem:[%s15437_s1 + $0x20] sm:$0xff] }
  0x4e   : > { %3681 = vmatprep.subr.bf16.mxu1 %v13171_v10  ;;  %v12525_v10 = vcombine.high %v888_v3, %v888_v3  ;;  %v1170_v13 = vrot.slane %v708_v12, %v14007_v6  ;;  %v13241_v3 = vld [vmem:[%s14014_s30 + $0xb4] ss:$600 sps:$4 sm:$0xff]  }
  0x53   : > { %3594 = vmatmul.mubr.bf16.vlgmr.msra.gmra.mrb[12].mxu0 %v1046_v14  ;;  %v12522_v14 = vcombine.low %v887_v2, %v887_v2 }
  0x54   : > { %3634 = vmatmul.mubr.bf16.vlgmr.msra.gmra.mrb[12].mxu1 %v1062_v20  ;;  %3642 = vmatpush1.bf16.xpose.msra.mxu0 %v13166_v17  ;;  %v13213_v17 = vld [vmem:[%s14014_s30 + $0x8c] ss:$600 sps:$4 sm:$0xff]   ;;  %v889_v20 = vld [vmem:[%s14014_s30 + $0x530] sm:$0x11] }
  0x55   : > { %3682 = vmatpush1.bf16.xpose.msra.mxu1 %v13169_v18  ;;  %3643 = vmatprep.subr.bf16.mxu0 %v12511_v21  ;;  %v1178_v18 = vcombine.high %v1170_v13, %v1170_v13  ;;  %v890_v21 = vld [vmem:[%s14014_s30 + $0x538] sm:$0x11] }
  0x56   : > { %3683 = vmatprep.subr.bf16.mxu1 %v12513_v22  ;;  %3673 = vmatprep.mubr.bf16.mxu0 %v1102_v19  ;;  %v1144_v19 = vrot.slane %v1128_v59, %v14007_v6  ;;  %v12528_v32 = vcombine.low %v890_v21, %v890_v21  ;;  %v13232_v59 = vld [vmem:[%s14014_s30 + $0xa8] ss:$600 sps:$4 sm:$0xff]  }
  0x57   : > { %3713 = vmatprep.mubr.bf16.mxu1 %v1112_v23  ;;  %v1200_v22 = vrot.slane %v1178_v18, %v14007_v6 }
  0x58   : > { %v1160_v23 = vcombine.high %v1144_v19, %v1144_v19 }
  0x5c   : > { %3644 = vmatpush1.bf16.xpose.msra.mxu0 %v12510_v27  ;;  %v12529_v27 = vcombine.high %v890_v21, %v890_v21  ;;  %v13252_v21 = vld [vmem:[%s14014_s30 + $0xc4] ss:$600 sps:$4 sm:$0xff]  }
  0x5d   : > { %3684 = vmatpush1.bf16.xpose.msra.mxu1 %v12512_v28  ;;  %3721 = vmatprep.subr.bf16.mxu0 %v13178_v26  ;;  %v12527_v26 = vcombine.high %v889_v20, %v889_v20  ;;  %v1210_v28 = vcombine.high %v1200_v22, %v1200_v22 }
  0x5e   : > { %3761 = vmatprep.subr.bf16.mxu1 %v13181_v29  ;;  %v1163_v29 = vcombine.high %v708_v12, %v708_v12  ;;  %v13239_v12 = vld [vmem:[%s14014_s30 + $0xb0] ss:$600 sps:$4 sm:$0xff]  }
  0x60   : > { %v1177_v30 = vrot.slane %v1163_v29, %v14007_v6  ;;  %v13250_v29 = vld [vmem:[%s14014_s30 + $0xc0] ss:$600 sps:$4 sm:$0xff]  }
  0x63   : > { %3674 = vmatmul.mubr.bf16.vlgmr.msra.gmra.mrb[16].mxu0 %v1088_v31  ;;  %v12526_v31 = vcombine.low %v889_v20, %v889_v20 }
  0x64   : > { %3714 = vmatmul.mubr.bf16.vlgmr.msra.gmra.mrb[16].mxu1 %v1110_v35  ;;  %3722 = vmatpush1.bf16.xpose.msra.mxu0 %v13176_v36  ;;  %v1179_v35 = vcombine.high %v1177_v30, %v1177_v30  ;;  %v1186_v36 = vrot.slane %v1170_v13, %v14007_v6  ;;  %v13242_v13 = vld [vmem:[%s14014_s30 + $0xb8] ss:$600 sps:$4 sm:$0xff]  }
  0x65   : > { %3762 = vmatpush1.bf16.xpose.msra.mxu1 %v13179_v37  ;;  %3723 = vmatprep.subr.bf16.mxu0 %v12515_v38  ;;  %v891_v37 = vld [vmem:[%s14014_s30 + $0x540] sm:$0x11]  ;;  %v892_v38 = vld [vmem:[%s14014_s30 + $0x548] sm:$0x11] }
  0x66   : > { %3763 = vmatprep.subr.bf16.mxu1 %v12517_v39  ;;  %3753 = vmatprep.mubr.bf16.mxu0 %v1109_v34  ;;  %v13223_v34 = vld [vmem:[%s14014_s30 + $0x9c] ss:$600 sps:$4 sm:$0xff]   ;;  %v1207_v39 = vrot.slane %v1179_v35, %v14007_v6  ;;  %v12532_v49 = vcombine.low %v892_v38, %v892_v38 }
  0x67   : > { %3793 = vmatprep.mubr.bf16.mxu1 %v1113_v40  ;;  %v1208_v40 = vcombine.high %v1186_v36, %v1186_v36 }
  0x6c   : > { %3724 = vmatpush1.bf16.xpose.msra.mxu0 %v12514_v43  ;;  %v12531_v43 = vcombine.high %v891_v37, %v891_v37 }
  0x6d   : > { %3764 = vmatpush1.bf16.xpose.msra.mxu1 %v12516_v44  ;;  %3801 = vmatprep.subr.bf16.mxu0 %v13189_v45  ;;  %v12533_v44 = vcombine.high %v892_v38, %v892_v38  ;;  %v1211_v45 = vcombine.high %v1207_v39, %v1207_v39  ;;  %v13262_v38 = vld [vmem:[%s14014_s30 + $0xd4] ss:$600 sps:$4 sm:$0xff]  }
  0x6e   : > { %3841 = vmatprep.subr.bf16.mxu1 %v13192_v46  ;;  %v709_v46 = vld [vmem:[%s15437_s1 + $0x28] sm:$0xff] }
  0x6f   : > { %v1219_v47 = vrot.slane %v709_v46, %v14007_v6 }
  0x73   : > { %3754 = vmatmul.mubr.bf16.vlgmr.msra.gmra.mrb[20].mxu0 %v1095_v48  ;;  %v12530_v48 = vcombine.low %v891_v37, %v891_v37 }
  0x74   : > { %3794 = vmatmul.mubr.bf16.vlgmr.msra.gmra.mrb[20].mxu1 %v1111_v52  ;;  %3802 = vmatpush1.bf16.xpose.msra.mxu0 %v13187_v53  ;;  %v1227_v52 = vcombine.high %v1219_v47, %v1219_v47  ;;  %v1193_v53 = vrot.slane %v1177_v30, %v14007_v6  ;;  %v13253_v30 = vld [vmem:[%s14014_s30 + $0xc8] ss:$600 sps:$4 sm:$0xff]  }
  0x75   : > { %3842 = vmatpush1.bf16.xpose.msra.mxu1 %v13190_v54  ;;  %3803 = vmatprep.subr.bf16.mxu0 %v12519_v55  ;;  %v893_v54 = vld [vmem:[%s14014_s30 + $0x550] sm:$0x11]  ;;  %v894_v55 = vld [vmem:[%s14014_s30 + $0x558] sm:$0x11] }
  0x76   : > { %3843 = vmatprep.subr.bf16.mxu1 %v12521_v56  ;;  %3833 = vmatprep.mubr.bf16.mxu0 %v1151_v51  ;;  %v13234_v51 = vld [vmem:[%s14014_s30 + $0xac] ss:$600 sps:$4 sm:$0xff]   ;;  %v1249_v56 = vrot.slane %v1227_v52, %v14007_v6  ;;  %v12536_v2 = vcombine.low %v894_v55, %v894_v55 }
  0x77   : > { %3873 = vmatprep.mubr.bf16.mxu1 %v1161_v57  ;;  %v1209_v57 = vcombine.high %v1193_v53, %v1193_v53 }
  0x7c   : > { %3804 = vmatpush1.bf16.xpose.msra.mxu0 %v12518_v60  ;;  %v12535_v60 = vcombine.high %v893_v54, %v893_v54 }
  0x7d   : > { %3844 = vmatpush1.bf16.xpose.msra.mxu1 %v12520_v61  ;;  %3881 = vmatprep.subr.bf16.mxu0 %v13199_v62  ;;  %v12537_v61 = vcombine.high %v894_v55, %v894_v55  ;;  %v1259_v62 = vcombine.high %v1249_v56, %v1249_v56  ;;  %v13273_v55 = vld [vmem:[%s14014_s30 + $0xe4] ss:$600 sps:$4 sm:$0xff]  }
  0x7e   : > { %3921 = vmatprep.subr.bf16.mxu1 %v13202_v63  ;;  %v1212_v63 = vcombine.high %v709_v46, %v709_v46  ;;  %v13260_v46 = vld [vmem:[%s14014_s30 + $0xd0] ss:$600 sps:$4 sm:$0xff]  }
  0x80   : > { %v1226_v0 = vrot.slane %v1212_v63, %v14007_v6  ;;  %v13271_v63 = vld [vmem:[%s14014_s30 + $0xe0] ss:$600 sps:$4 sm:$0xff]  }
  0x83   : > { %3834 = vmatmul.mubr.bf16.vlgmr.msra.gmra.mrb[24].mxu0 %v1137_v1  ;;  %v12534_v1 = vcombine.low %v893_v54, %v893_v54 }
  0x84   : > { %3874 = vmatmul.mubr.bf16.vlgmr.msra.gmra.mrb[24].mxu1 %v1159_v5  ;;  %3882 = vmatpush1.bf16.xpose.msra.mxu0 %v13197_v7  ;;  %v1228_v5 = vcombine.high %v1226_v0, %v1226_v0  ;;  %v1235_v7 = vrot.slane %v1219_v47, %v14007_v6  ;;  %v13263_v47 = vld [vmem:[%s14014_s30 + $0xd8] ss:$600 sps:$4 sm:$0xff]  }
  0x85   : > { %3922 = vmatpush1.bf16.xpose.msra.mxu1 %v13200_v8  ;;  %3883 = vmatprep.subr.bf16.mxu0 %v12523_v9  ;;  %v895_v8 = vld [vmem:[%s14014_s30 + $0x560] sm:$0x11]  ;;  %v896_v9 = vld [vmem:[%s14014_s30 + $0x568] sm:$0x11] }
  0x86   : > { %3923 = vmatprep.subr.bf16.mxu1 %v12525_v10  ;;  %3913 = vmatprep.mubr.bf16.mxu0 %v1158_v4  ;;  %v13244_v4 = vld [vmem:[%s14014_s30 + $0xbc] ss:$600 sps:$4 sm:$0xff]   ;;  %v1256_v10 = vrot.slane %v1228_v5, %v14007_v6  ;;  %v12540_v20 = vcombine.low %v896_v9, %v896_v9 }
  0x87   : > { %3953 = vmatprep.mubr.bf16.mxu1 %v1162_v11  ;;  %v1257_v11 = vcombine.high %v1235_v7, %v1235_v7 }
  0x8c   : > { %3884 = vmatpush1.bf16.xpose.msra.mxu0 %v12522_v14  ;;  %v12539_v14 = vcombine.high %v895_v8, %v895_v8 }
  0x8d   : > { %3924 = vmatpush1.bf16.xpose.msra.mxu1 %v12524_v15  ;;  %3961 = vmatprep.subr.bf16.mxu0 %v13210_v16  ;;  %v12541_v15 = vcombine.high %v896_v9, %v896_v9  ;;  %v1260_v16 = vcombine.high %v1256_v10, %v1256_v10 }
  0x8e   : > { %4001 = vmatprep.subr.bf16.mxu1 %v13213_v17  ;;  %v710_v17 = vld [vmem:[%s15437_s1 + $0x30] sm:$0xff] }
  0x8f   : > { %v1268_v18 = vrot.slane %v710_v17, %v14007_v6 }
  0x93   : > { %3914 = vmatmul.mubr.bf16.vlgmr.msra.gmra.mrb[28].mxu0 %v1144_v19  ;;  %v12538_v19 = vcombine.low %v895_v8, %v895_v8 }
  0x94   : > { %3954 = vmatmul.mubr.bf16.vlgmr.msra.gmra.mrb[28].mxu1 %v1160_v23  ;;  %3962 = vmatpush1.bf16.xpose.msra.mxu0 %v13208_v24  ;;  %v1276_v23 = vcombine.high %v1268_v18, %v1268_v18  ;;  %v1242_v24 = vrot.slane %v1226_v0, %v14007_v6  ;;  %v13274_v0 = vld [vmem:[%s14014_s30 + $0xe8] ss:$600 sps:$4 sm:$0xff]  }
  0x95   : > { %4002 = vmatpush1.bf16.xpose.msra.mxu1 %v13211_v25  ;;  %3963 = vmatprep.subr.bf16.mxu0 %v12527_v26  ;;  %v897_v25 = vld [vmem:[%s14014_s30 + $0x570] sm:$0x11]  ;;  %v898_v26 = vld [vmem:[%s14014_s30 + $0x578] sm:$0x11] }
  0x96   : > { %4003 = vmatprep.subr.bf16.mxu1 %v12529_v27  ;;  %3993 = vmatprep.mubr.bf16.mxu0 %v1200_v22  ;;  %v13255_v22 = vld [vmem:[%s14014_s30 + $0xcc] ss:$600 sps:$4 sm:$0xff]   ;;  %v1298_v27 = vrot.slane %v1276_v23, %v14007_v6  ;;  %v12544_v37 = vcombine.low %v898_v26, %v898_v26 }
  0x97   : > { %4033 = vmatprep.mubr.bf16.mxu1 %v1210_v28  ;;  %v1258_v28 = vcombine.high %v1242_v24, %v1242_v24  ;;  %v904_v23 = vld [vmem:[%s14014_s30 + $0x5a8] sm:$0x11] }
  0x9c   : > { %3964 = vmatpush1.bf16.xpose.msra.mxu0 %v12526_v31  ;;  %v12543_v31 = vcombine.high %v897_v25, %v897_v25 }
  0x9d   : > { %4004 = vmatpush1.bf16.xpose.msra.mxu1 %v12528_v32  ;;  %4041 = vmatprep.subr.bf16.mxu0 %v13220_v33  ;;  %v12545_v32 = vcombine.high %v898_v26, %v898_v26  ;;  %v1308_v33 = vcombine.high %v1298_v27, %v1298_v27  ;;  %v13281_v26 = vld [vmem:[%s14014_s30 + $0xf0] ss:$600 sps:$4 sm:$0xff]  }
  0x9e   : > { %4081 = vmatprep.subr.bf16.mxu1 %v13223_v34  ;;  %v1261_v34 = vcombine.high %v710_v17, %v710_v17 }
  0xa0   : > { %v1275_v35 = vrot.slane %v1261_v34, %v14007_v6 }
  0xa3   : > { %3994 = vmatmul.mubr.bf16.vlgmr.msra.gmra.mrb[32].mxu0 %v1186_v36  ;;  %v12542_v36 = vcombine.low %v897_v25, %v897_v25 }
  0xa4   : > { %4034 = vmatmul.mubr.bf16.vlgmr.msra.gmra.mrb[32].mxu1 %v1208_v40  ;;  %4042 = vmatpush1.bf16.xpose.msra.mxu0 %v13218_v41  ;;  %v1277_v40 = vcombine.high %v1275_v35, %v1275_v35  ;;  %v1284_v41 = vrot.slane %v1268_v18, %v14007_v6  ;;  %v13283_v18 = vld [vmem:[%s14014_s30 + $0xf4] ss:$600 sps:$4 sm:$0xff]  }
  0xa5   : > { %4082 = vmatpush1.bf16.xpose.msra.mxu1 %v13221_v42  ;;  %4043 = vmatprep.subr.bf16.mxu0 %v12531_v43  ;;  %v899_v42 = vld [vmem:[%s14014_s30 + $0x580] sm:$0x11]  ;;  %v900_v43 = vld [vmem:[%s14014_s30 + $0x588] sm:$0x11] }
  0xa6   : > { %4083 = vmatprep.subr.bf16.mxu1 %v12533_v44  ;;  %4073 = vmatprep.mubr.bf16.mxu0 %v1207_v39  ;;  %v13265_v39 = vld [vmem:[%s14014_s30 + $0xdc] ss:$600 sps:$4 sm:$0xff]   ;;  %v1305_v44 = vrot.slane %v1277_v40, %v14007_v6  ;;  %v12548_v54 = vcombine.low %v900_v43, %v900_v43 }
  0xa7   : > { %4113 = vmatprep.mubr.bf16.mxu1 %v1211_v45  ;;  %v1306_v45 = vcombine.high %v1284_v41, %v1284_v41 }
  0xac   : > { %4044 = vmatpush1.bf16.xpose.msra.mxu0 %v12530_v48  ;;  %v12547_v48 = vcombine.high %v899_v42, %v899_v42 }
  0xad   : > { %4084 = vmatpush1.bf16.xpose.msra.mxu1 %v12532_v49  ;;  %4121 = vmatprep.subr.bf16.mxu0 %v13231_v50  ;;  %v12549_v49 = vcombine.high %v900_v43, %v900_v43  ;;  %v1309_v50 = vcombine.high %v1305_v44, %v1305_v44 }
  0xae   : > { %4161 = vmatprep.subr.bf16.mxu1 %v13234_v51  ;;  %v711_v51 = vld [vmem:[%s15437_s1 + $0x38] sm:$0xff] }
  0xaf   : > { %v1317_v52 = vrot.slane %v711_v51, %v14007_v6 }
  0xb3   : > { %4074 = vmatmul.mubr.bf16.vlgmr.msra.gmra.mrb[36].mxu0 %v1193_v53  ;;  %v12546_v53 = vcombine.low %v899_v42, %v899_v42 }
  0xb4   : > { %4114 = vmatmul.mubr.bf16.vlgmr.msra.gmra.mrb[36].mxu1 %v1209_v57  ;;  %4122 = vmatpush1.bf16.xpose.msra.mxu0 %v13229_v58  ;;  %v1325_v57 = vcombine.high %v1317_v52, %v1317_v52  ;;  %v1291_v58 = vrot.slane %v1275_v35, %v14007_v6 }
  0xb5   : > { %4162 = vmatpush1.bf16.xpose.msra.mxu1 %v13232_v59  ;;  %4123 = vmatprep.subr.bf16.mxu0 %v12535_v60  ;;  %v901_v59 = vld [vmem:[%s14014_s30 + $0x590] sm:$0x11]  ;;  %v902_v60 = vld [vmem:[%s14014_s30 + $0x598] sm:$0x11] }
  0xb6   : > { %4163 = vmatprep.subr.bf16.mxu1 %v12537_v61  ;;  %4153 = vmatprep.mubr.bf16.mxu0 %v1249_v56  ;;  %v13276_v56 = vld [vmem:[%s14014_s30 + $0xec] ss:$600 sps:$4 sm:$0xff]   ;;  %v1347_v61 = vrot.slane %v1325_v57, %v14007_v6 }
  0xb7   : > { %4193 = vmatprep.mubr.bf16.mxu1 %v1259_v62  ;;  %v1307_v62 = vcombine.high %v1291_v58, %v1291_v58 }
  0xbc   : > { %4124 = vmatpush1.bf16.xpose.msra.mxu0 %v12534_v1  ;;  %v12551_v1 = vcombine.high %v901_v59, %v901_v59 }
  0xbd   : > { %4164 = vmatpush1.bf16.xpose.msra.mxu1 %v12536_v2  ;;  %4201 = vmatprep.subr.bf16.mxu0 %v13241_v3  ;;  %v12553_v2 = vcombine.high %v902_v60, %v902_v60  ;;  %v1357_v3 = vcombine.high %v1347_v61, %v1347_v61 }
  0xbe   : > { %4241 = vmatprep.subr.bf16.mxu1 %v13244_v4  ;;  %v1310_v4 = vcombine.high %v711_v51, %v711_v51 }
  0xc0   : > { %v1324_v8 = vrot.slane %v1310_v4, %v14007_v6 }
  0xc3   : > { %4154 = vmatmul.mubr.bf16.vlgmr.msra.gmra.mrb[40].mxu0 %v1235_v7 }
  0xc4   : > { %4194 = vmatmul.mubr.bf16.vlgmr.msra.gmra.mrb[40].mxu1 %v1257_v11  ;;  %4202 = vmatpush1.bf16.xpose.msra.mxu0 %v13239_v12 }
  0xc5   : > { %4242 = vmatpush1.bf16.xpose.msra.mxu1 %v13242_v13  ;;  %4203 = vmatprep.subr.bf16.mxu0 %v12539_v14  ;;  %v12550_v14 = vcombine.low %v901_v59, %v901_v59 }
  0xc6   : > { %4243 = vmatprep.subr.bf16.mxu1 %v12541_v15  ;;  %4233 = vmatprep.mubr.bf16.mxu0 %v1256_v10  ;;  %v12552_v15 = vcombine.low %v902_v60, %v902_v60 }
  0xc7   : > { %4273 = vmatprep.mubr.bf16.mxu1 %v1260_v16 }
  0xcc   : > { %4204 = vmatpush1.bf16.xpose.msra.mxu0 %v12538_v19  ;;  %v13286_v19 = vld [vmem:[%s14014_s30 + $0xfc] ss:$600 sps:$4 sm:$0xff]  }
  0xcd   : > { %4244 = vmatpush1.bf16.xpose.msra.mxu1 %v12540_v20  ;;  %4281 = vmatprep.subr.bf16.mxu0 %v13252_v21  ;;  %v1326_v20 = vcombine.high %v1324_v8, %v1324_v8  ;;  %v1333_v21 = vrot.slane %v1317_v52, %v14007_v6 }
  0xce   : > { %4321 = vmatprep.subr.bf16.mxu1 %v13255_v22  ;;  %v903_v22 = vld [vmem:[%s14014_s30 + $0x5a0] sm:$0x11] }
  0xcf   : > { %v1355_v25 = vcombine.high %v1333_v21, %v1333_v21  ;;  %v12554_v40 = vcombine.low %v903_v22, %v903_v22 }
  0xd3   : > { %4234 = vmatmul.mubr.bf16.vlgmr.msra.gmra.mrb[44].mxu0 %v1242_v24  ;;  %v1354_v24 = vrot.slane %v1326_v20, %v14007_v6 }
  0xd4   : > { %4274 = vmatmul.mubr.bf16.vlgmr.msra.gmra.mrb[44].mxu1 %v1258_v28  ;;  %4282 = vmatpush1.bf16.xpose.msra.mxu0 %v13250_v29  ;;  %v12555_v28 = vcombine.high %v903_v22, %v903_v22  ;;  %v12557_v29 = vcombine.high %v904_v23, %v904_v23  ;;  %v713_v22 = vld [vmem:[%s15437_s1 + $0x48] sm:$0xff] }
  0xd5   : > { %4322 = vmatpush1.bf16.xpose.msra.mxu1 %v13253_v30  ;;  %4283 = vmatprep.subr.bf16.mxu0 %v12543_v31  ;;  %v1358_v30 = vcombine.high %v1354_v24, %v1354_v24  ;;  %v712_v31 = vld [vmem:[%s15437_s1 + $0x40] sm:$0xff] }
  0xd6   : > { %4323 = vmatprep.subr.bf16.mxu1 %v12545_v32  ;;  %4313 = vmatprep.mubr.bf16.mxu0 %v1298_v27  ;;  %v13284_v27 = vld [vmem:[%s14014_s30 + $0xf8] ss:$600 sps:$4 sm:$0xff]   ;;  %v1366_v34 = vrot.slane %v712_v31, %v14007_v6 }
  0xd7   : > { %4353 = vmatprep.mubr.bf16.mxu1 %v1308_v33 }
  0xdc   : > { %4284 = vmatpush1.bf16.xpose.msra.mxu0 %v12542_v36 }
  0xdd   : > { %4324 = vmatpush1.bf16.xpose.msra.mxu1 %v12544_v37  ;;  %4361 = vmatprep.subr.bf16.mxu0 %v13262_v38 }
  0xde   : > { %4401 = vmatprep.subr.bf16.mxu1 %v13265_v39 }
  0xe3   : > { %4314 = vmatmul.mubr.bf16.vlgmr.msra.gmra.mrb[48].mxu0 %v1284_v41  ;;  %v12556_v41 = vcombine.low %v904_v23, %v904_v23 }
  0xe4   : > { %4354 = vmatmul.mubr.bf16.vlgmr.msra.gmra.mrb[48].mxu1 %v1306_v45  ;;  %4362 = vmatpush1.bf16.xpose.msra.mxu0 %v13260_v46  ;;  %v13294_v45 = vld [vmem:[%s14014_s30 + $0x104] ss:$600 sps:$4 sm:$0xff]  }
  0xe5   : > { %4402 = vmatpush1.bf16.xpose.msra.mxu1 %v13263_v47  ;;  %4363 = vmatprep.subr.bf16.mxu0 %v12547_v48  ;;  %v13297_v46 = vld [vmem:[%s14014_s30 + $0x10c] ss:$600 sps:$4 sm:$0xff]   ;;  %v1374_v47 = vcombine.high %v1366_v34, %v1366_v34  ;;  %v1340_v48 = vrot.slane %v1324_v8, %v14007_v6 }
  0xe6   : > { %4403 = vmatprep.subr.bf16.mxu1 %v12549_v49  ;;  %4393 = vmatprep.mubr.bf16.mxu0 %v1305_v44  ;;  %v905_v49 = vld [vmem:[%s14014_s30 + $0x5b0] sm:$0x11] }
  0xe7   : > { %4433 = vmatprep.mubr.bf16.mxu1 %v1309_v50  ;;  %v906_v50 = vld [vmem:[%s14014_s30 + $0x5b8] sm:$0x11]  ;;  %v1396_v51 = vrot.slane %v1374_v47, %v14007_v6  ;;  %v1356_v52 = vcombine.high %v1340_v48, %v1340_v48 }
  0xe8   : > { %v12560_v4 = vcombine.low %v906_v50, %v906_v50 }
  0xe9   : > { %v1406_v57 = vcombine.high %v1396_v51, %v1396_v51 }
  0xec   : > { %4364 = vmatpush1.bf16.xpose.msra.mxu0 %v12546_v53  ;;  %v13292_v53 = vld [vmem:[%s14014_s30 + $0x100] ss:$600 sps:$4 sm:$0xff]  }
  0xed   : > { %4404 = vmatpush1.bf16.xpose.msra.mxu1 %v12548_v54  ;;  %4441 = vmatprep.subr.bf16.mxu0 %v13273_v55  ;;  %v13295_v54 = vld [vmem:[%s14014_s30 + $0x108] ss:$600 sps:$4 sm:$0xff]   ;;  %v12559_v55 = vcombine.high %v905_v49, %v905_v49 }
  0xee   : > { %4481 = vmatprep.subr.bf16.mxu1 %v13276_v56  ;;  %v12561_v56 = vcombine.high %v906_v50, %v906_v50 }
  0xf3   : > { %4394 = vmatmul.mubr.bf16.vlgmr.msra.gmra.mrb[52].mxu0 %v1291_v58  ;;  %v1359_v58 = vcombine.high %v712_v31, %v712_v31 }
  0xf4   : > { %4434 = vmatmul.mubr.bf16.vlgmr.msra.gmra.mrb[52].mxu1 %v1307_v62  ;;  %4442 = vmatpush1.bf16.xpose.msra.mxu0 %v13271_v63 }
  0xf5   : > { %4482 = vmatpush1.bf16.xpose.msra.mxu1 %v13274_v0  ;;  %4443 = vmatprep.subr.bf16.mxu0 %v12551_v1 }
  0xf6   : > { %4483 = vmatprep.subr.bf16.mxu1 %v12553_v2  ;;  %v3355_v5 = vpop.f32.mrb[0].mxu0  ;;  %4473 = vmatprep.mubr.bf16.mxu0 %v1347_v61  ;;  %v1373_v61 = vrot.slane %v1359_v58, %v14007_v6 }
  0xf7   : > { %v3395_v7 = vpop.f32.mrb[0].mxu1  ;;  %4513 = vmatprep.mubr.bf16.mxu1 %v1357_v3  ;;  %v3357_v10 = vpop.f32.mrb[1].mxu0  ;;  %v12558_v3 = vcombine.low %v905_v49, %v905_v49  ;;  %v1408_v49 = vcombine.high %v713_v22, %v713_v22 }
  0xf8   : > { %v3396_v9 = vadd.f32 %v3395_v7, %v3355_v5  ;;  %v3397_v11 = vpop.f32.mrb[1].mxu1  ;;  %v3358_v12 = vpop.f32.mrb[2].mxu0  ;;  %v13307_v10 = vld [vmem:[%s14014_s30 + $0x11c] ss:$600 sps:$4 sm:$0xff]  }
  0xf9   : > { %v3398_v13 = vpop.f32.mrb[2].mxu1  ;;  %v3359_v16 = vpop.f32.mrb[3].mxu0  ;;  %v1375_v11 = vcombine.high %v1373_v61, %v1373_v61  ;;  %v1382_v12 = vrot.slane %v1366_v34, %v14007_v6 }
  0xfa   : > { %v3399_v17 = vpop.f32.mrb[3].mxu1  ;;  %v907_v13 = vld [vmem:[%s14014_s30 + $0x5c0] sm:$0x11] }
  0xfb   : > { %v1404_v16 = vcombine.high %v1382_v12, %v1382_v12  ;;  %v13302_v17 = vld [vmem:[%s14014_s30 + $0x110] ss:$600 sps:$4 sm:$0xff]   ;;  %v12562_v31 = vcombine.low %v907_v13, %v907_v13 }
  0xfc   : > { %4444 = vmatpush1.bf16.xpose.msra.mxu0 %v12550_v14  ;;  %v908_v14 = vld [vmem:[%s14014_s30 + $0x5c8] sm:$0x11] }
  0xfd   : > { %4484 = vmatpush1.bf16.xpose.msra.mxu1 %v12552_v15  ;;  %4521 = vmatprep.subr.bf16.mxu0 %v13283_v18  ;;  %v1403_v15 = vrot.slane %v1375_v11, %v14007_v6  ;;  %v13305_v18 = vld [vmem:[%s14014_s30 + $0x118] ss:$600 sps:$4 sm:$0xff]   ;;  %v12565_v20 = vcombine.high %v908_v14, %v908_v14 }
  0xfe   : > { %4561 = vmatprep.subr.bf16.mxu1 %v13286_v19  ;;  %v12563_v19 = vcombine.high %v907_v13, %v907_v13  ;;  %v714_v13 = vld [vmem:[%s15437_s1 + $0x50] sm:$0xff] }
 0x103   : > { %4474 = vmatmul.mubr.bf16.vlgmr.msra.gmra.mrb[56].mxu0 %v1333_v21  ;;  %v1407_v21 = vcombine.high %v1403_v15, %v1403_v15 }
 0x104   : > { %4514 = vmatmul.mubr.bf16.vlgmr.msra.gmra.mrb[56].mxu1 %v1355_v25  ;;  %4522 = vmatpush1.bf16.xpose.msra.mxu0 %v13281_v26  ;;  %v1415_v25 = vrot.slane %v713_v22, %v14007_v6 }
 0x105   : > { %4562 = vmatpush1.bf16.xpose.msra.mxu1 %v13284_v27  ;;  %4523 = vmatprep.subr.bf16.mxu0 %v12555_v28 }
 0x106   : > { %4563 = vmatprep.subr.bf16.mxu1 %v12557_v29  ;;  %v3435_v32 = vpop.f32.mrb[4].mxu0  ;;  %4553 = vmatprep.mubr.bf16.mxu0 %v1354_v24 }
 0x107   : > { %v3475_v33 = vpop.f32.mrb[4].mxu1  ;;  %4593 = vmatprep.mubr.bf16.mxu1 %v1358_v30  ;;  %v3436_v35 = vadd.f32 %v3435_v32, %v3396_v9  ;;  %v3437_v36 = vpop.f32.mrb[5].mxu0  ;;  %v13304_v9 = vld [vmem:[%s14014_s30 + $0x114] ss:$600 sps:$4 sm:$0xff]   ;;  %v12564_v32 = vcombine.low %v908_v14, %v908_v14 }
 0x108   : > { %v3477_v37 = vpop.f32.mrb[5].mxu1  ;;  %v3438_v38 = vpop.f32.mrb[6].mxu0  ;;  %v13315_v36 = vld [vmem:[%s14014_s30 + $0x124] ss:$600 sps:$4 sm:$0xff]  }
 0x109   : > { %v3478_v39 = vpop.f32.mrb[6].mxu1  ;;  %v3476_v42 = vadd.f32 %v3475_v33, %v3436_v35  ;;  %v3439_v43 = vpop.f32.mrb[7].mxu0  ;;  %v13318_v37 = vld [vmem:[%s14014_s30 + $0x12c] ss:$600 sps:$4 sm:$0xff]   ;;  %v1423_v38 = vcombine.high %v1415_v25, %v1415_v25 }
 0x10a   : > { %v3479_v44 = vpop.f32.mrb[7].mxu1  ;;  %v1389_v39 = vrot.slane %v1373_v61, %v14007_v6 }
 0x10b   : > { %v13313_v44 = vld [vmem:[%s14014_s30 + $0x120] ss:$600 sps:$4 sm:$0xff]  }
 0x10c   : > { %4524 = vmatpush1.bf16.xpose.msra.mxu0 %v12554_v40  ;;  %v909_v40 = vld [vmem:[%s14014_s30 + $0x5d0] sm:$0x11]  ;;  %v1405_v43 = vcombine.high %v1389_v39, %v1389_v39 }
 0x10d   : > { %4564 = vmatpush1.bf16.xpose.msra.mxu1 %v12556_v41  ;;  %4601 = vmatprep.subr.bf16.mxu0 %v13294_v45  ;;  %v910_v41 = vld [vmem:[%s14014_s30 + $0x5d8] sm:$0x11]  ;;  %v13316_v45 = vld [vmem:[%s14014_s30 + $0x128] ss:$600 sps:$4 sm:$0xff]   ;;  %v12566_v58 = vcombine.low %v909_v40, %v909_v40 }
 0x10e   : > { %4641 = vmatprep.subr.bf16.mxu1 %v13297_v46  ;;  %v12567_v46 = vcombine.high %v909_v40, %v909_v40  ;;  %v12569_v47 = vcombine.high %v910_v41, %v910_v41  ;;  %v1457_v40 = vcombine.high %v714_v13, %v714_v13 }
 0x113   : > { %4554 = vmatmul.mubr.bf16.vlgmr.msra.gmra.mrb[60].mxu0 %v1340_v48 }
 0x114   : > { %4594 = vmatmul.mubr.bf16.vlgmr.msra.gmra.mrb[60].mxu1 %v1356_v52  ;;  %4602 = vmatpush1.bf16.xpose.msra.mxu0 %v13292_v53  ;;  %v1422_v52 = vrot.slane %v1408_v49, %v14007_v6 }
 0x115   : > { %4642 = vmatpush1.bf16.xpose.msra.mxu1 %v13295_v54  ;;  %4603 = vmatprep.subr.bf16.mxu0 %v12559_v55 }
 0x116   : > { %4643 = vmatprep.subr.bf16.mxu1 %v12561_v56  ;;  %v3515_v59 = vpop.f32.mrb[8].mxu0  ;;  %4633 = vmatprep.mubr.bf16.mxu0 %v1396_v51 }
 0x117   : > { %v3555_v60 = vpop.f32.mrb[8].mxu1  ;;  %4673 = vmatprep.mubr.bf16.mxu1 %v1406_v57  ;;  %v3516_v62 = vadd.f32 %v3515_v59, %v3476_v42  ;;  %v3517_v63 = vpop.f32.mrb[9].mxu0  ;;  %v1445_v42 = vrot.slane %v1423_v38, %v14007_v6  ;;  %v12568_v59 = vcombine.low %v910_v41, %v910_v41 }
 0x118   : > { %v3557_v0 = vpop.f32.mrb[9].mxu1  ;;  %v3518_v1 = vpop.f32.mrb[10].mxu0  ;;  %v13325_v63 = vld [vmem:[%s14014_s30 + $0x134] ss:$600 sps:$4 sm:$0xff]  }
 0x119   : > { %v3558_v2 = vpop.f32.mrb[10].mxu1  ;;  %v3556_v5 = vadd.f32 %v3555_v60, %v3516_v62  ;;  %v3519_v7 = vpop.f32.mrb[11].mxu0  ;;  %v1455_v48 = vcombine.high %v1445_v42, %v1445_v42  ;;  %v13328_v0 = vld [vmem:[%s14014_s30 + $0x13c] ss:$600 sps:$4 sm:$0xff]   ;;  %v1424_v1 = vcombine.high %v1422_v52, %v1422_v52 }
 0x11a   : > { %v3559_v8 = vpop.f32.mrb[11].mxu1  ;;  %v1431_v2 = vrot.slane %v1415_v25, %v14007_v6 }
 0x11b   : > { %v13323_v8 = vld [vmem:[%s14014_s30 + $0x130] ss:$600 sps:$4 sm:$0xff]  }
 0x11c   : > { %4604 = vmatpush1.bf16.xpose.msra.mxu0 %v12558_v3  ;;  %v911_v3 = vld [vmem:[%s14014_s30 + $0x5e0] sm:$0x11]  ;;  %v1453_v7 = vcombine.high %v1431_v2, %v1431_v2 }
 0x11d   : > { %4644 = vmatpush1.bf16.xpose.msra.mxu1 %v12560_v4  ;;  %4681 = vmatprep.subr.bf16.mxu0 %v13304_v9  ;;  %v912_v4 = vld [vmem:[%s14014_s30 + $0x5e8] sm:$0x11]  ;;  %v13326_v9 = vld [vmem:[%s14014_s30 + $0x138] ss:$600 sps:$4 sm:$0xff]   ;;  %v12570_v22 = vcombine.low %v911_v3, %v911_v3 }
 0x11e   : > { %4721 = vmatprep.subr.bf16.mxu1 %v13307_v10  ;;  %v12571_v10 = vcombine.high %v911_v3, %v911_v3  ;;  %v12573_v11 = vcombine.high %v912_v4, %v912_v4  ;;  %v715_v3 = vld [vmem:[%s15437_s1 + $0x58] sm:$0xff] }
 0x123   : > { %4634 = vmatmul.mubr.bf16.vlgmr.msra.gmra.mrb[64].mxu0 %v1382_v12 }
 0x124   : > { %4674 = vmatmul.mubr.bf16.vlgmr.msra.gmra.mrb[64].mxu1 %v1404_v16  ;;  %4682 = vmatpush1.bf16.xpose.msra.mxu0 %v13302_v17  ;;  %v1464_v16 = vrot.slane %v714_v13, %v14007_v6 }
 0x125   : > { %4722 = vmatpush1.bf16.xpose.msra.mxu1 %v13305_v18  ;;  %4683 = vmatprep.subr.bf16.mxu0 %v12563_v19 }
 0x126   : > { %4723 = vmatprep.subr.bf16.mxu1 %v12565_v20  ;;  %v3595_v23 = vpop.f32.mrb[12].mxu0  ;;  %4713 = vmatprep.mubr.bf16.mxu0 %v1403_v15 }
 0x127   : > { %v3635_v24 = vpop.f32.mrb[12].mxu1  ;;  %4753 = vmatprep.mubr.bf16.mxu1 %v1407_v21  ;;  %v3596_v26 = vadd.f32 %v3595_v23, %v3556_v5  ;;  %v3597_v27 = vpop.f32.mrb[13].mxu0  ;;  %v1452_v5 = vrot.slane %v1424_v1, %v14007_v6  ;;  %v12572_v23 = vcombine.low %v912_v4, %v912_v4 }
 0x128   : > { %v3637_v28 = vpop.f32.mrb[13].mxu1  ;;  %v3598_v29 = vpop.f32.mrb[14].mxu0  ;;  %v13336_v27 = vld [vmem:[%s14014_s30 + $0x144] ss:$600 sps:$4 sm:$0xff]  }
 0x129   : > { %v3638_v30 = vpop.f32.mrb[14].mxu1  ;;  %v3636_v33 = vadd.f32 %v3635_v24, %v3596_v26  ;;  %v3599_v34 = vpop.f32.mrb[15].mxu0  ;;  %v1456_v12 = vcombine.high %v1452_v5, %v1452_v5  ;;  %v13339_v28 = vld [vmem:[%s14014_s30 + $0x14c] ss:$600 sps:$4 sm:$0xff]   ;;  %v1472_v29 = vcombine.high %v1464_v16, %v1464_v16 }
 0x12a   : > { %v3639_v35 = vpop.f32.mrb[15].mxu1  ;;  %v1438_v30 = vrot.slane %v1422_v52, %v14007_v6 }
 0x12b   : > { %v13334_v35 = vld [vmem:[%s14014_s30 + $0x140] ss:$600 sps:$4 sm:$0xff]  }
 0x12c   : > { %4684 = vmatpush1.bf16.xpose.msra.mxu0 %v12562_v31  ;;  %v913_v31 = vld [vmem:[%s14014_s30 + $0x5f0] sm:$0x11]  ;;  %v1454_v34 = vcombine.high %v1438_v30, %v1438_v30 }
 0x12d   : > { %4724 = vmatpush1.bf16.xpose.msra.mxu1 %v12564_v32  ;;  %4761 = vmatprep.subr.bf16.mxu0 %v13315_v36  ;;  %v914_v32 = vld [vmem:[%s14014_s30 + $0x5f8] sm:$0x11]  ;;  %v13337_v36 = vld [vmem:[%s14014_s30 + $0x148] ss:$600 sps:$4 sm:$0xff]   ;;  %v12574_v49 = vcombine.low %v913_v31, %v913_v31 }
 0x12e   : > { %4801 = vmatprep.subr.bf16.mxu1 %v13318_v37  ;;  %v12575_v37 = vcombine.high %v913_v31, %v913_v31  ;;  %v12577_v38 = vcombine.high %v914_v32, %v914_v32  ;;  %v1506_v31 = vcombine.high %v715_v3, %v715_v3 }
 0x133   : > { %4714 = vmatmul.mubr.bf16.vlgmr.msra.gmra.mrb[68].mxu0 %v1389_v39 }
 0x134   : > { %4754 = vmatmul.mubr.bf16.vlgmr.msra.gmra.mrb[68].mxu1 %v1405_v43  ;;  %4762 = vmatpush1.bf16.xpose.msra.mxu0 %v13313_v44  ;;  %v1471_v43 = vrot.slane %v1457_v40, %v14007_v6 }
 0x135   : > { %4802 = vmatpush1.bf16.xpose.msra.mxu1 %v13316_v45  ;;  %4763 = vmatprep.subr.bf16.mxu0 %v12567_v46 }
 0x136   : > { %4803 = vmatprep.subr.bf16.mxu1 %v12569_v47  ;;  %v3675_v50 = vpop.f32.mrb[16].mxu0  ;;  %4793 = vmatprep.mubr.bf16.mxu0 %v1445_v42 }
 0x137   : > { %v3715_v51 = vpop.f32.mrb[16].mxu1  ;;  %4833 = vmatprep.mubr.bf16.mxu1 %v1455_v48  ;;  %v3676_v53 = vadd.f32 %v3675_v50, %v3636_v33  ;;  %v3677_v54 = vpop.f32.mrb[17].mxu0  ;;  %v1494_v33 = vrot.slane %v1472_v29, %v14007_v6  ;;  %v12576_v50 = vcombine.low %v914_v32, %v914_v32 }
 0x138   : > { %v3717_v55 = vpop.f32.mrb[17].mxu1  ;;  %v3678_v56 = vpop.f32.mrb[18].mxu0  ;;  %v13346_v54 = vld [vmem:[%s14014_s30 + $0x154] ss:$600 sps:$4 sm:$0xff]  }
 0x139   : > { %v3718_v57 = vpop.f32.mrb[18].mxu1  ;;  %v3716_v60 = vadd.f32 %v3715_v51, %v3676_v53  ;;  %v3679_v61 = vpop.f32.mrb[19].mxu0  ;;  %v1504_v39 = vcombine.high %v1494_v33, %v1494_v33  ;;  %v13349_v55 = vld [vmem:[%s14014_s30 + $0x15c] ss:$600 sps:$4 sm:$0xff]   ;;  %v1473_v56 = vcombine.high %v1471_v43, %v1471_v43 }
 0x13a   : > { %v3719_v62 = vpop.f32.mrb[19].mxu1  ;;  %v1480_v57 = vrot.slane %v1464_v16, %v14007_v6 }
 0x13b   : > { %v13344_v62 = vld [vmem:[%s14014_s30 + $0x150] ss:$600 sps:$4 sm:$0xff]  }
 0x13c   : > { %4764 = vmatpush1.bf16.xpose.msra.mxu0 %v12566_v58  ;;  %v915_v58 = vld [vmem:[%s14014_s30 + $0x600] sm:$0x11]  ;;  %v1502_v61 = vcombine.high %v1480_v57, %v1480_v57 }
 0x13d   : > { %4804 = vmatpush1.bf16.xpose.msra.mxu1 %v12568_v59  ;;  %4841 = vmatprep.subr.bf16.mxu0 %v13325_v63  ;;  %v916_v59 = vld [vmem:[%s14014_s30 + $0x608] sm:$0x11]  ;;  %v13347_v63 = vld [vmem:[%s14014_s30 + $0x158] ss:$600 sps:$4 sm:$0xff]   ;;  %v12578_v13 = vcombine.low %v915_v58, %v915_v58 }
 0x13e   : > { %4881 = vmatprep.subr.bf16.mxu1 %v13328_v0  ;;  %v12579_v0 = vcombine.high %v915_v58, %v915_v58  ;;  %v12581_v1 = vcombine.high %v916_v59, %v916_v59  ;;  %v716_v58 = vld [vmem:[%s15437_s1 + $0x60] sm:$0xff] }
 0x143   : > { %4794 = vmatmul.mubr.bf16.vlgmr.msra.gmra.mrb[72].mxu0 %v1431_v2 }
 0x144   : > { %4834 = vmatmul.mubr.bf16.vlgmr.msra.gmra.mrb[72].mxu1 %v1453_v7  ;;  %4842 = vmatpush1.bf16.xpose.msra.mxu0 %v13323_v8  ;;  %v1513_v7 = vrot.slane %v715_v3, %v14007_v6 }
 0x145   : > { %4882 = vmatpush1.bf16.xpose.msra.mxu1 %v13326_v9  ;;  %4843 = vmatprep.subr.bf16.mxu0 %v12571_v10 }
 0x146   : > { %4883 = vmatprep.subr.bf16.mxu1 %v12573_v11  ;;  %v3755_v14 = vpop.f32.mrb[20].mxu0  ;;  %4873 = vmatprep.mubr.bf16.mxu0 %v1452_v5 }
 0x147   : > { %v3795_v15 = vpop.f32.mrb[20].mxu1  ;;  %4913 = vmatprep.mubr.bf16.mxu1 %v1456_v12  ;;  %v3756_v17 = vadd.f32 %v3755_v14, %v3716_v60  ;;  %v3757_v18 = vpop.f32.mrb[21].mxu0  ;;  %v1501_v60 = vrot.slane %v1473_v56, %v14007_v6  ;;  %v12580_v14 = vcombine.low %v916_v59, %v916_v59 }
 0x148   : > { %v3797_v19 = vpop.f32.mrb[21].mxu1  ;;  %v3758_v20 = vpop.f32.mrb[22].mxu0  ;;  %v13357_v18 = vld [vmem:[%s14014_s30 + $0x164] ss:$600 sps:$4 sm:$0xff]  }
 0x149   : > { %v3798_v21 = vpop.f32.mrb[22].mxu1  ;;  %v3796_v24 = vadd.f32 %v3795_v15, %v3756_v17  ;;  %v3759_v25 = vpop.f32.mrb[23].mxu0  ;;  %v1505_v2 = vcombine.high %v1501_v60, %v1501_v60  ;;  %v13360_v19 = vld [vmem:[%s14014_s30 + $0x16c] ss:$600 sps:$4 sm:$0xff]   ;;  %v1521_v20 = vcombine.high %v1513_v7, %v1513_v7 }
 0x14a   : > { %v3799_v26 = vpop.f32.mrb[23].mxu1  ;;  %v1487_v21 = vrot.slane %v1471_v43, %v14007_v6 }
 0x14b   : > { %v13355_v26 = vld [vmem:[%s14014_s30 + $0x160] ss:$600 sps:$4 sm:$0xff]  }
 0x14c   : > { %4844 = vmatpush1.bf16.xpose.msra.mxu0 %v12570_v22  ;;  %v917_v22 = vld [vmem:[%s14014_s30 + $0x610] sm:$0x11]  ;;  %v1503_v25 = vcombine.high %v1487_v21, %v1487_v21 }
 0x14d   : > { %4884 = vmatpush1.bf16.xpose.msra.mxu1 %v12572_v23  ;;  %4921 = vmatprep.subr.bf16.mxu0 %v13336_v27  ;;  %v918_v23 = vld [vmem:[%s14014_s30 + $0x618] sm:$0x11]  ;;  %v13358_v27 = vld [vmem:[%s14014_s30 + $0x168] ss:$600 sps:$4 sm:$0xff]   ;;  %v12582_v40 = vcombine.low %v917_v22, %v917_v22 }
 0x14e   : > { %4961 = vmatprep.subr.bf16.mxu1 %v13339_v28  ;;  %v12583_v28 = vcombine.high %v917_v22, %v917_v22  ;;  %v12585_v29 = vcombine.high %v918_v23, %v918_v23  ;;  %v1555_v22 = vcombine.high %v716_v58, %v716_v58 }
 0x153   : > { %4874 = vmatmul.mubr.bf16.vlgmr.msra.gmra.mrb[76].mxu0 %v1438_v30 }
 0x154   : > { %4914 = vmatmul.mubr.bf16.vlgmr.msra.gmra.mrb[76].mxu1 %v1454_v34  ;;  %4922 = vmatpush1.bf16.xpose.msra.mxu0 %v13334_v35  ;;  %v1520_v34 = vrot.slane %v1506_v31, %v14007_v6 }
 0x155   : > { %4962 = vmatpush1.bf16.xpose.msra.mxu1 %v13337_v36  ;;  %4923 = vmatprep.subr.bf16.mxu0 %v12575_v37 }
 0x156   : > { %4963 = vmatprep.subr.bf16.mxu1 %v12577_v38  ;;  %v3835_v41 = vpop.f32.mrb[24].mxu0  ;;  %4953 = vmatprep.mubr.bf16.mxu0 %v1494_v33 }
 0x157   : > { %v3875_v42 = vpop.f32.mrb[24].mxu1  ;;  %4993 = vmatprep.mubr.bf16.mxu1 %v1504_v39  ;;  %v3836_v44 = vadd.f32 %v3835_v41, %v3796_v24  ;;  %v3837_v45 = vpop.f32.mrb[25].mxu0  ;;  %v1543_v24 = vrot.slane %v1521_v20, %v14007_v6  ;;  %v12584_v41 = vcombine.low %v918_v23, %v918_v23 }
 0x158   : > { %v3877_v46 = vpop.f32.mrb[25].mxu1  ;;  %v3838_v47 = vpop.f32.mrb[26].mxu0  ;;  %v13367_v45 = vld [vmem:[%s14014_s30 + $0x174] ss:$600 sps:$4 sm:$0xff]  }
 0x159   : > { %v3878_v48 = vpop.f32.mrb[26].mxu1  ;;  %v3876_v51 = vadd.f32 %v3875_v42, %v3836_v44  ;;  %v3839_v52 = vpop.f32.mrb[27].mxu0  ;;  %v1553_v30 = vcombine.high %v1543_v24, %v1543_v24  ;;  %v13370_v46 = vld [vmem:[%s14014_s30 + $0x17c] ss:$600 sps:$4 sm:$0xff]   ;;  %v1522_v47 = vcombine.high %v1520_v34, %v1520_v34 }
 0x15a   : > { %v3879_v53 = vpop.f32.mrb[27].mxu1  ;;  %v1529_v48 = vrot.slane %v1513_v7, %v14007_v6 }
 0x15b   : > { %v13365_v53 = vld [vmem:[%s14014_s30 + $0x170] ss:$600 sps:$4 sm:$0xff]  }
 0x15c   : > { %4924 = vmatpush1.bf16.xpose.msra.mxu0 %v12574_v49  ;;  %v919_v49 = vld [vmem:[%s14014_s30 + $0x620] sm:$0x11]  ;;  %v1551_v52 = vcombine.high %v1529_v48, %v1529_v48 }
 0x15d   : > { %4964 = vmatpush1.bf16.xpose.msra.mxu1 %v12576_v50  ;;  %5001 = vmatprep.subr.bf16.mxu0 %v13346_v54  ;;  %v920_v50 = vld [vmem:[%s14014_s30 + $0x628] sm:$0x11]  ;;  %v13368_v54 = vld [vmem:[%s14014_s30 + $0x178] ss:$600 sps:$4 sm:$0xff]   ;;  %v12586_v3 = vcombine.low %v919_v49, %v919_v49 }
 0x15e   : > { %5041 = vmatprep.subr.bf16.mxu1 %v13349_v55  ;;  %v12587_v55 = vcombine.high %v919_v49, %v919_v49  ;;  %v12589_v56 = vcombine.high %v920_v50, %v920_v50  ;;  %v717_v49 = vld [vmem:[%s15437_s1 + $0x68] sm:$0xff] }
 0x163   : > { %4954 = vmatmul.mubr.bf16.vlgmr.msra.gmra.mrb[80].mxu0 %v1480_v57 }
 0x164   : > { %4994 = vmatmul.mubr.bf16.vlgmr.msra.gmra.mrb[80].mxu1 %v1502_v61  ;;  %5002 = vmatpush1.bf16.xpose.msra.mxu0 %v13344_v62  ;;  %v1562_v61 = vrot.slane %v716_v58, %v14007_v6 }
 0x165   : > { %5042 = vmatpush1.bf16.xpose.msra.mxu1 %v13347_v63  ;;  %5003 = vmatprep.subr.bf16.mxu0 %v12579_v0 }
 0x166   : > { %5043 = vmatprep.subr.bf16.mxu1 %v12581_v1  ;;  %v3915_v4 = vpop.f32.mrb[28].mxu0  ;;  %5033 = vmatprep.mubr.bf16.mxu0 %v1501_v60 }
 0x167   : > { %v3955_v5 = vpop.f32.mrb[28].mxu1  ;;  %5073 = vmatprep.mubr.bf16.mxu1 %v1505_v2  ;;  %v3916_v8 = vadd.f32 %v3915_v4, %v3876_v51  ;;  %v3917_v9 = vpop.f32.mrb[29].mxu0  ;;  %v1550_v51 = vrot.slane %v1522_v47, %v14007_v6  ;;  %v12588_v4 = vcombine.low %v920_v50, %v920_v50 }
 0x168   : > { %v3957_v10 = vpop.f32.mrb[29].mxu1  ;;  %v3918_v11 = vpop.f32.mrb[30].mxu0  ;;  %v13378_v9 = vld [vmem:[%s14014_s30 + $0x184] ss:$600 sps:$4 sm:$0xff]  }
 0x169   : > { %v3958_v12 = vpop.f32.mrb[30].mxu1  ;;  %v3956_v15 = vadd.f32 %v3955_v5, %v3916_v8  ;;  %v3919_v16 = vpop.f32.mrb[31].mxu0  ;;  %v1554_v57 = vcombine.high %v1550_v51, %v1550_v51  ;;  %v13381_v10 = vld [vmem:[%s14014_s30 + $0x18c] ss:$600 sps:$4 sm:$0xff]   ;;  %v1570_v11 = vcombine.high %v1562_v61, %v1562_v61 }
 0x16a   : > { %v3959_v17 = vpop.f32.mrb[31].mxu1  ;;  %v1536_v12 = vrot.slane %v1520_v34, %v14007_v6 }
 0x16b   : > { %v13376_v17 = vld [vmem:[%s14014_s30 + $0x180] ss:$600 sps:$4 sm:$0xff]  }
 0x16c   : > { %5004 = vmatpush1.bf16.xpose.msra.mxu0 %v12578_v13  ;;  %v921_v13 = vld [vmem:[%s14014_s30 + $0x630] sm:$0x11]  ;;  %v1552_v16 = vcombine.high %v1536_v12, %v1536_v12 }
 0x16d   : > { %5044 = vmatpush1.bf16.xpose.msra.mxu1 %v12580_v14  ;;  %5081 = vmatprep.subr.bf16.mxu0 %v13357_v18  ;;  %v922_v14 = vld [vmem:[%s14014_s30 + $0x638] sm:$0x11]  ;;  %v13379_v18 = vld [vmem:[%s14014_s30 + $0x188] ss:$600 sps:$4 sm:$0xff]   ;;  %v12590_v31 = vcombine.low %v921_v13, %v921_v13 }
 0x16e   : > { %5121 = vmatprep.subr.bf16.mxu1 %v13360_v19  ;;  %v12591_v19 = vcombine.high %v921_v13, %v921_v13  ;;  %v12593_v20 = vcombine.high %v922_v14, %v922_v14  ;;  %v1604_v13 = vcombine.high %v717_v49, %v717_v49 }
 0x173   : > { %5034 = vmatmul.mubr.bf16.vlgmr.msra.gmra.mrb[84].mxu0 %v1487_v21 }
 0x174   : > { %5074 = vmatmul.mubr.bf16.vlgmr.msra.gmra.mrb[84].mxu1 %v1503_v25  ;;  %5082 = vmatpush1.bf16.xpose.msra.mxu0 %v13355_v26  ;;  %v1569_v25 = vrot.slane %v1555_v22, %v14007_v6 }
 0x175   : > { %5122 = vmatpush1.bf16.xpose.msra.mxu1 %v13358_v27  ;;  %5083 = vmatprep.subr.bf16.mxu0 %v12583_v28 }
 0x176   : > { %5123 = vmatprep.subr.bf16.mxu1 %v12585_v29  ;;  %v3995_v32 = vpop.f32.mrb[32].mxu0  ;;  %5113 = vmatprep.mubr.bf16.mxu0 %v1543_v24 }
 0x177   : > { %v4035_v33 = vpop.f32.mrb[32].mxu1  ;;  %5153 = vmatprep.mubr.bf16.mxu1 %v1553_v30  ;;  %v3996_v35 = vadd.f32 %v3995_v32, %v3956_v15  ;;  %v3997_v36 = vpop.f32.mrb[33].mxu0  ;;  %v1592_v15 = vrot.slane %v1570_v11, %v14007_v6  ;;  %v12592_v32 = vcombine.low %v922_v14, %v922_v14 }
 0x178   : > { %v4037_v37 = vpop.f32.mrb[33].mxu1  ;;  %v3998_v38 = vpop.f32.mrb[34].mxu0  ;;  %v13388_v36 = vld [vmem:[%s14014_s30 + $0x194] ss:$600 sps:$4 sm:$0xff]  }
 0x179   : > { %v4038_v39 = vpop.f32.mrb[34].mxu1  ;;  %v4036_v42 = vadd.f32 %v4035_v33, %v3996_v35  ;;  %v3999_v43 = vpop.f32.mrb[35].mxu0  ;;  %v1602_v21 = vcombine.high %v1592_v15, %v1592_v15  ;;  %v13391_v37 = vld [vmem:[%s14014_s30 + $0x19c] ss:$600 sps:$4 sm:$0xff]   ;;  %v1571_v38 = vcombine.high %v1569_v25, %v1569_v25 }
 0x17a   : > { %v4039_v44 = vpop.f32.mrb[35].mxu1  ;;  %v1578_v39 = vrot.slane %v1562_v61, %v14007_v6 }
 0x17b   : > { %v13386_v44 = vld [vmem:[%s14014_s30 + $0x190] ss:$600 sps:$4 sm:$0xff]  }
 0x17c   : > { %5084 = vmatpush1.bf16.xpose.msra.mxu0 %v12582_v40  ;;  %v923_v40 = vld [vmem:[%s14014_s30 + $0x640] sm:$0x11]  ;;  %v1600_v43 = vcombine.high %v1578_v39, %v1578_v39 }
 0x17d   : > { %5124 = vmatpush1.bf16.xpose.msra.mxu1 %v12584_v41  ;;  %5161 = vmatprep.subr.bf16.mxu0 %v13367_v45  ;;  %v924_v41 = vld [vmem:[%s14014_s30 + $0x648] sm:$0x11]  ;;  %v13389_v45 = vld [vmem:[%s14014_s30 + $0x198] ss:$600 sps:$4 sm:$0xff]   ;;  %v12594_v58 = vcombine.low %v923_v40, %v923_v40 }
 0x17e   : > { %5201 = vmatprep.subr.bf16.mxu1 %v13370_v46  ;;  %v12595_v46 = vcombine.high %v923_v40, %v923_v40  ;;  %v12597_v47 = vcombine.high %v924_v41, %v924_v41  ;;  %v718_v40 = vld [vmem:[%s15437_s1 + $0x70] sm:$0xff] }
 0x183   : > { %5114 = vmatmul.mubr.bf16.vlgmr.msra.gmra.mrb[88].mxu0 %v1529_v48 }
 0x184   : > { %5154 = vmatmul.mubr.bf16.vlgmr.msra.gmra.mrb[88].mxu1 %v1551_v52  ;;  %5162 = vmatpush1.bf16.xpose.msra.mxu0 %v13365_v53  ;;  %v1611_v52 = vrot.slane %v717_v49, %v14007_v6 }
 0x185   : > { %5202 = vmatpush1.bf16.xpose.msra.mxu1 %v13368_v54  ;;  %5163 = vmatprep.subr.bf16.mxu0 %v12587_v55 }
 0x186   : > { %5203 = vmatprep.subr.bf16.mxu1 %v12589_v56  ;;  %v4075_v59 = vpop.f32.mrb[36].mxu0  ;;  %5193 = vmatprep.mubr.bf16.mxu0 %v1550_v51 }
 0x187   : > { %v4115_v60 = vpop.f32.mrb[36].mxu1  ;;  %5233 = vmatprep.mubr.bf16.mxu1 %v1554_v57  ;;  %v4076_v62 = vadd.f32 %v4075_v59, %v4036_v42  ;;  %v4077_v63 = vpop.f32.mrb[37].mxu0  ;;  %v1599_v42 = vrot.slane %v1571_v38, %v14007_v6  ;;  %v12596_v59 = vcombine.low %v924_v41, %v924_v41 }
 0x188   : > { %v4117_v0 = vpop.f32.mrb[37].mxu1  ;;  %v4078_v1 = vpop.f32.mrb[38].mxu0  ;;  %v13399_v63 = vld [vmem:[%s14014_s30 + $0x1a4] ss:$600 sps:$4 sm:$0xff]  }
 0x189   : > { %v4118_v2 = vpop.f32.mrb[38].mxu1  ;;  %v4116_v5 = vadd.f32 %v4115_v60, %v4076_v62  ;;  %v4079_v7 = vpop.f32.mrb[39].mxu0  ;;  %v1603_v48 = vcombine.high %v1599_v42, %v1599_v42  ;;  %v13402_v0 = vld [vmem:[%s14014_s30 + $0x1ac] ss:$600 sps:$4 sm:$0xff]   ;;  %v1619_v1 = vcombine.high %v1611_v52, %v1611_v52 }
 0x18a   : > { %v4119_v8 = vpop.f32.mrb[39].mxu1  ;;  %v1585_v2 = vrot.slane %v1569_v25, %v14007_v6 }
 0x18b   : > { %v13397_v8 = vld [vmem:[%s14014_s30 + $0x1a0] ss:$600 sps:$4 sm:$0xff]  }
 0x18c   : > { %5164 = vmatpush1.bf16.xpose.msra.mxu0 %v12586_v3  ;;  %v925_v3 = vld [vmem:[%s14014_s30 + $0x650] sm:$0x11]  ;;  %v1601_v7 = vcombine.high %v1585_v2, %v1585_v2 }
 0x18d   : > { %5204 = vmatpush1.bf16.xpose.msra.mxu1 %v12588_v4  ;;  %5241 = vmatprep.subr.bf16.mxu0 %v13378_v9  ;;  %v926_v4 = vld [vmem:[%s14014_s30 + $0x658] sm:$0x11]  ;;  %v13400_v9 = vld [vmem:[%s14014_s30 + $0x1a8] ss:$600 sps:$4 sm:$0xff]   ;;  %v12598_v22 = vcombine.low %v925_v3, %v925_v3 }
 0x18e   : > { %5281 = vmatprep.subr.bf16.mxu1 %v13381_v10  ;;  %v12599_v10 = vcombine.high %v925_v3, %v925_v3  ;;  %v12601_v11 = vcombine.high %v926_v4, %v926_v4  ;;  %v1653_v3 = vcombine.high %v718_v40, %v718_v40 }
 0x193   : > { %5194 = vmatmul.mubr.bf16.vlgmr.msra.gmra.mrb[92].mxu0 %v1536_v12 }
 0x194   : > { %5234 = vmatmul.mubr.bf16.vlgmr.msra.gmra.mrb[92].mxu1 %v1552_v16  ;;  %5242 = vmatpush1.bf16.xpose.msra.mxu0 %v13376_v17  ;;  %v1618_v16 = vrot.slane %v1604_v13, %v14007_v6 }
 0x195   : > { %5282 = vmatpush1.bf16.xpose.msra.mxu1 %v13379_v18  ;;  %5243 = vmatprep.subr.bf16.mxu0 %v12591_v19 }
 0x196   : > { %5283 = vmatprep.subr.bf16.mxu1 %v12593_v20  ;;  %v4155_v23 = vpop.f32.mrb[40].mxu0  ;;  %5273 = vmatprep.mubr.bf16.mxu0 %v1592_v15 }
 0x197   : > { %v4195_v24 = vpop.f32.mrb[40].mxu1  ;;  %5313 = vmatprep.mubr.bf16.mxu1 %v1602_v21  ;;  %v4156_v26 = vadd.f32 %v4155_v23, %v4116_v5  ;;  %v4157_v27 = vpop.f32.mrb[41].mxu0  ;;  %v1641_v5 = vrot.slane %v1619_v1, %v14007_v6  ;;  %v12600_v23 = vcombine.low %v926_v4, %v926_v4 }
 0x198   : > { %v4197_v28 = vpop.f32.mrb[41].mxu1  ;;  %v4158_v29 = vpop.f32.mrb[42].mxu0  ;;  %v13409_v27 = vld [vmem:[%s14014_s30 + $0x1b4] ss:$600 sps:$4 sm:$0xff]  }
 0x199   : > { %v4198_v30 = vpop.f32.mrb[42].mxu1  ;;  %v4196_v33 = vadd.f32 %v4195_v24, %v4156_v26  ;;  %v4159_v34 = vpop.f32.mrb[43].mxu0  ;;  %v1651_v12 = vcombine.high %v1641_v5, %v1641_v5  ;;  %v13412_v28 = vld [vmem:[%s14014_s30 + $0x1bc] ss:$600 sps:$4 sm:$0xff]   ;;  %v1620_v29 = vcombine.high %v1618_v16, %v1618_v16 }
 0x19a   : > { %v4199_v35 = vpop.f32.mrb[43].mxu1  ;;  %v1627_v30 = vrot.slane %v1611_v52, %v14007_v6 }
 0x19b   : > { %v13407_v35 = vld [vmem:[%s14014_s30 + $0x1b0] ss:$600 sps:$4 sm:$0xff]  }
 0x19c   : > { %5244 = vmatpush1.bf16.xpose.msra.mxu0 %v12590_v31  ;;  %v927_v31 = vld [vmem:[%s14014_s30 + $0x660] sm:$0x11]  ;;  %v1649_v34 = vcombine.high %v1627_v30, %v1627_v30 }
 0x19d   : > { %5284 = vmatpush1.bf16.xpose.msra.mxu1 %v12592_v32  ;;  %5321 = vmatprep.subr.bf16.mxu0 %v13388_v36  ;;  %v928_v32 = vld [vmem:[%s14014_s30 + $0x668] sm:$0x11]  ;;  %v13410_v36 = vld [vmem:[%s14014_s30 + $0x1b8] ss:$600 sps:$4 sm:$0xff]   ;;  %v12602_v49 = vcombine.low %v927_v31, %v927_v31 }
 0x19e   : > { %5361 = vmatprep.subr.bf16.mxu1 %v13391_v37  ;;  %v12603_v37 = vcombine.high %v927_v31, %v927_v31  ;;  %v12605_v38 = vcombine.high %v928_v32, %v928_v32  ;;  %v719_v31 = vld [vmem:[%s15437_s1 + $0x78] sm:$0xff] }
 0x1a3   : > { %5274 = vmatmul.mubr.bf16.vlgmr.msra.gmra.mrb[96].mxu0 %v1578_v39 }
 0x1a4   : > { %5314 = vmatmul.mubr.bf16.vlgmr.msra.gmra.mrb[96].mxu1 %v1600_v43  ;;  %5322 = vmatpush1.bf16.xpose.msra.mxu0 %v13386_v44  ;;  %v1660_v43 = vrot.slane %v718_v40, %v14007_v6 }
 0x1a5   : > { %5362 = vmatpush1.bf16.xpose.msra.mxu1 %v13389_v45  ;;  %5323 = vmatprep.subr.bf16.mxu0 %v12595_v46 }
 0x1a6   : > { %5363 = vmatprep.subr.bf16.mxu1 %v12597_v47  ;;  %v4235_v50 = vpop.f32.mrb[44].mxu0  ;;  %5353 = vmatprep.mubr.bf16.mxu0 %v1599_v42 }
 0x1a7   : > { %v4275_v51 = vpop.f32.mrb[44].mxu1  ;;  %5393 = vmatprep.mubr.bf16.mxu1 %v1603_v48  ;;  %v4236_v53 = vadd.f32 %v4235_v50, %v4196_v33  ;;  %v4237_v54 = vpop.f32.mrb[45].mxu0  ;;  %v1648_v33 = vrot.slane %v1620_v29, %v14007_v6  ;;  %v12604_v50 = vcombine.low %v928_v32, %v928_v32 }
 0x1a8   : > { %v4277_v55 = vpop.f32.mrb[45].mxu1  ;;  %v4238_v56 = vpop.f32.mrb[46].mxu0  ;;  %v13420_v54 = vld [vmem:[%s14014_s30 + $0x1c4] ss:$600 sps:$4 sm:$0xff]  }
 0x1a9   : > { %v4278_v57 = vpop.f32.mrb[46].mxu1  ;;  %v4276_v60 = vadd.f32 %v4275_v51, %v4236_v53  ;;  %v4239_v61 = vpop.f32.mrb[47].mxu0  ;;  %v1652_v39 = vcombine.high %v1648_v33, %v1648_v33  ;;  %v13423_v55 = vld [vmem:[%s14014_s30 + $0x1cc] ss:$600 sps:$4 sm:$0xff]   ;;  %v1668_v56 = vcombine.high %v1660_v43, %v1660_v43 }
 0x1aa   : > { %v4279_v62 = vpop.f32.mrb[47].mxu1  ;;  %v1634_v57 = vrot.slane %v1618_v16, %v14007_v6 }
 0x1ab   : > { %v13418_v62 = vld [vmem:[%s14014_s30 + $0x1c0] ss:$600 sps:$4 sm:$0xff]  }
 0x1ac   : > { %5324 = vmatpush1.bf16.xpose.msra.mxu0 %v12594_v58  ;;  %v929_v58 = vld [vmem:[%s14014_s30 + $0x670] sm:$0x11]  ;;  %v1650_v61 = vcombine.high %v1634_v57, %v1634_v57 }
 0x1ad   : > { %5364 = vmatpush1.bf16.xpose.msra.mxu1 %v12596_v59  ;;  %5401 = vmatprep.subr.bf16.mxu0 %v13399_v63  ;;  %v930_v59 = vld [vmem:[%s14014_s30 + $0x678] sm:$0x11]  ;;  %v13421_v63 = vld [vmem:[%s14014_s30 + $0x1c8] ss:$600 sps:$4 sm:$0xff]   ;;  %v12606_v13 = vcombine.low %v929_v58, %v929_v58 }
 0x1ae   : > { %5441 = vmatprep.subr.bf16.mxu1 %v13402_v0  ;;  %v12607_v0 = vcombine.high %v929_v58, %v929_v58  ;;  %v12609_v1 = vcombine.high %v930_v59, %v930_v59  ;;  %v1702_v58 = vcombine.high %v719_v31, %v719_v31 }
 0x1b3   : > { %5354 = vmatmul.mubr.bf16.vlgmr.msra.gmra.mrb[100].mxu0 %v1585_v2 }
 0x1b4   : > { %5394 = vmatmul.mubr.bf16.vlgmr.msra.gmra.mrb[100].mxu1 %v1601_v7  ;;  %5402 = vmatpush1.bf16.xpose.msra.mxu0 %v13397_v8  ;;  %v1667_v7 = vrot.slane %v1653_v3, %v14007_v6 }
 0x1b5   : > { %5442 = vmatpush1.bf16.xpose.msra.mxu1 %v13400_v9  ;;  %5403 = vmatprep.subr.bf16.mxu0 %v12599_v10 }
 0x1b6   : > { %5443 = vmatprep.subr.bf16.mxu1 %v12601_v11  ;;  %v4315_v14 = vpop.f32.mrb[48].mxu0  ;;  %5433 = vmatprep.mubr.bf16.mxu0 %v1641_v5 }
 0x1b7   : > { %v4355_v15 = vpop.f32.mrb[48].mxu1  ;;  %5473 = vmatprep.mubr.bf16.mxu1 %v1651_v12  ;;  %v4316_v17 = vadd.f32 %v4315_v14, %v4276_v60  ;;  %v4317_v18 = vpop.f32.mrb[49].mxu0  ;;  %v1690_v60 = vrot.slane %v1668_v56, %v14007_v6  ;;  %v12608_v14 = vcombine.low %v930_v59, %v930_v59 }
 0x1b8   : > { %v4357_v19 = vpop.f32.mrb[49].mxu1  ;;  %v4318_v20 = vpop.f32.mrb[50].mxu0  ;;  %v13430_v18 = vld [vmem:[%s14014_s30 + $0x1d4] ss:$600 sps:$4 sm:$0xff]  }
 0x1b9   : > { %v4358_v21 = vpop.f32.mrb[50].mxu1  ;;  %v4356_v24 = vadd.f32 %v4355_v15, %v4316_v17  ;;  %v4319_v25 = vpop.f32.mrb[51].mxu0  ;;  %v1700_v2 = vcombine.high %v1690_v60, %v1690_v60  ;;  %v13433_v19 = vld [vmem:[%s14014_s30 + $0x1dc] ss:$600 sps:$4 sm:$0xff]   ;;  %v1669_v20 = vcombine.high %v1667_v7, %v1667_v7 }
 0x1ba   : > { %v4359_v26 = vpop.f32.mrb[51].mxu1  ;;  %v1676_v21 = vrot.slane %v1660_v43, %v14007_v6  ;;  %v13444_v43 = vld [vmem:[%s14014_s30 + $0x1ec] ss:$600 sps:$4 sm:$0xff]  }
 0x1bb   : > { %v13428_v26 = vld [vmem:[%s14014_s30 + $0x1d0] ss:$600 sps:$4 sm:$0xff]  }
 0x1bc   : > { %5404 = vmatpush1.bf16.xpose.msra.mxu0 %v12598_v22  ;;  %v931_v22 = vld [vmem:[%s14014_s30 + $0x680] sm:$0x11]  ;;  %v1698_v25 = vcombine.high %v1676_v21, %v1676_v21 }
 0x1bd   : > { %5444 = vmatpush1.bf16.xpose.msra.mxu1 %v12600_v23  ;;  %5481 = vmatprep.subr.bf16.mxu0 %v13409_v27  ;;  %v932_v23 = vld [vmem:[%s14014_s30 + $0x688] sm:$0x11]  ;;  %v13431_v27 = vld [vmem:[%s14014_s30 + $0x1d8] ss:$600 sps:$4 sm:$0xff]   ;;  %v12610_v40 = vcombine.low %v931_v22, %v931_v22 }
 0x1be   : > { %5521 = vmatprep.subr.bf16.mxu1 %v13412_v28  ;;  %v12611_v28 = vcombine.high %v931_v22, %v931_v22  ;;  %v12613_v29 = vcombine.high %v932_v23, %v932_v23  ;;  %v720_v22 = vld [vmem:[%s15437_s1 + $0x80] sm:$0xff] }
 0x1c3   : > { %5434 = vmatmul.mubr.bf16.vlgmr.msra.gmra.mrb[104].mxu0 %v1627_v30 }
 0x1c4   : > { %5474 = vmatmul.mubr.bf16.vlgmr.msra.gmra.mrb[104].mxu1 %v1649_v34  ;;  %5482 = vmatpush1.bf16.xpose.msra.mxu0 %v13407_v35  ;;  %v1709_v34 = vrot.slane %v719_v31, %v14007_v6 }
 0x1c5   : > { %5522 = vmatpush1.bf16.xpose.msra.mxu1 %v13410_v36  ;;  %5483 = vmatprep.subr.bf16.mxu0 %v12603_v37 }
 0x1c6   : > { %5523 = vmatprep.subr.bf16.mxu1 %v12605_v38  ;;  %v4395_v41 = vpop.f32.mrb[52].mxu0  ;;  %5513 = vmatprep.mubr.bf16.mxu0 %v1648_v33 }
 0x1c7   : > { %v4435_v42 = vpop.f32.mrb[52].mxu1  ;;  %5553 = vmatprep.mubr.bf16.mxu1 %v1652_v39  ;;  %v4396_v44 = vadd.f32 %v4395_v41, %v4356_v24  ;;  %v4397_v45 = vpop.f32.mrb[53].mxu0  ;;  %v1697_v24 = vrot.slane %v1669_v20, %v14007_v6  ;;  %v12612_v41 = vcombine.low %v932_v23, %v932_v23 }
 0x1c8   : > { %v4437_v46 = vpop.f32.mrb[53].mxu1  ;;  %v4398_v47 = vpop.f32.mrb[54].mxu0 }
 0x1c9   : > { %v4438_v48 = vpop.f32.mrb[54].mxu1  ;;  %v4436_v51 = vadd.f32 %v4435_v42, %v4396_v44  ;;  %v4399_v52 = vpop.f32.mrb[55].mxu0  ;;  %v1701_v30 = vcombine.high %v1697_v24, %v1697_v24  ;;  %v13441_v42 = vld [vmem:[%s14014_s30 + $0x1e4] ss:$600 sps:$4 sm:$0xff]   ;;  %v1717_v47 = vcombine.high %v1709_v34, %v1709_v34 }
 0x1ca   : > { %v4439_v53 = vpop.f32.mrb[55].mxu1  ;;  %v1683_v48 = vrot.slane %v1667_v7, %v14007_v6  ;;  %v13442_v52 = vld [vmem:[%s14014_s30 + $0x1e8] ss:$600 sps:$4 sm:$0xff]   ;;  %v13454_v7 = vld [vmem:[%s14014_s30 + $0x1fc] ss:$600 sps:$4 sm:$0xff]  }
 0x1cb   : > { %v1739_v53 = vrot.slane %v1717_v47, %v14007_v6 }
 0x1cc   : > { %5484 = vmatpush1.bf16.xpose.msra.mxu0 %v12602_v49  ;;  %v933_v49 = vld [vmem:[%s14014_s30 + $0x690] sm:$0x11] }
 0x1cd   : > { %5524 = vmatpush1.bf16.xpose.msra.mxu1 %v12604_v50  ;;  %5561 = vmatprep.subr.bf16.mxu0 %v13420_v54  ;;  %v934_v50 = vld [vmem:[%s14014_s30 + $0x698] sm:$0x11]  ;;  %v1699_v54 = vcombine.high %v1683_v48, %v1683_v48  ;;  %v12614_v3 = vcombine.low %v933_v49, %v933_v49 }
 0x1ce   : > { %5601 = vmatprep.subr.bf16.mxu1 %v13423_v55  ;;  %v12615_v55 = vcombine.high %v933_v49, %v933_v49  ;;  %v12617_v56 = vcombine.high %v934_v50, %v934_v50  ;;  %v1751_v49 = vcombine.high %v720_v22, %v720_v22 }
 0x1d3   : > { %5514 = vmatmul.mubr.bf16.vlgmr.msra.gmra.mrb[108].mxu0 %v1634_v57  ;;  %v1749_v57 = vcombine.high %v1739_v53, %v1739_v53 }
 0x1d4   : > { %5554 = vmatmul.mubr.bf16.vlgmr.msra.gmra.mrb[108].mxu1 %v1650_v61  ;;  %5562 = vmatpush1.bf16.xpose.msra.mxu0 %v13418_v62  ;;  %v1716_v61 = vrot.slane %v1702_v58, %v14007_v6 }
 0x1d5   : > { %5602 = vmatpush1.bf16.xpose.msra.mxu1 %v13421_v63  ;;  %5563 = vmatprep.subr.bf16.mxu0 %v12607_v0 }
 0x1d6   : > { %5603 = vmatprep.subr.bf16.mxu1 %v12609_v1  ;;  %v4475_v4 = vpop.f32.mrb[56].mxu0  ;;  %5593 = vmatprep.mubr.bf16.mxu0 %v1690_v60 }
 0x1d7   : > { %v4515_v5 = vpop.f32.mrb[56].mxu1  ;;  %5633 = vmatprep.mubr.bf16.mxu1 %v1700_v2  ;;  %v4476_v8 = vadd.f32 %v4475_v4, %v4436_v51  ;;  %v4477_v9 = vpop.f32.mrb[57].mxu0  ;;  %v13439_v51 = vld [vmem:[%s14014_s30 + $0x1e0] ss:$600 sps:$4 sm:$0xff]   ;;  %v12616_v4 = vcombine.low %v934_v50, %v934_v50 }
 0x1d8   : > { %v4517_v10 = vpop.f32.mrb[57].mxu1  ;;  %v4478_v11 = vpop.f32.mrb[58].mxu0 }
 0x1d9   : > { %v4518_v12 = vpop.f32.mrb[58].mxu1  ;;  %v4516_v15 = vadd.f32 %v4515_v5, %v4476_v8  ;;  %v4479_v16 = vpop.f32.mrb[59].mxu0  ;;  %v13451_v5 = vld [vmem:[%s14014_s30 + $0x1f4] ss:$600 sps:$4 sm:$0xff]   ;;  %v1718_v11 = vcombine.high %v1716_v61, %v1716_v61 }
 0x1da   : > { %v4519_v17 = vpop.f32.mrb[59].mxu1  ;;  %v1725_v12 = vrot.slane %v1709_v34, %v14007_v6  ;;  %v13452_v16 = vld [vmem:[%s14014_s30 + $0x1f8] ss:$600 sps:$4 sm:$0xff]   ;;  %v13465_v34 = vld [vmem:[%s14014_s30 + $0x20c] ss:$600 sps:$4 sm:$0xff]  }
 0x1db   : > { %v1746_v17 = vrot.slane %v1718_v11, %v14007_v6 }
 0x1dc   : > { %5564 = vmatpush1.bf16.xpose.msra.mxu0 %v12606_v13  ;;  %v935_v13 = vld [vmem:[%s14014_s30 + $0x6a0] sm:$0x11] }
 0x1dd   : > { %5604 = vmatpush1.bf16.xpose.msra.mxu1 %v12608_v14  ;;  %5641 = vmatprep.subr.bf16.mxu0 %v13430_v18  ;;  %v936_v14 = vld [vmem:[%s14014_s30 + $0x6a8] sm:$0x11]  ;;  %v1747_v18 = vcombine.high %v1725_v12, %v1725_v12  ;;  %v12618_v31 = vcombine.low %v935_v13, %v935_v13 }
 0x1de   : > { %5681 = vmatprep.subr.bf16.mxu1 %v13433_v19  ;;  %v12619_v19 = vcombine.high %v935_v13, %v935_v13  ;;  %v12621_v20 = vcombine.high %v936_v14, %v936_v14  ;;  %v721_v13 = vld [vmem:[%s15437_s1 + $0x88] sm:$0xff] }
 0x1e3   : > { %5594 = vmatmul.mubr.bf16.vlgmr.msra.gmra.mrb[112].mxu0 %v1676_v21  ;;  %v1750_v21 = vcombine.high %v1746_v17, %v1746_v17 }
 0x1e4   : > { %5634 = vmatmul.mubr.bf16.vlgmr.msra.gmra.mrb[112].mxu1 %v1698_v25  ;;  %5642 = vmatpush1.bf16.xpose.msra.mxu0 %v13428_v26  ;;  %v1758_v25 = vrot.slane %v720_v22, %v14007_v6 }
 0x1e5   : > { %5682 = vmatpush1.bf16.xpose.msra.mxu1 %v13431_v27  ;;  %5643 = vmatprep.subr.bf16.mxu0 %v12611_v28 }
 0x1e6   : > { %5683 = vmatprep.subr.bf16.mxu1 %v12613_v29  ;;  %v4555_v32 = vpop.f32.mrb[60].mxu0  ;;  %5673 = vmatprep.mubr.bf16.mxu0 %v1697_v24 }
 0x1e7   : > { %v4595_v33 = vpop.f32.mrb[60].mxu1  ;;  %5713 = vmatprep.mubr.bf16.mxu1 %v1701_v30  ;;  %v4556_v35 = vadd.f32 %v4555_v32, %v4516_v15  ;;  %v4557_v36 = vpop.f32.mrb[61].mxu0  ;;  %v13449_v15 = vld [vmem:[%s14014_s30 + $0x1f0] ss:$600 sps:$4 sm:$0xff]   ;;  %v12620_v32 = vcombine.low %v936_v14, %v936_v14 }
 0x1e8   : > { %v4597_v37 = vpop.f32.mrb[61].mxu1  ;;  %v4558_v38 = vpop.f32.mrb[62].mxu0 }
 0x1e9   : > { %v4598_v39 = vpop.f32.mrb[62].mxu1  ;;  %v4596_v44 = vadd.f32 %v4595_v33, %v4556_v35  ;;  %v4559_v45 = vpop.f32.mrb[63].mxu0  ;;  %v13462_v33 = vld [vmem:[%s14014_s30 + $0x204] ss:$600 sps:$4 sm:$0xff]   ;;  %v1766_v38 = vcombine.high %v1758_v25, %v1758_v25 }
 0x1ea   : > { %v4599_v46 = vpop.f32.mrb[63].mxu1  ;;  %v1732_v39 = vrot.slane %v1716_v61, %v14007_v6  ;;  %v13475_v61 = vld [vmem:[%s14014_s30 + $0x21c] ss:$600 sps:$4 sm:$0xff]  }
 0x1ec   : > { %5644 = vmatpush1.bf16.xpose.msra.mxu0 %v12610_v40  ;;  %v937_v40 = vld [vmem:[%s14014_s30 + $0x6b0] sm:$0x11]  ;;  %v1748_v45 = vcombine.high %v1732_v39, %v1732_v39 }
 0x1ed   : > { %5684 = vmatpush1.bf16.xpose.msra.mxu1 %v12612_v41  ;;  %5721 = vmatprep.subr.bf16.mxu0 %v13441_v42  ;;  %v938_v41 = vld [vmem:[%s14014_s30 + $0x6b8] sm:$0x11]  ;;  %v12623_v46 = vcombine.high %v937_v40, %v937_v40  ;;  %v12622_v58 = vcombine.low %v937_v40, %v937_v40  ;;  %v1800_v40 = vcombine.high %v721_v13, %v721_v13 }
 0x1ee   : > { %5761 = vmatprep.subr.bf16.mxu1 %v13444_v43  ;;  %v13460_v42 = vld [vmem:[%s14014_s30 + $0x200] ss:$600 sps:$4 sm:$0xff]   ;;  %v12625_v47 = vcombine.high %v938_v41, %v938_v41 }
 0x1ef   : > { %v13463_v43 = vld [vmem:[%s14014_s30 + $0x208] ss:$600 sps:$4 sm:$0xff]  }
 0x1f3   : > { %5674 = vmatmul.mubr.bf16.vlgmr.msra.gmra.mrb[116].mxu0 %v1683_v48 }
 0x1f4   : > { %5714 = vmatmul.mubr.bf16.vlgmr.msra.gmra.mrb[116].mxu1 %v1699_v54  ;;  %5722 = vmatpush1.bf16.xpose.msra.mxu0 %v13439_v51 }
 0x1f5   : > { %5762 = vmatpush1.bf16.xpose.msra.mxu1 %v13442_v52  ;;  %5723 = vmatprep.subr.bf16.mxu0 %v12615_v55  ;;  %v1765_v52 = vrot.slane %v1751_v49, %v14007_v6 }
 0x1f6   : > { %5763 = vmatprep.subr.bf16.mxu1 %v12617_v56  ;;  %v4635_v59 = vpop.f32.mrb[64].mxu0  ;;  %5753 = vmatprep.mubr.bf16.mxu0 %v1739_v53 }
 0x1f7   : > { %v4675_v60 = vpop.f32.mrb[64].mxu1  ;;  %5793 = vmatprep.mubr.bf16.mxu1 %v1749_v57  ;;  %v4636_v62 = vadd.f32 %v4635_v59, %v4596_v44  ;;  %v4637_v63 = vpop.f32.mrb[65].mxu0  ;;  %v1788_v44 = vrot.slane %v1766_v38, %v14007_v6  ;;  %v12624_v59 = vcombine.low %v938_v41, %v938_v41 }
 0x1f8   : > { %v4677_v0 = vpop.f32.mrb[65].mxu1  ;;  %v4638_v1 = vpop.f32.mrb[66].mxu0 }
 0x1f9   : > { %v4678_v2 = vpop.f32.mrb[66].mxu1  ;;  %v4676_v8 = vadd.f32 %v4675_v60, %v4636_v62  ;;  %v4639_v9 = vpop.f32.mrb[67].mxu0  ;;  %v1798_v48 = vcombine.high %v1788_v44, %v1788_v44  ;;  %v13472_v60 = vld [vmem:[%s14014_s30 + $0x214] ss:$600 sps:$4 sm:$0xff]   ;;  %v1767_v1 = vcombine.high %v1765_v52, %v1765_v52 }
 0x1fa   : > { %v4679_v10 = vpop.f32.mrb[67].mxu1  ;;  %v1774_v2 = vrot.slane %v1758_v25, %v14007_v6  ;;  %v13473_v9 = vld [vmem:[%s14014_s30 + $0x218] ss:$600 sps:$4 sm:$0xff]  }
 0x1fc   : > { %5724 = vmatpush1.bf16.xpose.msra.mxu0 %v12614_v3  ;;  %v939_v3 = vld [vmem:[%s14014_s30 + $0x6c0] sm:$0x11] }
 0x1fd   : > { %5764 = vmatpush1.bf16.xpose.msra.mxu1 %v12616_v4  ;;  %5801 = vmatprep.subr.bf16.mxu0 %v13451_v5  ;;  %v940_v4 = vld [vmem:[%s14014_s30 + $0x6c8] sm:$0x11]  ;;  %v1795_v5 = vrot.slane %v1767_v1, %v14007_v6  ;;  %v12627_v10 = vcombine.high %v939_v3, %v939_v3  ;;  %v12626_v22 = vcombine.low %v939_v3, %v939_v3  ;;  %v722_v3 = vld [vmem:[%s15437_s1 + $0x90] sm:$0x3f] }
 0x1fe   : > { %5841 = vmatprep.subr.bf16.mxu1 %v13454_v7  ;;  %v1796_v7 = vcombine.high %v1774_v2, %v1774_v2  ;;  %v12629_v11 = vcombine.high %v940_v4, %v940_v4 }
 0x203   : > { %5754 = vmatmul.mubr.bf16.vlgmr.msra.gmra.mrb[120].mxu0 %v1725_v12  ;;  %v1799_v12 = vcombine.high %v1795_v5, %v1795_v5 }
 0x204   : > { %5794 = vmatmul.mubr.bf16.vlgmr.msra.gmra.mrb[120].mxu1 %v1747_v18  ;;  %5802 = vmatpush1.bf16.xpose.msra.mxu0 %v13449_v15 }
 0x205   : > { %5842 = vmatpush1.bf16.xpose.msra.mxu1 %v13452_v16  ;;  %5803 = vmatprep.subr.bf16.mxu0 %v12619_v19  ;;  %v1807_v16 = vrot.slane %v721_v13, %v14007_v6 }
 0x206   : > { %5843 = vmatprep.subr.bf16.mxu1 %v12621_v20  ;;  %v4715_v23 = vpop.f32.mrb[68].mxu0  ;;  %5833 = vmatprep.mubr.bf16.mxu0 %v1746_v17 }
 0x207   : > { %v4755_v24 = vpop.f32.mrb[68].mxu1  ;;  %5873 = vmatprep.mubr.bf16.mxu1 %v1750_v21  ;;  %v4716_v26 = vadd.f32 %v4715_v23, %v4676_v8  ;;  %v4717_v27 = vpop.f32.mrb[69].mxu0  ;;  %v13470_v8 = vld [vmem:[%s14014_s30 + $0x210] ss:$600 sps:$4 sm:$0xff]   ;;  %v12628_v23 = vcombine.low %v940_v4, %v940_v4 }
 0x208   : > { %v4757_v28 = vpop.f32.mrb[69].mxu1  ;;  %v4718_v29 = vpop.f32.mrb[70].mxu0  ;;  %v13483_v27 = vld [vmem:[%s14014_s30 + $0x224] ss:$600 sps:$4 sm:$0xff]  }
 0x209   : > { %v4758_v30 = vpop.f32.mrb[70].mxu1  ;;  %v4756_v35 = vadd.f32 %v4755_v24, %v4716_v26  ;;  %v4719_v36 = vpop.f32.mrb[71].mxu0  ;;  %v13486_v28 = vld [vmem:[%s14014_s30 + $0x22c] ss:$600 sps:$4 sm:$0xff]   ;;  %v1815_v29 = vcombine.high %v1807_v16, %v1807_v16 }
 0x20a   : > { %v4759_v37 = vpop.f32.mrb[71].mxu1  ;;  %v1781_v30 = vrot.slane %v1765_v52, %v14007_v6  ;;  %v13484_v36 = vld [vmem:[%s14014_s30 + $0x228] ss:$600 sps:$4 sm:$0xff]  }
 0x20c   : > { %5804 = vmatpush1.bf16.xpose.msra.mxu0 %v12618_v31  ;;  %v941_v31 = vld [vmem:[%s14014_s30 + $0x6d0] sm:$0x11] }
 0x20d   : > { %5844 = vmatpush1.bf16.xpose.msra.mxu1 %v12620_v32  ;;  %5881 = vmatprep.subr.bf16.mxu0 %v13462_v33  ;;  %v942_v32 = vld [vmem:[%s14014_s30 + $0x6d8] sm:$0x11]  ;;  %v1837_v33 = vrot.slane %v1815_v29, %v14007_v6  ;;  %v12631_v37 = vcombine.high %v941_v31, %v941_v31  ;;  %v12630_v49 = vcombine.low %v941_v31, %v941_v31 }
 0x20e   : > { %5921 = vmatprep.subr.bf16.mxu1 %v13465_v34  ;;  %v1797_v34 = vcombine.high %v1781_v30, %v1781_v30  ;;  %v12633_v38 = vcombine.high %v942_v32, %v942_v32 }
 0x213   : > { %5834 = vmatmul.mubr.bf16.vlgmr.msra.gmra.mrb[124].mxu0 %v1732_v39  ;;  %v1847_v39 = vcombine.high %v1837_v33, %v1837_v33 }
 0x214   : > { %5874 = vmatmul.mubr.bf16.vlgmr.msra.gmra.mrb[124].mxu1 %v1748_v45  ;;  %5882 = vmatpush1.bf16.xpose.msra.mxu0 %v13460_v42 }
 0x215   : > { %5922 = vmatpush1.bf16.xpose.msra.mxu1 %v13463_v43  ;;  %5883 = vmatprep.subr.bf16.mxu0 %v12623_v46  ;;  %v1814_v43 = vrot.slane %v1800_v40, %v14007_v6 }
 0x216   : > { %5923 = vmatprep.subr.bf16.mxu1 %v12625_v47  ;;  %v4795_v50 = vpop.f32.mrb[72].mxu0  ;;  %5913 = vmatprep.mubr.bf16.mxu0 %v1788_v44 }
 0x217   : > { %v4835_v51 = vpop.f32.mrb[72].mxu1  ;;  %5953 = vmatprep.mubr.bf16.mxu1 %v1798_v48  ;;  %v4796_v53 = vadd.f32 %v4795_v50, %v4756_v35  ;;  %v4797_v54 = vpop.f32.mrb[73].mxu0  ;;  %v13481_v35 = vld [vmem:[%s14014_s30 + $0x220] ss:$600 sps:$4 sm:$0xff]   ;;  %v12632_v50 = vcombine.low %v942_v32, %v942_v32 }
 0x218   : > { %v4837_v55 = vpop.f32.mrb[73].mxu1  ;;  %v4798_v56 = vpop.f32.mrb[74].mxu0  ;;  %v13493_v54 = vld [vmem:[%s14014_s30 + $0x234] ss:$600 sps:$4 sm:$0xff]  }
 0x219   : > { %v4838_v57 = vpop.f32.mrb[74].mxu1  ;;  %v4836_v62 = vadd.f32 %v4835_v51, %v4796_v53  ;;  %v4799_v63 = vpop.f32.mrb[75].mxu0  ;;  %v13496_v55 = vld [vmem:[%s14014_s30 + $0x23c] ss:$600 sps:$4 sm:$0xff]   ;;  %v1816_v56 = vcombine.high %v1814_v43, %v1814_v43 }
 0x21a   : > { %v4839_v0 = vpop.f32.mrb[75].mxu1  ;;  %v1823_v57 = vrot.slane %v1807_v16, %v14007_v6  ;;  %v13494_v63 = vld [vmem:[%s14014_s30 + $0x238] ss:$600 sps:$4 sm:$0xff]  }
 0x21c   : > { %5884 = vmatpush1.bf16.xpose.msra.mxu0 %v12622_v58  ;;  %v943_v58 = vld [vmem:[%s14014_s30 + $0x6e0] sm:$0x11] }
 0x21d   : > { %5924 = vmatpush1.bf16.xpose.msra.mxu1 %v12624_v59  ;;  %5961 = vmatprep.subr.bf16.mxu0 %v13472_v60  ;;  %v944_v59 = vld [vmem:[%s14014_s30 + $0x6e8] sm:$0x11]  ;;  %v1844_v60 = vrot.slane %v1816_v56, %v14007_v6  ;;  %v12635_v0 = vcombine.high %v943_v58, %v943_v58  ;;  %v12634_v13 = vcombine.low %v943_v58, %v943_v58  ;;  %v13515_v56 = vld [vmem:[%s14337_s26] ss:$600 sps:$4 sm:$0xff]  }
 0x21e   : > { %6001 = vmatprep.subr.bf16.mxu1 %v13475_v61  ;;  %v1845_v61 = vcombine.high %v1823_v57, %v1823_v57  ;;  %v12637_v1 = vcombine.high %v944_v59, %v944_v59 }
 0x223   : > { %5914 = vmatmul.mubr.bf16.vlgmr.msra.gmra.mrb[128].mxu0 %v1774_v2  ;;  %v1848_v2 = vcombine.high %v1844_v60, %v1844_v60 }
 0x224   : > { %5954 = vmatmul.mubr.bf16.vlgmr.msra.gmra.mrb[128].mxu1 %v1796_v7  ;;  %5962 = vmatpush1.bf16.xpose.msra.mxu0 %v13470_v8  ;;  %v1856_v7 = vrot.slane %v722_v3, %v14007_v6 }
 0x225   : > { %6002 = vmatpush1.bf16.xpose.msra.mxu1 %v13473_v9  ;;  %5963 = vmatprep.subr.bf16.mxu0 %v12627_v10 }
 0x226   : > { %6003 = vmatprep.subr.bf16.mxu1 %v12629_v11  ;;  %v4875_v14 = vpop.f32.mrb[76].mxu0  ;;  %5993 = vmatprep.mubr.bf16.mxu0 %v1795_v5 }
 0x227   : > { %v4915_v15 = vpop.f32.mrb[76].mxu1  ;;  %6033 = vmatprep.mubr.bf16.mxu1 %v1799_v12  ;;  %v4876_v17 = vadd.f32 %v4875_v14, %v4836_v62  ;;  %v4877_v18 = vpop.f32.mrb[77].mxu0  ;;  %v13491_v62 = vld [vmem:[%s14014_s30 + $0x230] ss:$600 sps:$4 sm:$0xff]   ;;  %v12636_v14 = vcombine.low %v944_v59, %v944_v59 }
 0x228   : > { %v4917_v19 = vpop.f32.mrb[77].mxu1  ;;  %v4878_v20 = vpop.f32.mrb[78].mxu0  ;;  %v13504_v18 = vld [vmem:[%s14014_s30 + $0x244] ss:$600 sps:$4 sm:$0xff]  }
 0x229   : > { %v4918_v21 = vpop.f32.mrb[78].mxu1  ;;  %v4916_v24 = vadd.f32 %v4915_v15, %v4876_v17  ;;  %v4879_v25 = vpop.f32.mrb[79].mxu0  ;;  %v13507_v19 = vld [vmem:[%s14014_s30 + $0x24c] ss:$600 sps:$4 sm:$0xff]   ;;  %v1864_v20 = vcombine.high %v1856_v7, %v1856_v7 }
 0x22a   : > { %v4919_v26 = vpop.f32.mrb[79].mxu1  ;;  %v1830_v21 = vrot.slane %v1814_v43, %v14007_v6 }
 0x22b   : > { %v13502_v26 = vld [vmem:[%s14014_s30 + $0x240] ss:$600 sps:$4 sm:$0xff]  }
 0x22c   : > { %5964 = vmatpush1.bf16.xpose.msra.mxu0 %v12626_v22  ;;  %v945_v22 = vld [vmem:[%s14014_s30 + $0x6f0] sm:$0x11]  ;;  %v1846_v25 = vcombine.high %v1830_v21, %v1830_v21 }
 0x22d   : > { %6004 = vmatpush1.bf16.xpose.msra.mxu1 %v12628_v23  ;;  %6041 = vmatprep.subr.bf16.mxu0 %v13483_v27  ;;  %v946_v23 = vld [vmem:[%s14014_s30 + $0x6f8] sm:$0x11]  ;;  %v13505_v27 = vld [vmem:[%s14014_s30 + $0x248] ss:$600 sps:$4 sm:$0xff]   ;;  %v12638_v40 = vcombine.low %v945_v22, %v945_v22 }
 0x22e   : > { %6081 = vmatprep.subr.bf16.mxu1 %v13486_v28  ;;  %v12639_v28 = vcombine.high %v945_v22, %v945_v22  ;;  %v12641_v29 = vcombine.high %v946_v23, %v946_v23 }
 0x233   : > { %5994 = vmatmul.mubr.bf16.vlgmr.msra.gmra.mrb[132].mxu0 %v1781_v30 }
 0x234   : > { %6034 = vmatmul.mubr.bf16.vlgmr.msra.gmra.mrb[132].mxu1 %v1797_v34  ;;  %6042 = vmatpush1.bf16.xpose.msra.mxu0 %v13481_v35 }
 0x235   : > { %6082 = vmatpush1.bf16.xpose.msra.mxu1 %v13484_v36  ;;  %6043 = vmatprep.subr.bf16.mxu0 %v12631_v37  ;;  %v460_v37 = vld [vmem:[%s15436_s0] sm:$0xff] }
 0x236   : > { %6083 = vmatprep.subr.bf16.mxu1 %v12633_v38  ;;  %v4955_v41 = vpop.f32.mrb[80].mxu0  ;;  %6073 = vmatprep.mubr.bf16.mxu0 %v1837_v33  ;;  %v1849_v33 = vcombine.high %v722_v3, %v722_v3 }
 0x237   : > { %v4995_v42 = vpop.f32.mrb[80].mxu1  ;;  %6113 = vmatprep.mubr.bf16.mxu1 %v1847_v39  ;;  %v4956_v44 = vadd.f32 %v4955_v41, %v4916_v24  ;;  %v4957_v45 = vpop.f32.mrb[81].mxu0  ;;  %v1886_v24 = vrot.slane %v1864_v20, %v14007_v6  ;;  %v12640_v41 = vcombine.low %v946_v23, %v946_v23  ;;  %v13526_v20 = vld [vmem:[%s14337_s26 + $0x10] ss:$600 sps:$4 sm:$0xff]  }
 0x238   : > { %v4997_v46 = vpop.f32.mrb[81].mxu1  ;;  %v4958_v47 = vpop.f32.mrb[82].mxu0  ;;  %v13514_v45 = vld [vmem:[%s14014_s30 + $0x254] ss:$600 sps:$4 sm:$0xff]  }
 0x239   : > { %v4998_v48 = vpop.f32.mrb[82].mxu1  ;;  %v4996_v51 = vadd.f32 %v4995_v42, %v4956_v44  ;;  %v4959_v52 = vpop.f32.mrb[83].mxu0  ;;  %v1895_v30 = vcombine.high %v1886_v24, %v1886_v24  ;;  %v13517_v46 = vld [vmem:[%s14337_s26 + $0x4] ss:$600 sps:$4 sm:$0xff]   ;;  %v1863_v47 = vrot.slane %v1849_v33, %v14007_v6 }
 0x23a   : > { %v4999_v53 = vpop.f32.mrb[83].mxu1  ;;  %v6347_v48 = vrot.slane %v460_v37, %v14007_v6 }
 0x23b   : > { %v1865_v52 = vcombine.high %v1863_v47, %v1863_v47 }
 0x23c   : > { %6044 = vmatpush1.bf16.xpose.msra.mxu0 %v12630_v49  ;;  %v1872_v49 = vrot.slane %v1856_v7, %v14007_v6  ;;  %v6355_v53 = vcombine.high %v6347_v48, %v6347_v48 }
 0x23d   : > { %6084 = vmatpush1.bf16.xpose.msra.mxu1 %v12632_v50  ;;  %6121 = vmatprep.subr.bf16.mxu0 %v13493_v54  ;;  %v947_v50 = vld [vmem:[%s14014_s30 + $0x700] sm:$0x11]  ;;  %v1893_v59 = vrot.slane %v1865_v52, %v14007_v6 }
 0x23e   : > { %6161 = vmatprep.subr.bf16.mxu1 %v13496_v55  ;;  %v1894_v54 = vcombine.high %v1872_v49, %v1872_v49  ;;  %v13512_v55 = vld [vmem:[%s14014_s30 + $0x250] ss:$600 sps:$4 sm:$0xff]  }
 0x243   : > { %6074 = vmatmul.mubr.bf16.vlgmr.msra.gmra.mrb[136].mxu0 %v1823_v57  ;;  %v12643_v57 = vcombine.high %v947_v50, %v947_v50 }
 0x244   : > { %6114 = vmatmul.mubr.bf16.vlgmr.msra.gmra.mrb[136].mxu1 %v1845_v61  ;;  %6122 = vmatpush1.bf16.xpose.msra.mxu0 %v13491_v62 }
 0x245   : > { %6162 = vmatpush1.bf16.xpose.msra.mxu1 %v13494_v63  ;;  %6123 = vmatprep.subr.bf16.mxu0 %v12635_v0  ;;  %v6340_v63 = vcombine.high %v460_v37, %v460_v37 }
 0x246   : > { %6163 = vmatprep.subr.bf16.mxu1 %v12637_v1  ;;  %v5035_v4 = vpop.f32.mrb[84].mxu0  ;;  %6153 = vmatprep.mubr.bf16.mxu0 %v1844_v60  ;;  %v6377_v60 = vrot.slane %v6355_v53, %v14007_v6 }
 0x247   : > { %v5075_v5 = vpop.f32.mrb[84].mxu1  ;;  %6193 = vmatprep.mubr.bf16.mxu1 %v1848_v2  ;;  %v5036_v8 = vadd.f32 %v5035_v4, %v4996_v51  ;;  %v5037_v9 = vpop.f32.mrb[85].mxu0  ;;  %v629_v51 = vld [vmem:[%s14337_s26 + $0x4b0] sm:$0x11] }
 0x248   : > { %v5077_v10 = vpop.f32.mrb[85].mxu1  ;;  %v5038_v11 = vpop.f32.mrb[86].mxu0  ;;  %v12795_v58 = vcombine.high %v629_v51, %v629_v51  ;;  %v12794_v7 = vcombine.low %v629_v51, %v629_v51  ;;  %v6387_v23 = vcombine.high %v6377_v60, %v6377_v60 }
 0x249   : > { %v5078_v12 = vpop.f32.mrb[86].mxu1  ;;  %v5076_v15 = vadd.f32 %v5075_v5, %v5036_v8  ;;  %v5039_v16 = vpop.f32.mrb[87].mxu0  ;;  %v12642_v5 = vcombine.low %v947_v50, %v947_v50  ;;  %v13525_v11 = vld [vmem:[%s14337_s26 + $0xc] ss:$600 sps:$4 sm:$0xff]  }
 0x24a   : > { %v5079_v17 = vpop.f32.mrb[87].mxu1  ;;  %v13528_v12 = vld [vmem:[%s14337_s26 + $0x14] ss:$600 sps:$4 sm:$0xff]  }
 0x24b   : > { %v1879_v17 = vrot.slane %v1863_v47, %v14007_v6  ;;  %v13537_v47 = vld [vmem:[%s14337_s26 + $0x20] ss:$600 sps:$4 sm:$0xff]  }
 0x24c   : > { %6124 = vmatpush1.bf16.xpose.msra.mxu0 %v12634_v13  ;;  %v6354_v13 = vrot.slane %v6340_v63, %v14007_v6 }
 0x24d   : > { %6164 = vmatpush1.bf16.xpose.msra.mxu1 %v12636_v14  ;;  %6201 = vmatprep.subr.bf16.mxu0 %v13504_v18  ;;  %v630_v14 = vld [vmem:[%s14337_s26 + $0x4b8] sm:$0x11]  ;;  %v6363_v18 = vrot.slane %v6347_v48, %v14007_v6 }
 0x24e   : > { %6241 = vmatprep.subr.bf16.mxu1 %v13507_v19  ;;  %v6356_v16 = vcombine.high %v6354_v13, %v6354_v13  ;;  %v13523_v19 = vld [vmem:[%s14337_s26 + $0x8] ss:$600 sps:$4 sm:$0xff]   ;;  %v12796_v33 = vcombine.low %v630_v14, %v630_v14 }
 0x253   : > { %6154 = vmatmul.mubr.bf16.vlgmr.msra.gmra.mrb[140].mxu0 %v1830_v21  ;;  %v12797_v21 = vcombine.high %v630_v14, %v630_v14 }
 0x254   : > { %6194 = vmatmul.mubr.bf16.vlgmr.msra.gmra.mrb[140].mxu1 %v1846_v25  ;;  %6202 = vmatpush1.bf16.xpose.msra.mxu0 %v13502_v26 }
 0x255   : > { %6242 = vmatpush1.bf16.xpose.msra.mxu1 %v13505_v27  ;;  %6203 = vmatprep.subr.bf16.mxu0 %v12639_v28 }
 0x256   : > { %6243 = vmatprep.subr.bf16.mxu1 %v12641_v29  ;;  %v5115_v31 = vpop.f32.mrb[88].mxu0  ;;  %6233 = vmatprep.mubr.bf16.mxu0 %v1886_v24  ;;  %v6384_v24 = vrot.slane %v6356_v16, %v14007_v6 }
 0x257   : > { %v5155_v32 = vpop.f32.mrb[88].mxu1  ;;  %6273 = vmatprep.mubr.bf16.mxu1 %v1895_v30  ;;  %v5116_v34 = vadd.f32 %v5115_v31, %v5076_v15  ;;  %v5117_v35 = vpop.f32.mrb[89].mxu0  ;;  %v631_v15 = vld [vmem:[%s14337_s26 + $0x4c0] sm:$0x11]  ;;  %v461_v30 = vld [vmem:[%s15436_s0 + $0x8] sm:$0xff] }
 0x258   : > { %v5157_v36 = vpop.f32.mrb[89].mxu1  ;;  %v5118_v38 = vpop.f32.mrb[90].mxu0  ;;  %v12799_v22 = vcombine.high %v631_v15, %v631_v15  ;;  %v6388_v50 = vcombine.high %v6384_v24, %v6384_v24 }
 0x259   : > { %v5158_v39 = vpop.f32.mrb[90].mxu1  ;;  %v5156_v42 = vadd.f32 %v5155_v32, %v5116_v34  ;;  %v5119_v43 = vpop.f32.mrb[91].mxu0  ;;  %v12798_v34 = vcombine.low %v631_v15, %v631_v15  ;;  %v13536_v38 = vld [vmem:[%s14337_s26 + $0x1c] ss:$600 sps:$4 sm:$0xff]  }
 0x25a   : > { %v5159_v44 = vpop.f32.mrb[91].mxu1  ;;  %v13539_v39 = vld [vmem:[%s14337_s26 + $0x24] ss:$600 sps:$4 sm:$0xff]  }
 0x25b   : > { %v6385_v44 = vcombine.high %v6363_v18, %v6363_v18 }
 0x25c   : > { %6204 = vmatpush1.bf16.xpose.msra.mxu0 %v12638_v40  ;;  %v6396_v40 = vrot.slane %v461_v30, %v14007_v6 }
 0x25d   : > { %6244 = vmatpush1.bf16.xpose.msra.mxu1 %v12640_v41  ;;  %6281 = vmatprep.subr.bf16.mxu0 %v13514_v45  ;;  %v632_v41 = vld [vmem:[%s14337_s26 + $0x4c8] sm:$0x11]  ;;  %v6370_v45 = vrot.slane %v6354_v13, %v14007_v6 }
 0x25e   : > { %8694 = vmatprep.subr.bf16.mxu1 %v13517_v46  ;;  %v6404_v43 = vcombine.high %v6396_v40, %v6396_v40  ;;  %v13534_v46 = vld [vmem:[%s14337_s26 + $0x18] ss:$600 sps:$4 sm:$0xff]   ;;  %v12801_v48 = vcombine.high %v632_v41, %v632_v41 }
 0x260   : > { %v6426_v51 = vrot.slane %v6404_v43, %v14007_v6 }
 0x262   : > { %v6436_v14 = vcombine.high %v6426_v51, %v6426_v51 }
 0x263   : > { %6234 = vmatmul.mubr.bf16.vlgmr.msra.gmra.mrb[144].mxu0 %v1872_v49 }
 0x264   : > { %6274 = vmatmul.mubr.bf16.vlgmr.msra.gmra.mrb[144].mxu1 %v1894_v54  ;;  %6282 = vmatpush1.bf16.xpose.msra.mxu0 %v13512_v55  ;;  %v6389_v54 = vcombine.high %v461_v30, %v461_v30  ;;  %v13560_v30 = vld [vmem:[%s14337_s26 + $0x44] ss:$600 sps:$4 sm:$0xff]  }
 0x265   : > { %8695 = vmatpush1.bf16.xpose.msra.mxu1 %v13515_v56  ;;  %6283 = vmatprep.subr.bf16.mxu0 %v12643_v57 }
 0x266   : > { %8696 = vmatprep.subr.bf16.mxu1 %v12795_v58  ;;  %v5195_v61 = vpop.f32.mrb[92].mxu0  ;;  %6313 = vmatprep.mubr.bf16.mxu0 %v1893_v59 }
 0x267   : > { %v5235_v62 = vpop.f32.mrb[92].mxu1  ;;  %8726 = vmatprep.mubr.bf16.mxu1 %v6377_v60  ;;  %v5196_v0 = vadd.f32 %v5195_v61, %v5156_v42  ;;  %v5197_v1 = vpop.f32.mrb[93].mxu0  ;;  %v633_v42 = vld [vmem:[%s14337_s26 + $0x4d0] sm:$0x11]  ;;  %v12800_v60 = vcombine.low %v632_v41, %v632_v41 }
 0x268   : > { %v5237_v2 = vpop.f32.mrb[93].mxu1  ;;  %v5198_v3 = vpop.f32.mrb[94].mxu0  ;;  %v12803_v49 = vcombine.high %v633_v42, %v633_v42  ;;  %v12802_v61 = vcombine.low %v633_v42, %v633_v42  ;;  %v13546_v1 = vld [vmem:[%s14337_s26 + $0x2c] ss:$600 sps:$4 sm:$0xff]  }
 0x269   : > { %v5238_v4 = vpop.f32.mrb[94].mxu1  ;;  %v5236_v8 = vadd.f32 %v5235_v62, %v5196_v0  ;;  %v5199_v9 = vpop.f32.mrb[95].mxu0  ;;  %v13549_v2 = vld [vmem:[%s14337_s26 + $0x34] ss:$600 sps:$4 sm:$0xff]   ;;  %v6403_v3 = vrot.slane %v6389_v54, %v14007_v6 }
 0x26a   : > { %v5239_v10 = vpop.f32.mrb[95].mxu1  ;;  %v634_v4 = vld [vmem:[%s14337_s26 + $0x4d8] sm:$0x11]  ;;  %v6412_v9 = vrot.slane %v6396_v40, %v14007_v6 }
 0x26b   : > { %v13544_v10 = vld [vmem:[%s14337_s26 + $0x28] ss:$600 sps:$4 sm:$0xff]  }
 0x26c   : > { %6284 = vmatpush1.bf16.xpose.msra.mxu0 %v12642_v5  ;;  %v635_v5 = vld [vmem:[%s14337_s26 + $0x4e0] sm:$0x11] }
 0x26d   : > { %8697 = vmatpush1.bf16.xpose.msra.mxu1 %v12794_v7  ;;  %8734 = vmatprep.subr.bf16.mxu0 %v13525_v11  ;;  %v6405_v7 = vcombine.high %v6403_v3, %v6403_v3  ;;  %v13547_v11 = vld [vmem:[%s14337_s26 + $0x30] ss:$600 sps:$4 sm:$0xff]   ;;  %v12807_v13 = vcombine.high %v635_v5, %v635_v5 }
 0x26e   : > { %8774 = vmatprep.subr.bf16.mxu1 %v13528_v12  ;;  %v12805_v12 = vcombine.high %v634_v4, %v634_v4 }
 0x26f   : > { %v6433_v15 = vrot.slane %v6405_v7, %v14007_v6 }
 0x271   : > { %v6437_v41 = vcombine.high %v6433_v15, %v6433_v15 }
 0x273   : > { %6314 = vmatmul.mubr.bf16.vlgmr.msra.gmra.mrb[148].mxu0 %v1879_v17 }
 0x274   : > { %8727 = vmatmul.mubr.bf16.vlgmr.msra.gmra.mrb[148].mxu1 %v6363_v18  ;;  %8735 = vmatpush1.bf16.xpose.msra.mxu0 %v13523_v19 }
 0x275   : > { %8775 = vmatpush1.bf16.xpose.msra.mxu1 %v13526_v20  ;;  %8736 = vmatprep.subr.bf16.mxu0 %v12797_v21  ;;  %v462_v21 = vld [vmem:[%s15436_s0 + $0x10] sm:$0xff] }
 0x276   : > { %8776 = vmatprep.subr.bf16.mxu1 %v12799_v22  ;;  %v5275_v25 = vpop.f32.mrb[96].mxu0  ;;  %8766 = vmatprep.mubr.bf16.mxu0 %v6387_v23 }
 0x277   : > { %v5315_v26 = vpop.f32.mrb[96].mxu1  ;;  %8806 = vmatprep.mubr.bf16.mxu1 %v6384_v24  ;;  %v5276_v27 = vadd.f32 %v5275_v25, %v5236_v8  ;;  %v5277_v28 = vpop.f32.mrb[97].mxu0  ;;  %v6386_v8 = vcombine.high %v6370_v45, %v6370_v45  ;;  %v12804_v24 = vcombine.low %v634_v4, %v634_v4  ;;  %v12806_v25 = vcombine.low %v635_v5, %v635_v5 }
 0x278   : > { %v5317_v29 = vpop.f32.mrb[97].mxu1  ;;  %v5278_v31 = vpop.f32.mrb[98].mxu0 }
 0x279   : > { %v5318_v32 = vpop.f32.mrb[98].mxu1  ;;  %v5316_v35 = vadd.f32 %v5315_v26, %v5276_v27  ;;  %v5279_v36 = vpop.f32.mrb[99].mxu0  ;;  %v13557_v29 = vld [vmem:[%s14337_s26 + $0x3c] ss:$600 sps:$4 sm:$0xff]   ;;  %v6445_v31 = vrot.slane %v462_v21, %v14007_v6 }
 0x27a   : > { %v5319_v37 = vpop.f32.mrb[99].mxu1  ;;  %v636_v32 = vld [vmem:[%s14337_s26 + $0x4e8] sm:$0x11]  ;;  %v6419_v36 = vrot.slane %v6403_v3, %v14007_v6 }
 0x27b   : > { %v13555_v37 = vld [vmem:[%s14337_s26 + $0x38] ss:$600 sps:$4 sm:$0xff]  }
 0x27c   : > { %8737 = vmatpush1.bf16.xpose.msra.mxu0 %v12796_v33  ;;  %v637_v33 = vld [vmem:[%s14337_s26 + $0x4f0] sm:$0x11] }
 0x27d   : > { %8777 = vmatpush1.bf16.xpose.msra.mxu1 %v12798_v34  ;;  %8814 = vmatprep.subr.bf16.mxu0 %v13536_v38  ;;  %v6453_v34 = vcombine.high %v6445_v31, %v6445_v31  ;;  %v13558_v38 = vld [vmem:[%s14337_s26 + $0x40] ss:$600 sps:$4 sm:$0xff]   ;;  %v12811_v40 = vcombine.high %v637_v33, %v637_v33 }
 0x27e   : > { %8854 = vmatprep.subr.bf16.mxu1 %v13539_v39  ;;  %v12809_v39 = vcombine.high %v636_v32, %v636_v32 }
 0x27f   : > { %v6475_v42 = vrot.slane %v6453_v34, %v14007_v6 }
 0x281   : > { %v6485_v4 = vcombine.high %v6475_v42, %v6475_v42 }
 0x283   : > { %8767 = vmatmul.mubr.bf16.vlgmr.msra.gmra.mrb[152].mxu0 %v6385_v44 }
 0x284   : > { %8807 = vmatmul.mubr.bf16.vlgmr.msra.gmra.mrb[152].mxu1 %v6370_v45  ;;  %8815 = vmatpush1.bf16.xpose.msra.mxu0 %v13534_v46  ;;  %v6438_v45 = vcombine.high %v462_v21, %v462_v21  ;;  %v13581_v21 = vld [vmem:[%s14337_s26 + $0x64] ss:$600 sps:$4 sm:$0xff]  }
 0x285   : > { %8855 = vmatpush1.bf16.xpose.msra.mxu1 %v13537_v47  ;;  %8816 = vmatprep.subr.bf16.mxu0 %v12801_v48 }
 0x286   : > { %8856 = vmatprep.subr.bf16.mxu1 %v12803_v49  ;;  %v5355_v52 = vpop.f32.mrb[100].mxu0  ;;  %8846 = vmatprep.mubr.bf16.mxu0 %v6388_v50 }
 0x287   : > { %v5395_v53 = vpop.f32.mrb[100].mxu1  ;;  %8886 = vmatprep.mubr.bf16.mxu1 %v6426_v51  ;;  %v5356_v55 = vadd.f32 %v5355_v52, %v5316_v35  ;;  %v5357_v56 = vpop.f32.mrb[101].mxu0  ;;  %v6434_v35 = vcombine.high %v6412_v9, %v6412_v9  ;;  %v12808_v51 = vcombine.low %v636_v32, %v636_v32  ;;  %v12810_v52 = vcombine.low %v637_v33, %v637_v33 }
 0x288   : > { %v5397_v57 = vpop.f32.mrb[101].mxu1  ;;  %v5358_v58 = vpop.f32.mrb[102].mxu0  ;;  %v13567_v56 = vld [vmem:[%s14337_s26 + $0x4c] ss:$600 sps:$4 sm:$0xff]  }
 0x289   : > { %v5398_v59 = vpop.f32.mrb[102].mxu1  ;;  %v5396_v62 = vadd.f32 %v5395_v53, %v5356_v55  ;;  %v5359_v63 = vpop.f32.mrb[103].mxu0  ;;  %v13570_v57 = vld [vmem:[%s14337_s26 + $0x54] ss:$600 sps:$4 sm:$0xff]   ;;  %v6452_v58 = vrot.slane %v6438_v45, %v14007_v6 }
 0x28a   : > { %v5399_v0 = vpop.f32.mrb[103].mxu1  ;;  %v638_v59 = vld [vmem:[%s14337_s26 + $0x4f8] sm:$0x11]  ;;  %v6461_v63 = vrot.slane %v6445_v31, %v14007_v6 }
 0x28b   : > { %v13565_v0 = vld [vmem:[%s14337_s26 + $0x48] ss:$600 sps:$4 sm:$0xff]  }
 0x28c   : > { %8817 = vmatpush1.bf16.xpose.msra.mxu0 %v12800_v60  ;;  %v639_v60 = vld [vmem:[%s14337_s26 + $0x500] sm:$0x11] }
 0x28d   : > { %8857 = vmatpush1.bf16.xpose.msra.mxu1 %v12802_v61  ;;  %8894 = vmatprep.subr.bf16.mxu0 %v13546_v1  ;;  %v6454_v61 = vcombine.high %v6452_v58, %v6452_v58  ;;  %v13568_v1 = vld [vmem:[%s14337_s26 + $0x50] ss:$600 sps:$4 sm:$0xff]   ;;  %v12815_v3 = vcombine.high %v639_v60, %v639_v60 }
 0x28e   : > { %8934 = vmatprep.subr.bf16.mxu1 %v13549_v2  ;;  %v12813_v2 = vcombine.high %v638_v59, %v638_v59 }
 0x28f   : > { %v6482_v5 = vrot.slane %v6454_v61, %v14007_v6 }
 0x291   : > { %v6486_v32 = vcombine.high %v6482_v5, %v6482_v5 }
 0x293   : > { %8847 = vmatmul.mubr.bf16.vlgmr.msra.gmra.mrb[156].mxu0 %v6386_v8 }
 0x294   : > { %8887 = vmatmul.mubr.bf16.vlgmr.msra.gmra.mrb[156].mxu1 %v6412_v9  ;;  %8895 = vmatpush1.bf16.xpose.msra.mxu0 %v13544_v10 }
 0x295   : > { %8935 = vmatpush1.bf16.xpose.msra.mxu1 %v13547_v11  ;;  %8896 = vmatprep.subr.bf16.mxu0 %v12805_v12  ;;  %v463_v12 = vld [vmem:[%s15436_s0 + $0x18] sm:$0xff] }
 0x296   : > { %8936 = vmatprep.subr.bf16.mxu1 %v12807_v13  ;;  %v5435_v16 = vpop.f32.mrb[104].mxu0  ;;  %8926 = vmatprep.mubr.bf16.mxu0 %v6436_v14 }
 0x297   : > { %v5475_v17 = vpop.f32.mrb[104].mxu1  ;;  %8966 = vmatprep.mubr.bf16.mxu1 %v6433_v15  ;;  %v5436_v18 = vadd.f32 %v5435_v16, %v5396_v62  ;;  %v5437_v19 = vpop.f32.mrb[105].mxu0  ;;  %v6435_v62 = vcombine.high %v6419_v36, %v6419_v36  ;;  %v12812_v15 = vcombine.low %v638_v59, %v638_v59  ;;  %v12814_v16 = vcombine.low %v639_v60, %v639_v60 }
 0x298   : > { %v5477_v20 = vpop.f32.mrb[105].mxu1  ;;  %v5438_v22 = vpop.f32.mrb[106].mxu0 }
 0x299   : > { %v5478_v23 = vpop.f32.mrb[106].mxu1  ;;  %v5476_v26 = vadd.f32 %v5475_v17, %v5436_v18  ;;  %v5439_v27 = vpop.f32.mrb[107].mxu0  ;;  %v13578_v20 = vld [vmem:[%s14337_s26 + $0x5c] ss:$600 sps:$4 sm:$0xff]   ;;  %v6494_v22 = vrot.slane %v463_v12, %v14007_v6 }
 0x29a   : > { %v5479_v28 = vpop.f32.mrb[107].mxu1  ;;  %v640_v23 = vld [vmem:[%s14337_s26 + $0x508] sm:$0x11]  ;;  %v6468_v27 = vrot.slane %v6452_v58, %v14007_v6 }
 0x29b   : > { %v13576_v28 = vld [vmem:[%s14337_s26 + $0x58] ss:$600 sps:$4 sm:$0xff]  }
 0x29c   : > { %8897 = vmatpush1.bf16.xpose.msra.mxu0 %v12804_v24  ;;  %v641_v24 = vld [vmem:[%s14337_s26 + $0x510] sm:$0x11] }
 0x29d   : > { %8937 = vmatpush1.bf16.xpose.msra.mxu1 %v12806_v25  ;;  %8974 = vmatprep.subr.bf16.mxu0 %v13557_v29  ;;  %v6502_v25 = vcombine.high %v6494_v22, %v6494_v22  ;;  %v13579_v29 = vld [vmem:[%s14337_s26 + $0x60] ss:$600 sps:$4 sm:$0xff]   ;;  %v12819_v31 = vcombine.high %v641_v24, %v641_v24 }
 0x29e   : > { %9014 = vmatprep.subr.bf16.mxu1 %v13560_v30  ;;  %v12817_v30 = vcombine.high %v640_v23, %v640_v23 }
 0x29f   : > { %v6524_v33 = vrot.slane %v6502_v25, %v14007_v6 }
 0x2a1   : > { %v6534_v59 = vcombine.high %v6524_v33, %v6524_v33 }
 0x2a3   : > { %8927 = vmatmul.mubr.bf16.vlgmr.msra.gmra.mrb[160].mxu0 %v6434_v35 }
 0x2a4   : > { %8967 = vmatmul.mubr.bf16.vlgmr.msra.gmra.mrb[160].mxu1 %v6419_v36  ;;  %8975 = vmatpush1.bf16.xpose.msra.mxu0 %v13555_v37  ;;  %v6487_v36 = vcombine.high %v463_v12, %v463_v12  ;;  %v13602_v12 = vld [vmem:[%s14337_s26 + $0x84] ss:$600 sps:$4 sm:$0xff]  }
 0x2a5   : > { %9015 = vmatpush1.bf16.xpose.msra.mxu1 %v13558_v38  ;;  %8976 = vmatprep.subr.bf16.mxu0 %v12809_v39 }
 0x2a6   : > { %9016 = vmatprep.subr.bf16.mxu1 %v12811_v40  ;;  %v5515_v43 = vpop.f32.mrb[108].mxu0  ;;  %9006 = vmatprep.mubr.bf16.mxu0 %v6437_v41 }
 0x2a7   : > { %v5555_v44 = vpop.f32.mrb[108].mxu1  ;;  %9046 = vmatprep.mubr.bf16.mxu1 %v6475_v42  ;;  %v5516_v46 = vadd.f32 %v5515_v43, %v5476_v26  ;;  %v5517_v47 = vpop.f32.mrb[109].mxu0  ;;  %v6483_v26 = vcombine.high %v6461_v63, %v6461_v63  ;;  %v12816_v42 = vcombine.low %v640_v23, %v640_v23  ;;  %v12818_v43 = vcombine.low %v641_v24, %v641_v24 }
 0x2a8   : > { %v5557_v48 = vpop.f32.mrb[109].mxu1  ;;  %v5518_v49 = vpop.f32.mrb[110].mxu0  ;;  %v13588_v47 = vld [vmem:[%s14337_s26 + $0x6c] ss:$600 sps:$4 sm:$0xff]  }
 0x2a9   : > { %v5558_v50 = vpop.f32.mrb[110].mxu1  ;;  %v5556_v53 = vadd.f32 %v5555_v44, %v5516_v46  ;;  %v5519_v54 = vpop.f32.mrb[111].mxu0  ;;  %v13591_v48 = vld [vmem:[%s14337_s26 + $0x74] ss:$600 sps:$4 sm:$0xff]   ;;  %v6501_v49 = vrot.slane %v6487_v36, %v14007_v6 }
 0x2aa   : > { %v5559_v55 = vpop.f32.mrb[111].mxu1  ;;  %v642_v50 = vld [vmem:[%s14337_s26 + $0x518] sm:$0x11]  ;;  %v6510_v54 = vrot.slane %v6494_v22, %v14007_v6 }
 0x2ab   : > { %v13586_v55 = vld [vmem:[%s14337_s26 + $0x68] ss:$600 sps:$4 sm:$0xff]  }
 0x2ac   : > { %8977 = vmatpush1.bf16.xpose.msra.mxu0 %v12808_v51  ;;  %v643_v51 = vld [vmem:[%s14337_s26 + $0x520] sm:$0x11] }
 0x2ad   : > { %9017 = vmatpush1.bf16.xpose.msra.mxu1 %v12810_v52  ;;  %9054 = vmatprep.subr.bf16.mxu0 %v13567_v56  ;;  %v6503_v52 = vcombine.high %v6501_v49, %v6501_v49  ;;  %v13589_v56 = vld [vmem:[%s14337_s26 + $0x70] ss:$600 sps:$4 sm:$0xff]   ;;  %v12823_v58 = vcombine.high %v643_v51, %v643_v51 }
 0x2ae   : > { %9094 = vmatprep.subr.bf16.mxu1 %v13570_v57  ;;  %v12821_v57 = vcombine.high %v642_v50, %v642_v50 }
 0x2af   : > { %v6531_v60 = vrot.slane %v6503_v52, %v14007_v6 }
 0x2b1   : > { %v6535_v23 = vcombine.high %v6531_v60, %v6531_v60 }
 0x2b3   : > { %9007 = vmatmul.mubr.bf16.vlgmr.msra.gmra.mrb[164].mxu0 %v6435_v62 }
 0x2b4   : > { %9047 = vmatmul.mubr.bf16.vlgmr.msra.gmra.mrb[164].mxu1 %v6461_v63  ;;  %9055 = vmatpush1.bf16.xpose.msra.mxu0 %v13565_v0 }
 0x2b5   : > { %9095 = vmatpush1.bf16.xpose.msra.mxu1 %v13568_v1  ;;  %9056 = vmatprep.subr.bf16.mxu0 %v12813_v2  ;;  %v464_v2 = vld [vmem:[%s15436_s0 + $0x20] sm:$0xff] }
 0x2b6   : > { %9096 = vmatprep.subr.bf16.mxu1 %v12815_v3  ;;  %v5595_v7 = vpop.f32.mrb[112].mxu0  ;;  %9086 = vmatprep.mubr.bf16.mxu0 %v6485_v4 }
 0x2b7   : > { %v5635_v8 = vpop.f32.mrb[112].mxu1  ;;  %9126 = vmatprep.mubr.bf16.mxu1 %v6482_v5  ;;  %v5596_v9 = vadd.f32 %v5595_v7, %v5556_v53  ;;  %v5597_v10 = vpop.f32.mrb[113].mxu0  ;;  %v6484_v53 = vcombine.high %v6468_v27, %v6468_v27  ;;  %v12820_v5 = vcombine.low %v642_v50, %v642_v50  ;;  %v12822_v7 = vcombine.low %v643_v51, %v643_v51 }
 0x2b8   : > { %v5637_v11 = vpop.f32.mrb[113].mxu1  ;;  %v5598_v13 = vpop.f32.mrb[114].mxu0 }
 0x2b9   : > { %v5638_v14 = vpop.f32.mrb[114].mxu1  ;;  %v5636_v17 = vadd.f32 %v5635_v8, %v5596_v9  ;;  %v5599_v18 = vpop.f32.mrb[115].mxu0  ;;  %v13599_v11 = vld [vmem:[%s14337_s26 + $0x7c] ss:$600 sps:$4 sm:$0xff]   ;;  %v6543_v13 = vrot.slane %v464_v2, %v14007_v6 }
 0x2ba   : > { %v5639_v19 = vpop.f32.mrb[115].mxu1  ;;  %v644_v14 = vld [vmem:[%s14337_s26 + $0x528] sm:$0x11]  ;;  %v6517_v18 = vrot.slane %v6501_v49, %v14007_v6 }
 0x2bb   : > { %v13597_v19 = vld [vmem:[%s14337_s26 + $0x78] ss:$600 sps:$4 sm:$0xff]  }
 0x2bc   : > { %9057 = vmatpush1.bf16.xpose.msra.mxu0 %v12812_v15  ;;  %v645_v15 = vld [vmem:[%s14337_s26 + $0x530] sm:$0x11] }
 0x2bd   : > { %9097 = vmatpush1.bf16.xpose.msra.mxu1 %v12814_v16  ;;  %9134 = vmatprep.subr.bf16.mxu0 %v13578_v20  ;;  %v6551_v16 = vcombine.high %v6543_v13, %v6543_v13  ;;  %v13600_v20 = vld [vmem:[%s14337_s26 + $0x80] ss:$600 sps:$4 sm:$0xff]   ;;  %v12827_v22 = vcombine.high %v645_v15, %v645_v15 }
 0x2be   : > { %9174 = vmatprep.subr.bf16.mxu1 %v13581_v21  ;;  %v12825_v21 = vcombine.high %v644_v14, %v644_v14 }
 0x2bf   : > { %v6573_v24 = vrot.slane %v6551_v16, %v14007_v6 }
 0x2c1   : > { %v6583_v50 = vcombine.high %v6573_v24, %v6573_v24 }
 0x2c3   : > { %9087 = vmatmul.mubr.bf16.vlgmr.msra.gmra.mrb[168].mxu0 %v6483_v26 }
 0x2c4   : > { %9127 = vmatmul.mubr.bf16.vlgmr.msra.gmra.mrb[168].mxu1 %v6468_v27  ;;  %9135 = vmatpush1.bf16.xpose.msra.mxu0 %v13576_v28  ;;  %v6536_v27 = vcombine.high %v464_v2, %v464_v2  ;;  %v13623_v2 = vld [vmem:[%s14337_s26 + $0xa4] ss:$600 sps:$4 sm:$0xff]  }
 0x2c5   : > { %9175 = vmatpush1.bf16.xpose.msra.mxu1 %v13579_v29  ;;  %9136 = vmatprep.subr.bf16.mxu0 %v12817_v30 }
 0x2c6   : > { %9176 = vmatprep.subr.bf16.mxu1 %v12819_v31  ;;  %v5675_v34 = vpop.f32.mrb[116].mxu0  ;;  %9166 = vmatprep.mubr.bf16.mxu0 %v6486_v32 }
 0x2c7   : > { %v5715_v35 = vpop.f32.mrb[116].mxu1  ;;  %9206 = vmatprep.mubr.bf16.mxu1 %v6524_v33  ;;  %v5676_v37 = vadd.f32 %v5675_v34, %v5636_v17  ;;  %v5677_v38 = vpop.f32.mrb[117].mxu0  ;;  %v6532_v17 = vcombine.high %v6510_v54, %v6510_v54  ;;  %v12824_v33 = vcombine.low %v644_v14, %v644_v14  ;;  %v12826_v34 = vcombine.low %v645_v15, %v645_v15 }
 0x2c8   : > { %v5717_v39 = vpop.f32.mrb[117].mxu1  ;;  %v5678_v40 = vpop.f32.mrb[118].mxu0  ;;  %v13609_v38 = vld [vmem:[%s14337_s26 + $0x8c] ss:$600 sps:$4 sm:$0xff]  }
 0x2c9   : > { %v5718_v41 = vpop.f32.mrb[118].mxu1  ;;  %v5716_v44 = vadd.f32 %v5715_v35, %v5676_v37  ;;  %v5679_v45 = vpop.f32.mrb[119].mxu0  ;;  %v13612_v39 = vld [vmem:[%s14337_s26 + $0x94] ss:$600 sps:$4 sm:$0xff]   ;;  %v6550_v40 = vrot.slane %v6536_v27, %v14007_v6 }
 0x2ca   : > { %v5719_v46 = vpop.f32.mrb[119].mxu1  ;;  %v646_v41 = vld [vmem:[%s14337_s26 + $0x538] sm:$0x11]  ;;  %v6559_v45 = vrot.slane %v6543_v13, %v14007_v6 }
 0x2cb   : > { %v13607_v46 = vld [vmem:[%s14337_s26 + $0x88] ss:$600 sps:$4 sm:$0xff]  }
 0x2cc   : > { %9137 = vmatpush1.bf16.xpose.msra.mxu0 %v12816_v42  ;;  %v647_v42 = vld [vmem:[%s14337_s26 + $0x540] sm:$0x11] }
 0x2cd   : > { %9177 = vmatpush1.bf16.xpose.msra.mxu1 %v12818_v43  ;;  %9214 = vmatprep.subr.bf16.mxu0 %v13588_v47  ;;  %v6552_v43 = vcombine.high %v6550_v40, %v6550_v40  ;;  %v13610_v47 = vld [vmem:[%s14337_s26 + $0x90] ss:$600 sps:$4 sm:$0xff]   ;;  %v12831_v49 = vcombine.high %v647_v42, %v647_v42 }
 0x2ce   : > { %9254 = vmatprep.subr.bf16.mxu1 %v13591_v48  ;;  %v12829_v48 = vcombine.high %v646_v41, %v646_v41 }
 0x2cf   : > { %v6580_v51 = vrot.slane %v6552_v43, %v14007_v6 }
 0x2d1   : > { %v6584_v14 = vcombine.high %v6580_v51, %v6580_v51 }
 0x2d3   : > { %9167 = vmatmul.mubr.bf16.vlgmr.msra.gmra.mrb[172].mxu0 %v6484_v53 }
 0x2d4   : > { %9207 = vmatmul.mubr.bf16.vlgmr.msra.gmra.mrb[172].mxu1 %v6510_v54  ;;  %9215 = vmatpush1.bf16.xpose.msra.mxu0 %v13586_v55 }
 0x2d5   : > { %9255 = vmatpush1.bf16.xpose.msra.mxu1 %v13589_v56  ;;  %9216 = vmatprep.subr.bf16.mxu0 %v12821_v57  ;;  %v465_v57 = vld [vmem:[%s15436_s0 + $0x28] sm:$0xff] }
 0x2d6   : > { %9256 = vmatprep.subr.bf16.mxu1 %v12823_v58  ;;  %v5755_v61 = vpop.f32.mrb[120].mxu0  ;;  %9246 = vmatprep.mubr.bf16.mxu0 %v6534_v59 }
 0x2d7   : > { %v5795_v62 = vpop.f32.mrb[120].mxu1  ;;  %9286 = vmatprep.mubr.bf16.mxu1 %v6531_v60  ;;  %v5756_v63 = vadd.f32 %v5755_v61, %v5716_v44  ;;  %v5757_v0 = vpop.f32.mrb[121].mxu0  ;;  %v6533_v44 = vcombine.high %v6517_v18, %v6517_v18  ;;  %v12828_v60 = vcombine.low %v646_v41, %v646_v41  ;;  %v12830_v61 = vcombine.low %v647_v42, %v647_v42 }
 0x2d8   : > { %v5797_v1 = vpop.f32.mrb[121].mxu1  ;;  %v5758_v3 = vpop.f32.mrb[122].mxu0 }
 0x2d9   : > { %v5798_v4 = vpop.f32.mrb[122].mxu1  ;;  %v5796_v8 = vadd.f32 %v5795_v62, %v5756_v63  ;;  %v5759_v9 = vpop.f32.mrb[123].mxu0  ;;  %v13620_v1 = vld [vmem:[%s14337_s26 + $0x9c] ss:$600 sps:$4 sm:$0xff]   ;;  %v6592_v3 = vrot.slane %v465_v57, %v14007_v6 }
 0x2da   : > { %v5799_v10 = vpop.f32.mrb[123].mxu1  ;;  %v648_v4 = vld [vmem:[%s14337_s26 + $0x548] sm:$0x11]  ;;  %v6566_v9 = vrot.slane %v6550_v40, %v14007_v6 }
 0x2db   : > { %v13618_v10 = vld [vmem:[%s14337_s26 + $0x98] ss:$600 sps:$4 sm:$0xff]  }
 0x2dc   : > { %9217 = vmatpush1.bf16.xpose.msra.mxu0 %v12820_v5  ;;  %v649_v5 = vld [vmem:[%s14337_s26 + $0x550] sm:$0x11] }
 0x2dd   : > { %9257 = vmatpush1.bf16.xpose.msra.mxu1 %v12822_v7  ;;  %9294 = vmatprep.subr.bf16.mxu0 %v13599_v11  ;;  %v6600_v7 = vcombine.high %v6592_v3, %v6592_v3  ;;  %v13621_v11 = vld [vmem:[%s14337_s26 + $0xa0] ss:$600 sps:$4 sm:$0xff]   ;;  %v12835_v13 = vcombine.high %v649_v5, %v649_v5 }
 0x2de   : > { %9334 = vmatprep.subr.bf16.mxu1 %v13602_v12  ;;  %v12833_v12 = vcombine.high %v648_v4, %v648_v4 }
 0x2df   : > { %v6622_v15 = vrot.slane %v6600_v7, %v14007_v6 }
 0x2e1   : > { %v6632_v41 = vcombine.high %v6622_v15, %v6622_v15 }
 0x2e3   : > { %9247 = vmatmul.mubr.bf16.vlgmr.msra.gmra.mrb[176].mxu0 %v6532_v17 }
 0x2e4   : > { %9287 = vmatmul.mubr.bf16.vlgmr.msra.gmra.mrb[176].mxu1 %v6517_v18  ;;  %9295 = vmatpush1.bf16.xpose.msra.mxu0 %v13597_v19  ;;  %v6585_v18 = vcombine.high %v465_v57, %v465_v57  ;;  %v13644_v57 = vld [vmem:[%s14337_s26 + $0xc4] ss:$600 sps:$4 sm:$0xff]  }
 0x2e5   : > { %9335 = vmatpush1.bf16.xpose.msra.mxu1 %v13600_v20  ;;  %9296 = vmatprep.subr.bf16.mxu0 %v12825_v21 }
 0x2e6   : > { %9336 = vmatprep.subr.bf16.mxu1 %v12827_v22  ;;  %v5835_v25 = vpop.f32.mrb[124].mxu0  ;;  %9326 = vmatprep.mubr.bf16.mxu0 %v6535_v23 }
 0x2e7   : > { %v5875_v26 = vpop.f32.mrb[124].mxu1  ;;  %9366 = vmatprep.mubr.bf16.mxu1 %v6573_v24  ;;  %v5836_v28 = vadd.f32 %v5835_v25, %v5796_v8  ;;  %v5837_v29 = vpop.f32.mrb[125].mxu0  ;;  %v6581_v8 = vcombine.high %v6559_v45, %v6559_v45  ;;  %v12832_v24 = vcombine.low %v648_v4, %v648_v4  ;;  %v12834_v25 = vcombine.low %v649_v5, %v649_v5 }
 0x2e8   : > { %v5877_v30 = vpop.f32.mrb[125].mxu1  ;;  %v5838_v31 = vpop.f32.mrb[126].mxu0  ;;  %v13630_v29 = vld [vmem:[%s14337_s26 + $0xac] ss:$600 sps:$4 sm:$0xff]  }
 0x2e9   : > { %v5878_v32 = vpop.f32.mrb[126].mxu1  ;;  %v5876_v35 = vadd.f32 %v5875_v26, %v5836_v28  ;;  %v5839_v36 = vpop.f32.mrb[127].mxu0  ;;  %v13633_v30 = vld [vmem:[%s14337_s26 + $0xb4] ss:$600 sps:$4 sm:$0xff]   ;;  %v6599_v31 = vrot.slane %v6585_v18, %v14007_v6 }
 0x2ea   : > { %v5879_v37 = vpop.f32.mrb[127].mxu1  ;;  %v650_v32 = vld [vmem:[%s14337_s26 + $0x558] sm:$0x11]  ;;  %v6608_v36 = vrot.slane %v6592_v3, %v14007_v6 }
 0x2eb   : > { %v13628_v37 = vld [vmem:[%s14337_s26 + $0xa8] ss:$600 sps:$4 sm:$0xff]  }
 0x2ec   : > { %9297 = vmatpush1.bf16.xpose.msra.mxu0 %v12824_v33  ;;  %v651_v33 = vld [vmem:[%s14337_s26 + $0x560] sm:$0x11] }
 0x2ed   : > { %9337 = vmatpush1.bf16.xpose.msra.mxu1 %v12826_v34  ;;  %9374 = vmatprep.subr.bf16.mxu0 %v13609_v38  ;;  %v6601_v34 = vcombine.high %v6599_v31, %v6599_v31  ;;  %v13631_v38 = vld [vmem:[%s14337_s26 + $0xb0] ss:$600 sps:$4 sm:$0xff]   ;;  %v12839_v40 = vcombine.high %v651_v33, %v651_v33 }
 0x2ee   : > { %9414 = vmatprep.subr.bf16.mxu1 %v13612_v39  ;;  %v12837_v39 = vcombine.high %v650_v32, %v650_v32 }
 0x2ef   : > { %v6629_v42 = vrot.slane %v6601_v34, %v14007_v6 }
 0x2f1   : > { %v6633_v4 = vcombine.high %v6629_v42, %v6629_v42 }
 0x2f3   : > { %9327 = vmatmul.mubr.bf16.vlgmr.msra.gmra.mrb[180].mxu0 %v6533_v44 }
 0x2f4   : > { %9367 = vmatmul.mubr.bf16.vlgmr.msra.gmra.mrb[180].mxu1 %v6559_v45  ;;  %9375 = vmatpush1.bf16.xpose.msra.mxu0 %v13607_v46 }
 0x2f5   : > { %9415 = vmatpush1.bf16.xpose.msra.mxu1 %v13610_v47  ;;  %9376 = vmatprep.subr.bf16.mxu0 %v12829_v48  ;;  %v466_v48 = vld [vmem:[%s15436_s0 + $0x30] sm:$0xff] }
 0x2f6   : > { %9416 = vmatprep.subr.bf16.mxu1 %v12831_v49  ;;  %v5915_v52 = vpop.f32.mrb[128].mxu0  ;;  %9406 = vmatprep.mubr.bf16.mxu0 %v6583_v50 }
 0x2f7   : > { %v5955_v53 = vpop.f32.mrb[128].mxu1  ;;  %9446 = vmatprep.mubr.bf16.mxu1 %v6580_v51  ;;  %v5916_v54 = vadd.f32 %v5915_v52, %v5876_v35  ;;  %v5917_v55 = vpop.f32.mrb[129].mxu0  ;;  %v6582_v35 = vcombine.high %v6566_v9, %v6566_v9  ;;  %v12836_v51 = vcombine.low %v650_v32, %v650_v32  ;;  %v12838_v52 = vcombine.low %v651_v33, %v651_v33 }
 0x2f8   : > { %v5957_v56 = vpop.f32.mrb[129].mxu1  ;;  %v5918_v58 = vpop.f32.mrb[130].mxu0 }
 0x2f9   : > { %v5958_v59 = vpop.f32.mrb[130].mxu1  ;;  %v5956_v62 = vadd.f32 %v5955_v53, %v5916_v54  ;;  %v5919_v63 = vpop.f32.mrb[131].mxu0  ;;  %v13641_v56 = vld [vmem:[%s14337_s26 + $0xbc] ss:$600 sps:$4 sm:$0xff]   ;;  %v6641_v58 = vrot.slane %v466_v48, %v14007_v6 }
 0x2fa   : > { %v5959_v0 = vpop.f32.mrb[131].mxu1  ;;  %v652_v59 = vld [vmem:[%s14337_s26 + $0x568] sm:$0x11]  ;;  %v6615_v63 = vrot.slane %v6599_v31, %v14007_v6 }
 0x2fb   : > { %v13639_v0 = vld [vmem:[%s14337_s26 + $0xb8] ss:$600 sps:$4 sm:$0xff]  }
 0x2fc   : > { %9377 = vmatpush1.bf16.xpose.msra.mxu0 %v12828_v60  ;;  %v653_v60 = vld [vmem:[%s14337_s26 + $0x570] sm:$0x11] }
 0x2fd   : > { %9417 = vmatpush1.bf16.xpose.msra.mxu1 %v12830_v61  ;;  %9454 = vmatprep.subr.bf16.mxu0 %v13620_v1  ;;  %v6649_v61 = vcombine.high %v6641_v58, %v6641_v58  ;;  %v13642_v1 = vld [vmem:[%s14337_s26 + $0xc0] ss:$600 sps:$4 sm:$0xff]   ;;  %v12843_v3 = vcombine.high %v653_v60, %v653_v60 }
 0x2fe   : > { %9494 = vmatprep.subr.bf16.mxu1 %v13623_v2  ;;  %v12841_v2 = vcombine.high %v652_v59, %v652_v59 }
 0x2ff   : > { %v6671_v5 = vrot.slane %v6649_v61, %v14007_v6 }
 0x301   : > { %v6681_v32 = vcombine.high %v6671_v5, %v6671_v5 }
 0x303   : > { %9407 = vmatmul.mubr.bf16.vlgmr.msra.gmra.mrb[184].mxu0 %v6581_v8 }
 0x304   : > { %9447 = vmatmul.mubr.bf16.vlgmr.msra.gmra.mrb[184].mxu1 %v6566_v9  ;;  %9455 = vmatpush1.bf16.xpose.msra.mxu0 %v13618_v10  ;;  %v6634_v9 = vcombine.high %v466_v48, %v466_v48  ;;  %v13665_v48 = vld [vmem:[%s14337_s26 + $0xe4] ss:$600 sps:$4 sm:$0xff]  }
 0x305   : > { %9495 = vmatpush1.bf16.xpose.msra.mxu1 %v13621_v11  ;;  %9456 = vmatprep.subr.bf16.mxu0 %v12833_v12 }
 0x306   : > { %9496 = vmatprep.subr.bf16.mxu1 %v12835_v13  ;;  %v5995_v16 = vpop.f32.mrb[132].mxu0  ;;  %9486 = vmatprep.mubr.bf16.mxu0 %v6584_v14 }
 0x307   : > { %v6035_v17 = vpop.f32.mrb[132].mxu1  ;;  %9526 = vmatprep.mubr.bf16.mxu1 %v6622_v15  ;;  %v5996_v19 = vadd.f32 %v5995_v16, %v5956_v62  ;;  %v5997_v20 = vpop.f32.mrb[133].mxu0  ;;  %v6630_v62 = vcombine.high %v6608_v36, %v6608_v36  ;;  %v12840_v15 = vcombine.low %v652_v59, %v652_v59  ;;  %v12842_v16 = vcombine.low %v653_v60, %v653_v60 }
 0x308   : > { %v6037_v21 = vpop.f32.mrb[133].mxu1  ;;  %v5998_v22 = vpop.f32.mrb[134].mxu0  ;;  %v13651_v20 = vld [vmem:[%s14337_s26 + $0xcc] ss:$600 sps:$4 sm:$0xff]  }
 0x309   : > { %v6038_v23 = vpop.f32.mrb[134].mxu1  ;;  %v6036_v26 = vadd.f32 %v6035_v17, %v5996_v19  ;;  %v5999_v27 = vpop.f32.mrb[135].mxu0  ;;  %v13654_v21 = vld [vmem:[%s14337_s26 + $0xd4] ss:$600 sps:$4 sm:$0xff]   ;;  %v6648_v22 = vrot.slane %v6634_v9, %v14007_v6 }
 0x30a   : > { %v6039_v28 = vpop.f32.mrb[135].mxu1  ;;  %v654_v23 = vld [vmem:[%s14337_s26 + $0x578] sm:$0x11]  ;;  %v6657_v27 = vrot.slane %v6641_v58, %v14007_v6 }
 0x30b   : > { %v13649_v28 = vld [vmem:[%s14337_s26 + $0xc8] ss:$600 sps:$4 sm:$0xff]  }
 0x30c   : > { %9457 = vmatpush1.bf16.xpose.msra.mxu0 %v12832_v24  ;;  %v655_v24 = vld [vmem:[%s14337_s26 + $0x580] sm:$0x11] }
 0x30d   : > { %9497 = vmatpush1.bf16.xpose.msra.mxu1 %v12834_v25  ;;  %9534 = vmatprep.subr.bf16.mxu0 %v13630_v29  ;;  %v6650_v25 = vcombine.high %v6648_v22, %v6648_v22  ;;  %v13652_v29 = vld [vmem:[%s14337_s26 + $0xd0] ss:$600 sps:$4 sm:$0xff]   ;;  %v12847_v31 = vcombine.high %v655_v24, %v655_v24 }
 0x30e   : > { %9574 = vmatprep.subr.bf16.mxu1 %v13633_v30  ;;  %v12845_v30 = vcombine.high %v654_v23, %v654_v23 }
 0x30f   : > { %v6678_v33 = vrot.slane %v6650_v25, %v14007_v6 }
 0x311   : > { %v6682_v59 = vcombine.high %v6678_v33, %v6678_v33 }
 0x313   : > { %9487 = vmatmul.mubr.bf16.vlgmr.msra.gmra.mrb[188].mxu0 %v6582_v35 }
 0x314   : > { %9527 = vmatmul.mubr.bf16.vlgmr.msra.gmra.mrb[188].mxu1 %v6608_v36  ;;  %9535 = vmatpush1.bf16.xpose.msra.mxu0 %v13628_v37 }
 0x315   : > { %9575 = vmatpush1.bf16.xpose.msra.mxu1 %v13631_v38  ;;  %9536 = vmatprep.subr.bf16.mxu0 %v12837_v39  ;;  %v467_v39 = vld [vmem:[%s15436_s0 + $0x38] sm:$0xff] }
 0x316   : > { %9576 = vmatprep.subr.bf16.mxu1 %v12839_v40  ;;  %v6075_v43 = vpop.f32.mrb[136].mxu0  ;;  %9566 = vmatprep.mubr.bf16.mxu0 %v6632_v41 }
 0x317   : > { %v6115_v44 = vpop.f32.mrb[136].mxu1  ;;  %9606 = vmatprep.mubr.bf16.mxu1 %v6629_v42  ;;  %v6076_v45 = vadd.f32 %v6075_v43, %v6036_v26  ;;  %v6077_v46 = vpop.f32.mrb[137].mxu0  ;;  %v6631_v26 = vcombine.high %v6615_v63, %v6615_v63  ;;  %v12844_v42 = vcombine.low %v654_v23, %v654_v23  ;;  %v12846_v43 = vcombine.low %v655_v24, %v655_v24 }
 0x318   : > { %v6117_v47 = vpop.f32.mrb[137].mxu1  ;;  %v6078_v49 = vpop.f32.mrb[138].mxu0 }
 0x319   : > { %v6118_v50 = vpop.f32.mrb[138].mxu1  ;;  %v6116_v53 = vadd.f32 %v6115_v44, %v6076_v45  ;;  %v6079_v54 = vpop.f32.mrb[139].mxu0  ;;  %v13662_v47 = vld [vmem:[%s14337_s26 + $0xdc] ss:$600 sps:$4 sm:$0xff]   ;;  %v6690_v49 = vrot.slane %v467_v39, %v14007_v6 }
 0x31a   : > { %v6119_v55 = vpop.f32.mrb[139].mxu1  ;;  %v656_v50 = vld [vmem:[%s14337_s26 + $0x588] sm:$0x11]  ;;  %v6664_v54 = vrot.slane %v6648_v22, %v14007_v6 }
 0x31b   : > { %v13660_v55 = vld [vmem:[%s14337_s26 + $0xd8] ss:$600 sps:$4 sm:$0xff]  }
 0x31c   : > { %9537 = vmatpush1.bf16.xpose.msra.mxu0 %v12836_v51  ;;  %v657_v51 = vld [vmem:[%s14337_s26 + $0x590] sm:$0x11] }
 0x31d   : > { %9577 = vmatpush1.bf16.xpose.msra.mxu1 %v12838_v52  ;;  %9614 = vmatprep.subr.bf16.mxu0 %v13641_v56  ;;  %v6698_v52 = vcombine.high %v6690_v49, %v6690_v49  ;;  %v13663_v56 = vld [vmem:[%s14337_s26 + $0xe0] ss:$600 sps:$4 sm:$0xff]   ;;  %v12851_v58 = vcombine.high %v657_v51, %v657_v51 }
 0x31e   : > { %9654 = vmatprep.subr.bf16.mxu1 %v13644_v57  ;;  %v12849_v57 = vcombine.high %v656_v50, %v656_v50 }
 0x31f   : > { %v6720_v60 = vrot.slane %v6698_v52, %v14007_v6 }
 0x321   : > { %v6730_v23 = vcombine.high %v6720_v60, %v6720_v60 }
 0x323   : > { %9567 = vmatmul.mubr.bf16.vlgmr.msra.gmra.mrb[192].mxu0 %v6630_v62 }
 0x324   : > { %9607 = vmatmul.mubr.bf16.vlgmr.msra.gmra.mrb[192].mxu1 %v6615_v63  ;;  %9615 = vmatpush1.bf16.xpose.msra.mxu0 %v13639_v0  ;;  %v6683_v63 = vcombine.high %v467_v39, %v467_v39  ;;  %v13686_v39 = vld [vmem:[%s14337_s26 + $0x104] ss:$600 sps:$4 sm:$0xff]  }
 0x325   : > { %9655 = vmatpush1.bf16.xpose.msra.mxu1 %v13642_v1  ;;  %9616 = vmatprep.subr.bf16.mxu0 %v12841_v2 }
 0x326   : > { %9656 = vmatprep.subr.bf16.mxu1 %v12843_v3  ;;  %v6155_v7 = vpop.f32.mrb[140].mxu0  ;;  %9646 = vmatprep.mubr.bf16.mxu0 %v6633_v4 }
 0x327   : > { %v6195_v8 = vpop.f32.mrb[140].mxu1  ;;  %9686 = vmatprep.mubr.bf16.mxu1 %v6671_v5  ;;  %v6156_v10 = vadd.f32 %v6155_v7, %v6116_v53  ;;  %v6157_v11 = vpop.f32.mrb[141].mxu0  ;;  %v6679_v53 = vcombine.high %v6657_v27, %v6657_v27  ;;  %v12848_v5 = vcombine.low %v656_v50, %v656_v50  ;;  %v12850_v7 = vcombine.low %v657_v51, %v657_v51 }
 0x328   : > { %v6197_v12 = vpop.f32.mrb[141].mxu1  ;;  %v6158_v13 = vpop.f32.mrb[142].mxu0  ;;  %v13672_v11 = vld [vmem:[%s14337_s26 + $0xec] ss:$600 sps:$4 sm:$0xff]  }
 0x329   : > { %v6198_v14 = vpop.f32.mrb[142].mxu1  ;;  %v6196_v17 = vadd.f32 %v6195_v8, %v6156_v10  ;;  %v6159_v18 = vpop.f32.mrb[143].mxu0  ;;  %v13675_v12 = vld [vmem:[%s14337_s26 + $0xf4] ss:$600 sps:$4 sm:$0xff]   ;;  %v6697_v13 = vrot.slane %v6683_v63, %v14007_v6 }
 0x32a   : > { %v6199_v19 = vpop.f32.mrb[143].mxu1  ;;  %v658_v14 = vld [vmem:[%s14337_s26 + $0x598] sm:$0x11]  ;;  %v6706_v18 = vrot.slane %v6690_v49, %v14007_v6 }
 0x32b   : > { %v13670_v19 = vld [vmem:[%s14337_s26 + $0xe8] ss:$600 sps:$4 sm:$0xff]  }
 0x32c   : > { %9617 = vmatpush1.bf16.xpose.msra.mxu0 %v12840_v15  ;;  %v659_v15 = vld [vmem:[%s14337_s26 + $0x5a0] sm:$0x11] }
 0x32d   : > { %9657 = vmatpush1.bf16.xpose.msra.mxu1 %v12842_v16  ;;  %9694 = vmatprep.subr.bf16.mxu0 %v13651_v20  ;;  %v6699_v16 = vcombine.high %v6697_v13, %v6697_v13  ;;  %v13673_v20 = vld [vmem:[%s14337_s26 + $0xf0] ss:$600 sps:$4 sm:$0xff]   ;;  %v12855_v22 = vcombine.high %v659_v15, %v659_v15 }
 0x32e   : > { %9734 = vmatprep.subr.bf16.mxu1 %v13654_v21  ;;  %v12853_v21 = vcombine.high %v658_v14, %v658_v14 }
 0x32f   : > { %v6727_v24 = vrot.slane %v6699_v16, %v14007_v6 }
 0x331   : > { %v6731_v50 = vcombine.high %v6727_v24, %v6727_v24 }
 0x333   : > { %9647 = vmatmul.mubr.bf16.vlgmr.msra.gmra.mrb[196].mxu0 %v6631_v26 }
 0x334   : > { %9687 = vmatmul.mubr.bf16.vlgmr.msra.gmra.mrb[196].mxu1 %v6657_v27  ;;  %9695 = vmatpush1.bf16.xpose.msra.mxu0 %v13649_v28 }
 0x335   : > { %9735 = vmatpush1.bf16.xpose.msra.mxu1 %v13652_v29  ;;  %9696 = vmatprep.subr.bf16.mxu0 %v12845_v30  ;;  %v468_v30 = vld [vmem:[%s15436_s0 + $0x40] sm:$0xff] }
 0x336   : > { %9736 = vmatprep.subr.bf16.mxu1 %v12847_v31  ;;  %v6235_v34 = vpop.f32.mrb[144].mxu0  ;;  %9726 = vmatprep.mubr.bf16.mxu0 %v6681_v32 }
 0x337   : > { %v6275_v35 = vpop.f32.mrb[144].mxu1  ;;  %9766 = vmatprep.mubr.bf16.mxu1 %v6678_v33  ;;  %v6236_v36 = vadd.f32 %v6235_v34, %v6196_v17  ;;  %v6237_v37 = vpop.f32.mrb[145].mxu0  ;;  %v6680_v17 = vcombine.high %v6664_v54, %v6664_v54  ;;  %v12852_v33 = vcombine.low %v658_v14, %v658_v14  ;;  %v12854_v34 = vcombine.low %v659_v15, %v659_v15 }
 0x338   : > { %v6277_v38 = vpop.f32.mrb[145].mxu1  ;;  %v6238_v40 = vpop.f32.mrb[146].mxu0 }
 0x339   : > { %v6278_v41 = vpop.f32.mrb[146].mxu1  ;;  %v6276_v44 = vadd.f32 %v6275_v35, %v6236_v36  ;;  %v6239_v45 = vpop.f32.mrb[147].mxu0  ;;  %v13683_v38 = vld [vmem:[%s14337_s26 + $0xfc] ss:$600 sps:$4 sm:$0xff]   ;;  %v6739_v40 = vrot.slane %v468_v30, %v14007_v6 }
 0x33a   : > { %v6279_v46 = vpop.f32.mrb[147].mxu1  ;;  %v660_v41 = vld [vmem:[%s14337_s26 + $0x5a8] sm:$0x11]  ;;  %v6713_v45 = vrot.slane %v6697_v13, %v14007_v6 }
 0x33b   : > { %v13681_v46 = vld [vmem:[%s14337_s26 + $0xf8] ss:$600 sps:$4 sm:$0xff]  }
 0x33c   : > { %9697 = vmatpush1.bf16.xpose.msra.mxu0 %v12844_v42  ;;  %v661_v42 = vld [vmem:[%s14337_s26 + $0x5b0] sm:$0x11] }
 0x33d   : > { %9737 = vmatpush1.bf16.xpose.msra.mxu1 %v12846_v43  ;;  %9774 = vmatprep.subr.bf16.mxu0 %v13662_v47  ;;  %v6747_v43 = vcombine.high %v6739_v40, %v6739_v40  ;;  %v13684_v47 = vld [vmem:[%s14337_s26 + $0x100] ss:$600 sps:$4 sm:$0xff]   ;;  %v12859_v49 = vcombine.high %v661_v42, %v661_v42 }
 0x33e   : > { %9814 = vmatprep.subr.bf16.mxu1 %v13665_v48  ;;  %v12857_v48 = vcombine.high %v660_v41, %v660_v41 }
 0x33f   : > { %v6769_v51 = vrot.slane %v6747_v43, %v14007_v6 }
 0x341   : > { %v6779_v14 = vcombine.high %v6769_v51, %v6769_v51 }
 0x343   : > { %9727 = vmatmul.mubr.bf16.vlgmr.msra.gmra.mrb[200].mxu0 %v6679_v53 }
 0x344   : > { %9767 = vmatmul.mubr.bf16.vlgmr.msra.gmra.mrb[200].mxu1 %v6664_v54  ;;  %9775 = vmatpush1.bf16.xpose.msra.mxu0 %v13660_v55  ;;  %v6732_v54 = vcombine.high %v468_v30, %v468_v30  ;;  %v13707_v30 = vld [vmem:[%s14337_s26 + $0x124] ss:$600 sps:$4 sm:$0xff]  }
 0x345   : > { %9815 = vmatpush1.bf16.xpose.msra.mxu1 %v13663_v56  ;;  %9776 = vmatprep.subr.bf16.mxu0 %v12849_v57 }
 0x346   : > { %9816 = vmatprep.subr.bf16.mxu1 %v12851_v58  ;;  %v6315_v61 = vpop.f32.mrb[148].mxu0  ;;  %9806 = vmatprep.mubr.bf16.mxu0 %v6682_v59 }
 0x347   : > { %v8728_v62 = vpop.f32.mrb[148].mxu1  ;;  %9846 = vmatprep.mubr.bf16.mxu1 %v6720_v60  ;;  %v6316_v0 = vadd.f32 %v6315_v61, %v6276_v44  ;;  %v6317_v1 = vpop.f32.mrb[149].mxu0  ;;  %v6728_v44 = vcombine.high %v6706_v18, %v6706_v18  ;;  %v12856_v60 = vcombine.low %v660_v41, %v660_v41  ;;  %v12858_v61 = vcombine.low %v661_v42, %v661_v42 }
 0x348   : > { %v8730_v2 = vpop.f32.mrb[149].mxu1  ;;  %v6318_v3 = vpop.f32.mrb[150].mxu0  ;;  %v13693_v1 = vld [vmem:[%s14337_s26 + $0x10c] ss:$600 sps:$4 sm:$0xff]  }
 0x349   : > { %v8731_v4 = vpop.f32.mrb[150].mxu1  ;;  %v8729_v8 = vadd.f32 %v8728_v62, %v6316_v0  ;;  %v6319_v9 = vpop.f32.mrb[151].mxu0  ;;  %v13696_v2 = vld [vmem:[%s14337_s26 + $0x114] ss:$600 sps:$4 sm:$0xff]   ;;  %v6746_v3 = vrot.slane %v6732_v54, %v14007_v6 }
 0x34a   : > { %v8732_v10 = vpop.f32.mrb[151].mxu1  ;;  %v662_v4 = vld [vmem:[%s14337_s26 + $0x5b8] sm:$0x11]  ;;  %v6755_v9 = vrot.slane %v6739_v40, %v14007_v6 }
 0x34b   : > { %v13691_v10 = vld [vmem:[%s14337_s26 + $0x108] ss:$600 sps:$4 sm:$0xff]  }
 0x34c   : > { %9777 = vmatpush1.bf16.xpose.msra.mxu0 %v12848_v5  ;;  %v663_v5 = vld [vmem:[%s14337_s26 + $0x5c0] sm:$0x11] }
 0x34d   : > { %9817 = vmatpush1.bf16.xpose.msra.mxu1 %v12850_v7  ;;  %9854 = vmatprep.subr.bf16.mxu0 %v13672_v11  ;;  %v6748_v7 = vcombine.high %v6746_v3, %v6746_v3  ;;  %v13694_v11 = vld [vmem:[%s14337_s26 + $0x110] ss:$600 sps:$4 sm:$0xff]   ;;  %v12863_v13 = vcombine.high %v663_v5, %v663_v5 }
 0x34e   : > { %9894 = vmatprep.subr.bf16.mxu1 %v13675_v12  ;;  %v12861_v12 = vcombine.high %v662_v4, %v662_v4 }
 0x34f   : > { %v6776_v15 = vrot.slane %v6748_v7, %v14007_v6 }
 0x351   : > { %v6780_v41 = vcombine.high %v6776_v15, %v6776_v15 }
 0x353   : > { %9807 = vmatmul.mubr.bf16.vlgmr.msra.gmra.mrb[204].mxu0 %v6680_v17 }
 0x354   : > { %9847 = vmatmul.mubr.bf16.vlgmr.msra.gmra.mrb[204].mxu1 %v6706_v18  ;;  %9855 = vmatpush1.bf16.xpose.msra.mxu0 %v13670_v19 }
 0x355   : > { %9895 = vmatpush1.bf16.xpose.msra.mxu1 %v13673_v20  ;;  %9856 = vmatprep.subr.bf16.mxu0 %v12853_v21  ;;  %v469_v21 = vld [vmem:[%s15436_s0 + $0x48] sm:$0xff] }
 0x356   : > { %9896 = vmatprep.subr.bf16.mxu1 %v12855_v22  ;;  %v8768_v25 = vpop.f32.mrb[152].mxu0  ;;  %9886 = vmatprep.mubr.bf16.mxu0 %v6730_v23 }
 0x357   : > { %v8808_v26 = vpop.f32.mrb[152].mxu1  ;;  %9926 = vmatprep.mubr.bf16.mxu1 %v6727_v24  ;;  %v8769_v27 = vadd.f32 %v8768_v25, %v8729_v8  ;;  %v8770_v28 = vpop.f32.mrb[153].mxu0  ;;  %v6729_v8 = vcombine.high %v6713_v45, %v6713_v45  ;;  %v12860_v24 = vcombine.low %v662_v4, %v662_v4  ;;  %v12862_v25 = vcombine.low %v663_v5, %v663_v5 }
 0x358   : > { %v8810_v29 = vpop.f32.mrb[153].mxu1  ;;  %v8771_v31 = vpop.f32.mrb[154].mxu0 }
 0x359   : > { %v8811_v32 = vpop.f32.mrb[154].mxu1  ;;  %v8809_v35 = vadd.f32 %v8808_v26, %v8769_v27  ;;  %v8772_v36 = vpop.f32.mrb[155].mxu0  ;;  %v13704_v29 = vld [vmem:[%s14337_s26 + $0x11c] ss:$600 sps:$4 sm:$0xff]   ;;  %v6788_v31 = vrot.slane %v469_v21, %v14007_v6 }
 0x35a   : > { %v8812_v37 = vpop.f32.mrb[155].mxu1  ;;  %v664_v32 = vld [vmem:[%s14337_s26 + $0x5c8] sm:$0x11]  ;;  %v6762_v36 = vrot.slane %v6746_v3, %v14007_v6 }
 0x35b   : > { %v13702_v37 = vld [vmem:[%s14337_s26 + $0x118] ss:$600 sps:$4 sm:$0xff]  }
 0x35c   : > { %9857 = vmatpush1.bf16.xpose.msra.mxu0 %v12852_v33  ;;  %v665_v33 = vld [vmem:[%s14337_s26 + $0x5d0] sm:$0x11] }
 0x35d   : > { %9897 = vmatpush1.bf16.xpose.msra.mxu1 %v12854_v34  ;;  %9934 = vmatprep.subr.bf16.mxu0 %v13683_v38  ;;  %v6796_v34 = vcombine.high %v6788_v31, %v6788_v31  ;;  %v13705_v38 = vld [vmem:[%s14337_s26 + $0x120] ss:$600 sps:$4 sm:$0xff]   ;;  %v12867_v40 = vcombine.high %v665_v33, %v665_v33 }
 0x35e   : > { %9974 = vmatprep.subr.bf16.mxu1 %v13686_v39  ;;  %v12865_v39 = vcombine.high %v664_v32, %v664_v32 }
 0x35f   : > { %v6818_v42 = vrot.slane %v6796_v34, %v14007_v6 }
 0x361   : > { %v6828_v4 = vcombine.high %v6818_v42, %v6818_v42 }
 0x363   : > { %9887 = vmatmul.mubr.bf16.vlgmr.msra.gmra.mrb[208].mxu0 %v6728_v44 }
 0x364   : > { %9927 = vmatmul.mubr.bf16.vlgmr.msra.gmra.mrb[208].mxu1 %v6713_v45  ;;  %9935 = vmatpush1.bf16.xpose.msra.mxu0 %v13681_v46  ;;  %v6781_v45 = vcombine.high %v469_v21, %v469_v21  ;;  %v13728_v21 = vld [vmem:[%s14337_s26 + $0x144] ss:$600 sps:$4 sm:$0xff]  }
 0x365   : > { %9975 = vmatpush1.bf16.xpose.msra.mxu1 %v13684_v47  ;;  %9936 = vmatprep.subr.bf16.mxu0 %v12857_v48 }
 0x366   : > { %9976 = vmatprep.subr.bf16.mxu1 %v12859_v49  ;;  %v8848_v52 = vpop.f32.mrb[156].mxu0  ;;  %9966 = vmatprep.mubr.bf16.mxu0 %v6731_v50 }
 0x367   : > { %v8888_v53 = vpop.f32.mrb[156].mxu1  ;;  %10006 = vmatprep.mubr.bf16.mxu1 %v6769_v51  ;;  %v8849_v55 = vadd.f32 %v8848_v52, %v8809_v35  ;;  %v8850_v56 = vpop.f32.mrb[157].mxu0  ;;  %v6777_v35 = vcombine.high %v6755_v9, %v6755_v9  ;;  %v12864_v51 = vcombine.low %v664_v32, %v664_v32  ;;  %v12866_v52 = vcombine.low %v665_v33, %v665_v33 }
 0x368   : > { %v8890_v57 = vpop.f32.mrb[157].mxu1  ;;  %v8851_v58 = vpop.f32.mrb[158].mxu0  ;;  %v13714_v56 = vld [vmem:[%s14337_s26 + $0x12c] ss:$600 sps:$4 sm:$0xff]  }
 0x369   : > { %v8891_v59 = vpop.f32.mrb[158].mxu1  ;;  %v8889_v62 = vadd.f32 %v8888_v53, %v8849_v55  ;;  %v8852_v63 = vpop.f32.mrb[159].mxu0  ;;  %v13717_v57 = vld [vmem:[%s14337_s26 + $0x134] ss:$600 sps:$4 sm:$0xff]   ;;  %v6795_v58 = vrot.slane %v6781_v45, %v14007_v6 }
 0x36a   : > { %v8892_v0 = vpop.f32.mrb[159].mxu1  ;;  %v666_v59 = vld [vmem:[%s14337_s26 + $0x5d8] sm:$0x11]  ;;  %v6804_v63 = vrot.slane %v6788_v31, %v14007_v6 }
 0x36b   : > { %v13712_v0 = vld [vmem:[%s14337_s26 + $0x128] ss:$600 sps:$4 sm:$0xff]  }
 0x36c   : > { %9937 = vmatpush1.bf16.xpose.msra.mxu0 %v12856_v60  ;;  %v667_v60 = vld [vmem:[%s14337_s26 + $0x5e0] sm:$0x11] }
 0x36d   : > { %9977 = vmatpush1.bf16.xpose.msra.mxu1 %v12858_v61  ;;  %10014 = vmatprep.subr.bf16.mxu0 %v13693_v1  ;;  %v6797_v61 = vcombine.high %v6795_v58, %v6795_v58  ;;  %v13715_v1 = vld [vmem:[%s14337_s26 + $0x130] ss:$600 sps:$4 sm:$0xff]   ;;  %v12871_v3 = vcombine.high %v667_v60, %v667_v60 }
 0x36e   : > { %10054 = vmatprep.subr.bf16.mxu1 %v13696_v2  ;;  %v12869_v2 = vcombine.high %v666_v59, %v666_v59 }
 0x36f   : > { %v6825_v5 = vrot.slane %v6797_v61, %v14007_v6 }
 0x371   : > { %v6829_v32 = vcombine.high %v6825_v5, %v6825_v5 }
 0x373   : > { %9967 = vmatmul.mubr.bf16.vlgmr.msra.gmra.mrb[212].mxu0 %v6729_v8 }
 0x374   : > { %10007 = vmatmul.mubr.bf16.vlgmr.msra.gmra.mrb[212].mxu1 %v6755_v9  ;;  %10015 = vmatpush1.bf16.xpose.msra.mxu0 %v13691_v10 }
 0x375   : > { %10055 = vmatpush1.bf16.xpose.msra.mxu1 %v13694_v11  ;;  %10016 = vmatprep.subr.bf16.mxu0 %v12861_v12  ;;  %v470_v12 = vld [vmem:[%s15436_s0 + $0x50] sm:$0xff] }
 0x376   : > { %10056 = vmatprep.subr.bf16.mxu1 %v12863_v13  ;;  %v8928_v16 = vpop.f32.mrb[160].mxu0  ;;  %10046 = vmatprep.mubr.bf16.mxu0 %v6779_v14 }
 0x377   : > { %v8968_v17 = vpop.f32.mrb[160].mxu1  ;;  %10086 = vmatprep.mubr.bf16.mxu1 %v6776_v15  ;;  %v8929_v18 = vadd.f32 %v8928_v16, %v8889_v62  ;;  %v8930_v19 = vpop.f32.mrb[161].mxu0  ;;  %v6778_v62 = vcombine.high %v6762_v36, %v6762_v36  ;;  %v12868_v15 = vcombine.low %v666_v59, %v666_v59  ;;  %v12870_v16 = vcombine.low %v667_v60, %v667_v60 }
 0x378   : > { %v8970_v20 = vpop.f32.mrb[161].mxu1  ;;  %v8931_v22 = vpop.f32.mrb[162].mxu0 }
 0x379   : > { %v8971_v23 = vpop.f32.mrb[162].mxu1  ;;  %v8969_v26 = vadd.f32 %v8968_v17, %v8929_v18  ;;  %v8932_v27 = vpop.f32.mrb[163].mxu0  ;;  %v13725_v20 = vld [vmem:[%s14337_s26 + $0x13c] ss:$600 sps:$4 sm:$0xff]   ;;  %v6837_v22 = vrot.slane %v470_v12, %v14007_v6 }
 0x37a   : > { %v8972_v28 = vpop.f32.mrb[163].mxu1  ;;  %v668_v23 = vld [vmem:[%s14337_s26 + $0x5e8] sm:$0x11]  ;;  %v6811_v27 = vrot.slane %v6795_v58, %v14007_v6 }
 0x37b   : > { %v13723_v28 = vld [vmem:[%s14337_s26 + $0x138] ss:$600 sps:$4 sm:$0xff]  }
 0x37c   : > { %10017 = vmatpush1.bf16.xpose.msra.mxu0 %v12860_v24  ;;  %v669_v24 = vld [vmem:[%s14337_s26 + $0x5f0] sm:$0x11] }
 0x37d   : > { %10057 = vmatpush1.bf16.xpose.msra.mxu1 %v12862_v25  ;;  %10094 = vmatprep.subr.bf16.mxu0 %v13704_v29  ;;  %v6845_v25 = vcombine.high %v6837_v22, %v6837_v22  ;;  %v13726_v29 = vld [vmem:[%s14337_s26 + $0x140] ss:$600 sps:$4 sm:$0xff]   ;;  %v12875_v31 = vcombine.high %v669_v24, %v669_v24 }
 0x37e   : > { %10134 = vmatprep.subr.bf16.mxu1 %v13707_v30  ;;  %v12873_v30 = vcombine.high %v668_v23, %v668_v23 }
 0x37f   : > { %v6867_v33 = vrot.slane %v6845_v25, %v14007_v6 }
 0x381   : > { %v6877_v59 = vcombine.high %v6867_v33, %v6867_v33 }
 0x383   : > { %10047 = vmatmul.mubr.bf16.vlgmr.msra.gmra.mrb[216].mxu0 %v6777_v35 }
 0x384   : > { %10087 = vmatmul.mubr.bf16.vlgmr.msra.gmra.mrb[216].mxu1 %v6762_v36  ;;  %10095 = vmatpush1.bf16.xpose.msra.mxu0 %v13702_v37  ;;  %v6830_v36 = vcombine.high %v470_v12, %v470_v12  ;;  %v13749_v12 = vld [vmem:[%s14337_s26 + $0x164] ss:$600 sps:$4 sm:$0xff]  }
 0x385   : > { %10135 = vmatpush1.bf16.xpose.msra.mxu1 %v13705_v38  ;;  %10096 = vmatprep.subr.bf16.mxu0 %v12865_v39 }
 0x386   : > { %10136 = vmatprep.subr.bf16.mxu1 %v12867_v40  ;;  %v9008_v43 = vpop.f32.mrb[164].mxu0  ;;  %10126 = vmatprep.mubr.bf16.mxu0 %v6780_v41 }
 0x387   : > { %v9048_v44 = vpop.f32.mrb[164].mxu1  ;;  %10166 = vmatprep.mubr.bf16.mxu1 %v6818_v42  ;;  %v9009_v46 = vadd.f32 %v9008_v43, %v8969_v26  ;;  %v9010_v47 = vpop.f32.mrb[165].mxu0  ;;  %v6826_v26 = vcombine.high %v6804_v63, %v6804_v63  ;;  %v12872_v42 = vcombine.low %v668_v23, %v668_v23  ;;  %v12874_v43 = vcombine.low %v669_v24, %v669_v24 }
 0x388   : > { %v9050_v48 = vpop.f32.mrb[165].mxu1  ;;  %v9011_v49 = vpop.f32.mrb[166].mxu0  ;;  %v13735_v47 = vld [vmem:[%s14337_s26 + $0x14c] ss:$600 sps:$4 sm:$0xff]  }
 0x389   : > { %v9051_v50 = vpop.f32.mrb[166].mxu1  ;;  %v9049_v53 = vadd.f32 %v9048_v44, %v9009_v46  ;;  %v9012_v54 = vpop.f32.mrb[167].mxu0  ;;  %v13738_v48 = vld [vmem:[%s14337_s26 + $0x154] ss:$600 sps:$4 sm:$0xff]   ;;  %v6844_v49 = vrot.slane %v6830_v36, %v14007_v6 }
 0x38a   : > { %v9052_v55 = vpop.f32.mrb[167].mxu1  ;;  %v670_v50 = vld [vmem:[%s14337_s26 + $0x5f8] sm:$0x11]  ;;  %v6853_v54 = vrot.slane %v6837_v22, %v14007_v6 }
 0x38b   : > { %v13733_v55 = vld [vmem:[%s14337_s26 + $0x148] ss:$600 sps:$4 sm:$0xff]  }
 0x38c   : > { %10097 = vmatpush1.bf16.xpose.msra.mxu0 %v12864_v51  ;;  %v671_v51 = vld [vmem:[%s14337_s26 + $0x600] sm:$0x11] }
 0x38d   : > { %10137 = vmatpush1.bf16.xpose.msra.mxu1 %v12866_v52  ;;  %10174 = vmatprep.subr.bf16.mxu0 %v13714_v56  ;;  %v6846_v52 = vcombine.high %v6844_v49, %v6844_v49  ;;  %v13736_v56 = vld [vmem:[%s14337_s26 + $0x150] ss:$600 sps:$4 sm:$0xff]   ;;  %v12879_v58 = vcombine.high %v671_v51, %v671_v51 }
 0x38e   : > { %10214 = vmatprep.subr.bf16.mxu1 %v13717_v57  ;;  %v12877_v57 = vcombine.high %v670_v50, %v670_v50 }
 0x38f   : > { %v6874_v60 = vrot.slane %v6846_v52, %v14007_v6 }
 0x391   : > { %v6878_v23 = vcombine.high %v6874_v60, %v6874_v60 }
 0x393   : > { %10127 = vmatmul.mubr.bf16.vlgmr.msra.gmra.mrb[220].mxu0 %v6778_v62 }
 0x394   : > { %10167 = vmatmul.mubr.bf16.vlgmr.msra.gmra.mrb[220].mxu1 %v6804_v63  ;;  %10175 = vmatpush1.bf16.xpose.msra.mxu0 %v13712_v0 }
 0x395   : > { %10215 = vmatpush1.bf16.xpose.msra.mxu1 %v13715_v1  ;;  %10176 = vmatprep.subr.bf16.mxu0 %v12869_v2  ;;  %v471_v2 = vld [vmem:[%s15436_s0 + $0x58] sm:$0xff] }
 0x396   : > { %10216 = vmatprep.subr.bf16.mxu1 %v12871_v3  ;;  %v9088_v7 = vpop.f32.mrb[168].mxu0  ;;  %10206 = vmatprep.mubr.bf16.mxu0 %v6828_v4 }
 0x397   : > { %v9128_v8 = vpop.f32.mrb[168].mxu1  ;;  %10246 = vmatprep.mubr.bf16.mxu1 %v6825_v5  ;;  %v9089_v9 = vadd.f32 %v9088_v7, %v9049_v53  ;;  %v9090_v10 = vpop.f32.mrb[169].mxu0  ;;  %v6827_v53 = vcombine.high %v6811_v27, %v6811_v27  ;;  %v12876_v5 = vcombine.low %v670_v50, %v670_v50  ;;  %v12878_v7 = vcombine.low %v671_v51, %v671_v51 }
 0x398   : > { %v9130_v11 = vpop.f32.mrb[169].mxu1  ;;  %v9091_v13 = vpop.f32.mrb[170].mxu0 }
 0x399   : > { %v9131_v14 = vpop.f32.mrb[170].mxu1  ;;  %v9129_v17 = vadd.f32 %v9128_v8, %v9089_v9  ;;  %v9092_v18 = vpop.f32.mrb[171].mxu0  ;;  %v13746_v11 = vld [vmem:[%s14337_s26 + $0x15c] ss:$600 sps:$4 sm:$0xff]   ;;  %v6886_v13 = vrot.slane %v471_v2, %v14007_v6 }
 0x39a   : > { %v9132_v19 = vpop.f32.mrb[171].mxu1  ;;  %v672_v14 = vld [vmem:[%s14337_s26 + $0x608] sm:$0x11]  ;;  %v6860_v18 = vrot.slane %v6844_v49, %v14007_v6 }
 0x39b   : > { %v13744_v19 = vld [vmem:[%s14337_s26 + $0x158] ss:$600 sps:$4 sm:$0xff]  }
 0x39c   : > { %10177 = vmatpush1.bf16.xpose.msra.mxu0 %v12868_v15  ;;  %v673_v15 = vld [vmem:[%s14337_s26 + $0x610] sm:$0x11] }
 0x39d   : > { %10217 = vmatpush1.bf16.xpose.msra.mxu1 %v12870_v16  ;;  %10254 = vmatprep.subr.bf16.mxu0 %v13725_v20  ;;  %v6894_v16 = vcombine.high %v6886_v13, %v6886_v13  ;;  %v13747_v20 = vld [vmem:[%s14337_s26 + $0x160] ss:$600 sps:$4 sm:$0xff]   ;;  %v12883_v22 = vcombine.high %v673_v15, %v673_v15 }
 0x39e   : > { %10294 = vmatprep.subr.bf16.mxu1 %v13728_v21  ;;  %v12881_v21 = vcombine.high %v672_v14, %v672_v14 }
 0x39f   : > { %v6916_v24 = vrot.slane %v6894_v16, %v14007_v6 }
 0x3a1   : > { %v6926_v50 = vcombine.high %v6916_v24, %v6916_v24 }
 0x3a3   : > { %10207 = vmatmul.mubr.bf16.vlgmr.msra.gmra.mrb[224].mxu0 %v6826_v26 }
 0x3a4   : > { %10247 = vmatmul.mubr.bf16.vlgmr.msra.gmra.mrb[224].mxu1 %v6811_v27  ;;  %10255 = vmatpush1.bf16.xpose.msra.mxu0 %v13723_v28  ;;  %v6879_v27 = vcombine.high %v471_v2, %v471_v2  ;;  %v13770_v2 = vld [vmem:[%s14337_s26 + $0x184] ss:$600 sps:$4 sm:$0xff]  }
 0x3a5   : > { %10295 = vmatpush1.bf16.xpose.msra.mxu1 %v13726_v29  ;;  %10256 = vmatprep.subr.bf16.mxu0 %v12873_v30 }
 0x3a6   : > { %10296 = vmatprep.subr.bf16.mxu1 %v12875_v31  ;;  %v9168_v34 = vpop.f32.mrb[172].mxu0  ;;  %10286 = vmatprep.mubr.bf16.mxu0 %v6829_v32 }
 0x3a7   : > { %v9208_v35 = vpop.f32.mrb[172].mxu1  ;;  %10326 = vmatprep.mubr.bf16.mxu1 %v6867_v33  ;;  %v9169_v37 = vadd.f32 %v9168_v34, %v9129_v17  ;;  %v9170_v38 = vpop.f32.mrb[173].mxu0  ;;  %v6875_v17 = vcombine.high %v6853_v54, %v6853_v54  ;;  %v12880_v33 = vcombine.low %v672_v14, %v672_v14  ;;  %v12882_v34 = vcombine.low %v673_v15, %v673_v15 }
 0x3a8   : > { %v9210_v39 = vpop.f32.mrb[173].mxu1  ;;  %v9171_v40 = vpop.f32.mrb[174].mxu0  ;;  %v13756_v38 = vld [vmem:[%s14337_s26 + $0x16c] ss:$600 sps:$4 sm:$0xff]  }
 0x3a9   : > { %v9211_v41 = vpop.f32.mrb[174].mxu1  ;;  %v9209_v44 = vadd.f32 %v9208_v35, %v9169_v37  ;;  %v9172_v45 = vpop.f32.mrb[175].mxu0  ;;  %v13759_v39 = vld [vmem:[%s14337_s26 + $0x174] ss:$600 sps:$4 sm:$0xff]   ;;  %v6893_v40 = vrot.slane %v6879_v27, %v14007_v6 }
 0x3aa   : > { %v9212_v46 = vpop.f32.mrb[175].mxu1  ;;  %v674_v41 = vld [vmem:[%s14337_s26 + $0x618] sm:$0x11]  ;;  %v6902_v45 = vrot.slane %v6886_v13, %v14007_v6 }
 0x3ab   : > { %v13754_v46 = vld [vmem:[%s14337_s26 + $0x168] ss:$600 sps:$4 sm:$0xff]  }
 0x3ac   : > { %10257 = vmatpush1.bf16.xpose.msra.mxu0 %v12872_v42  ;;  %v675_v42 = vld [vmem:[%s14337_s26 + $0x620] sm:$0x11] }
 0x3ad   : > { %10297 = vmatpush1.bf16.xpose.msra.mxu1 %v12874_v43  ;;  %10334 = vmatprep.subr.bf16.mxu0 %v13735_v47  ;;  %v6895_v43 = vcombine.high %v6893_v40, %v6893_v40  ;;  %v13757_v47 = vld [vmem:[%s14337_s26 + $0x170] ss:$600 sps:$4 sm:$0xff]   ;;  %v12887_v49 = vcombine.high %v675_v42, %v675_v42 }
 0x3ae   : > { %10374 = vmatprep.subr.bf16.mxu1 %v13738_v48  ;;  %v12885_v48 = vcombine.high %v674_v41, %v674_v41 }
 0x3af   : > { %v6923_v51 = vrot.slane %v6895_v43, %v14007_v6 }
 0x3b1   : > { %v6927_v14 = vcombine.high %v6923_v51, %v6923_v51 }
 0x3b3   : > { %10287 = vmatmul.mubr.bf16.vlgmr.msra.gmra.mrb[228].mxu0 %v6827_v53 }
 0x3b4   : > { %10327 = vmatmul.mubr.bf16.vlgmr.msra.gmra.mrb[228].mxu1 %v6853_v54  ;;  %10335 = vmatpush1.bf16.xpose.msra.mxu0 %v13733_v55 }
 0x3b5   : > { %10375 = vmatpush1.bf16.xpose.msra.mxu1 %v13736_v56  ;;  %10336 = vmatprep.subr.bf16.mxu0 %v12877_v57  ;;  %v472_v57 = vld [vmem:[%s15436_s0 + $0x60] sm:$0xff] }
 0x3b6   : > { %10376 = vmatprep.subr.bf16.mxu1 %v12879_v58  ;;  %v9248_v61 = vpop.f32.mrb[176].mxu0  ;;  %10366 = vmatprep.mubr.bf16.mxu0 %v6877_v59 }
 0x3b7   : > { %v9288_v62 = vpop.f32.mrb[176].mxu1  ;;  %10406 = vmatprep.mubr.bf16.mxu1 %v6874_v60  ;;  %v9249_v63 = vadd.f32 %v9248_v61, %v9209_v44  ;;  %v9250_v0 = vpop.f32.mrb[177].mxu0  ;;  %v6876_v44 = vcombine.high %v6860_v18, %v6860_v18  ;;  %v12884_v60 = vcombine.low %v674_v41, %v674_v41  ;;  %v12886_v61 = vcombine.low %v675_v42, %v675_v42 }
 0x3b8   : > { %v9290_v1 = vpop.f32.mrb[177].mxu1  ;;  %v9251_v3 = vpop.f32.mrb[178].mxu0 }
 0x3b9   : > { %v9291_v4 = vpop.f32.mrb[178].mxu1  ;;  %v9289_v8 = vadd.f32 %v9288_v62, %v9249_v63  ;;  %v9252_v9 = vpop.f32.mrb[179].mxu0  ;;  %v13767_v1 = vld [vmem:[%s14337_s26 + $0x17c] ss:$600 sps:$4 sm:$0xff]   ;;  %v6935_v3 = vrot.slane %v472_v57, %v14007_v6 }
 0x3ba   : > { %v9292_v10 = vpop.f32.mrb[179].mxu1  ;;  %v676_v4 = vld [vmem:[%s14337_s26 + $0x628] sm:$0x11]  ;;  %v6909_v9 = vrot.slane %v6893_v40, %v14007_v6 }
 0x3bb   : > { %v13765_v10 = vld [vmem:[%s14337_s26 + $0x178] ss:$600 sps:$4 sm:$0xff]  }
 0x3bc   : > { %10337 = vmatpush1.bf16.xpose.msra.mxu0 %v12876_v5  ;;  %v677_v5 = vld [vmem:[%s14337_s26 + $0x630] sm:$0x11] }
 0x3bd   : > { %10377 = vmatpush1.bf16.xpose.msra.mxu1 %v12878_v7  ;;  %10414 = vmatprep.subr.bf16.mxu0 %v13746_v11  ;;  %v6943_v7 = vcombine.high %v6935_v3, %v6935_v3  ;;  %v13768_v11 = vld [vmem:[%s14337_s26 + $0x180] ss:$600 sps:$4 sm:$0xff]   ;;  %v12891_v13 = vcombine.high %v677_v5, %v677_v5 }
 0x3be   : > { %10454 = vmatprep.subr.bf16.mxu1 %v13749_v12  ;;  %v12889_v12 = vcombine.high %v676_v4, %v676_v4 }
 0x3bf   : > { %v6965_v15 = vrot.slane %v6943_v7, %v14007_v6 }
 0x3c1   : > { %v6975_v41 = vcombine.high %v6965_v15, %v6965_v15 }
 0x3c3   : > { %10367 = vmatmul.mubr.bf16.vlgmr.msra.gmra.mrb[232].mxu0 %v6875_v17 }
 0x3c4   : > { %10407 = vmatmul.mubr.bf16.vlgmr.msra.gmra.mrb[232].mxu1 %v6860_v18  ;;  %10415 = vmatpush1.bf16.xpose.msra.mxu0 %v13744_v19  ;;  %v6928_v18 = vcombine.high %v472_v57, %v472_v57  ;;  %v13791_v57 = vld [vmem:[%s14337_s26 + $0x1a4] ss:$600 sps:$4 sm:$0xff]  }
 0x3c5   : > { %10455 = vmatpush1.bf16.xpose.msra.mxu1 %v13747_v20  ;;  %10416 = vmatprep.subr.bf16.mxu0 %v12881_v21 }
 0x3c6   : > { %10456 = vmatprep.subr.bf16.mxu1 %v12883_v22  ;;  %v9328_v25 = vpop.f32.mrb[180].mxu0  ;;  %10446 = vmatprep.mubr.bf16.mxu0 %v6878_v23 }
 0x3c7   : > { %v9368_v26 = vpop.f32.mrb[180].mxu1  ;;  %10486 = vmatprep.mubr.bf16.mxu1 %v6916_v24  ;;  %v9329_v28 = vadd.f32 %v9328_v25, %v9289_v8  ;;  %v9330_v29 = vpop.f32.mrb[181].mxu0  ;;  %v6924_v8 = vcombine.high %v6902_v45, %v6902_v45  ;;  %v12888_v24 = vcombine.low %v676_v4, %v676_v4  ;;  %v12890_v25 = vcombine.low %v677_v5, %v677_v5 }
 0x3c8   : > { %v9370_v30 = vpop.f32.mrb[181].mxu1  ;;  %v9331_v31 = vpop.f32.mrb[182].mxu0  ;;  %v13777_v29 = vld [vmem:[%s14337_s26 + $0x18c] ss:$600 sps:$4 sm:$0xff]  }
 0x3c9   : > { %v9371_v32 = vpop.f32.mrb[182].mxu1  ;;  %v9369_v35 = vadd.f32 %v9368_v26, %v9329_v28  ;;  %v9332_v36 = vpop.f32.mrb[183].mxu0  ;;  %v13780_v30 = vld [vmem:[%s14337_s26 + $0x194] ss:$600 sps:$4 sm:$0xff]   ;;  %v6942_v31 = vrot.slane %v6928_v18, %v14007_v6 }
 0x3ca   : > { %v9372_v37 = vpop.f32.mrb[183].mxu1  ;;  %v678_v32 = vld [vmem:[%s14337_s26 + $0x638] sm:$0x11]  ;;  %v6951_v36 = vrot.slane %v6935_v3, %v14007_v6 }
 0x3cb   : > { %v13775_v37 = vld [vmem:[%s14337_s26 + $0x188] ss:$600 sps:$4 sm:$0xff]  }
 0x3cc   : > { %10417 = vmatpush1.bf16.xpose.msra.mxu0 %v12880_v33  ;;  %v679_v33 = vld [vmem:[%s14337_s26 + $0x640] sm:$0x11] }
 0x3cd   : > { %10457 = vmatpush1.bf16.xpose.msra.mxu1 %v12882_v34  ;;  %10494 = vmatprep.subr.bf16.mxu0 %v13756_v38  ;;  %v6944_v34 = vcombine.high %v6942_v31, %v6942_v31  ;;  %v13778_v38 = vld [vmem:[%s14337_s26 + $0x190] ss:$600 sps:$4 sm:$0xff]   ;;  %v12895_v40 = vcombine.high %v679_v33, %v679_v33 }
 0x3ce   : > { %10534 = vmatprep.subr.bf16.mxu1 %v13759_v39  ;;  %v12893_v39 = vcombine.high %v678_v32, %v678_v32 }
 0x3cf   : > { %v6972_v42 = vrot.slane %v6944_v34, %v14007_v6 }
 0x3d1   : > { %v6976_v4 = vcombine.high %v6972_v42, %v6972_v42 }
 0x3d3   : > { %10447 = vmatmul.mubr.bf16.vlgmr.msra.gmra.mrb[236].mxu0 %v6876_v44 }
 0x3d4   : > { %10487 = vmatmul.mubr.bf16.vlgmr.msra.gmra.mrb[236].mxu1 %v6902_v45  ;;  %10495 = vmatpush1.bf16.xpose.msra.mxu0 %v13754_v46 }
 0x3d5   : > { %10535 = vmatpush1.bf16.xpose.msra.mxu1 %v13757_v47  ;;  %10496 = vmatprep.subr.bf16.mxu0 %v12885_v48  ;;  %v473_v48 = vld [vmem:[%s15436_s0 + $0x68] sm:$0xff] }
 0x3d6   : > { %10536 = vmatprep.subr.bf16.mxu1 %v12887_v49  ;;  %v9408_v52 = vpop.f32.mrb[184].mxu0  ;;  %10526 = vmatprep.mubr.bf16.mxu0 %v6926_v50 }
 0x3d7   : > { %v9448_v53 = vpop.f32.mrb[184].mxu1  ;;  %10566 = vmatprep.mubr.bf16.mxu1 %v6923_v51  ;;  %v9409_v54 = vadd.f32 %v9408_v52, %v9369_v35  ;;  %v9410_v55 = vpop.f32.mrb[185].mxu0  ;;  %v6925_v35 = vcombine.high %v6909_v9, %v6909_v9  ;;  %v12892_v51 = vcombine.low %v678_v32, %v678_v32  ;;  %v12894_v52 = vcombine.low %v679_v33, %v679_v33 }
 0x3d8   : > { %v9450_v56 = vpop.f32.mrb[185].mxu1  ;;  %v9411_v58 = vpop.f32.mrb[186].mxu0 }
 0x3d9   : > { %v9451_v59 = vpop.f32.mrb[186].mxu1  ;;  %v9449_v62 = vadd.f32 %v9448_v53, %v9409_v54  ;;  %v9412_v63 = vpop.f32.mrb[187].mxu0  ;;  %v13788_v56 = vld [vmem:[%s14337_s26 + $0x19c] ss:$600 sps:$4 sm:$0xff]   ;;  %v6984_v58 = vrot.slane %v473_v48, %v14007_v6 }
 0x3da   : > { %v9452_v0 = vpop.f32.mrb[187].mxu1  ;;  %v680_v59 = vld [vmem:[%s14337_s26 + $0x648] sm:$0x11]  ;;  %v6958_v63 = vrot.slane %v6942_v31, %v14007_v6 }
 0x3db   : > { %v13786_v0 = vld [vmem:[%s14337_s26 + $0x198] ss:$600 sps:$4 sm:$0xff]  }
 0x3dc   : > { %10497 = vmatpush1.bf16.xpose.msra.mxu0 %v12884_v60  ;;  %v681_v60 = vld [vmem:[%s14337_s26 + $0x650] sm:$0x11] }
 0x3dd   : > { %10537 = vmatpush1.bf16.xpose.msra.mxu1 %v12886_v61  ;;  %10574 = vmatprep.subr.bf16.mxu0 %v13767_v1  ;;  %v6992_v61 = vcombine.high %v6984_v58, %v6984_v58  ;;  %v13789_v1 = vld [vmem:[%s14337_s26 + $0x1a0] ss:$600 sps:$4 sm:$0xff]   ;;  %v12899_v3 = vcombine.high %v681_v60, %v681_v60 }
 0x3de   : > { %10614 = vmatprep.subr.bf16.mxu1 %v13770_v2  ;;  %v12897_v2 = vcombine.high %v680_v59, %v680_v59 }
 0x3df   : > { %v7014_v5 = vrot.slane %v6992_v61, %v14007_v6 }
 0x3e1   : > { %v7024_v32 = vcombine.high %v7014_v5, %v7014_v5 }
 0x3e3   : > { %10527 = vmatmul.mubr.bf16.vlgmr.msra.gmra.mrb[240].mxu0 %v6924_v8 }
 0x3e4   : > { %10567 = vmatmul.mubr.bf16.vlgmr.msra.gmra.mrb[240].mxu1 %v6909_v9  ;;  %10575 = vmatpush1.bf16.xpose.msra.mxu0 %v13765_v10  ;;  %v6977_v9 = vcombine.high %v473_v48, %v473_v48  ;;  %v13812_v48 = vld [vmem:[%s14337_s26 + $0x1c4] ss:$600 sps:$4 sm:$0xff]  }
 0x3e5   : > { %10615 = vmatpush1.bf16.xpose.msra.mxu1 %v13768_v11  ;;  %10576 = vmatprep.subr.bf16.mxu0 %v12889_v12 }
 0x3e6   : > { %10616 = vmatprep.subr.bf16.mxu1 %v12891_v13  ;;  %v9488_v16 = vpop.f32.mrb[188].mxu0  ;;  %10606 = vmatprep.mubr.bf16.mxu0 %v6927_v14 }
 0x3e7   : > { %v9528_v17 = vpop.f32.mrb[188].mxu1  ;;  %10646 = vmatprep.mubr.bf16.mxu1 %v6965_v15  ;;  %v9489_v19 = vadd.f32 %v9488_v16, %v9449_v62  ;;  %v9490_v20 = vpop.f32.mrb[189].mxu0  ;;  %v6973_v62 = vcombine.high %v6951_v36, %v6951_v36  ;;  %v12896_v15 = vcombine.low %v680_v59, %v680_v59  ;;  %v12898_v16 = vcombine.low %v681_v60, %v681_v60 }
 0x3e8   : > { %v9530_v21 = vpop.f32.mrb[189].mxu1  ;;  %v9491_v22 = vpop.f32.mrb[190].mxu0  ;;  %v13798_v20 = vld [vmem:[%s14337_s26 + $0x1ac] ss:$600 sps:$4 sm:$0xff]  }
 0x3e9   : > { %v9531_v23 = vpop.f32.mrb[190].mxu1  ;;  %v9529_v26 = vadd.f32 %v9528_v17, %v9489_v19  ;;  %v9492_v27 = vpop.f32.mrb[191].mxu0  ;;  %v13801_v21 = vld [vmem:[%s14337_s26 + $0x1b4] ss:$600 sps:$4 sm:$0xff]   ;;  %v6991_v22 = vrot.slane %v6977_v9, %v14007_v6 }
 0x3ea   : > { %v9532_v28 = vpop.f32.mrb[191].mxu1  ;;  %v682_v23 = vld [vmem:[%s14337_s26 + $0x658] sm:$0x11]  ;;  %v7000_v27 = vrot.slane %v6984_v58, %v14007_v6 }
 0x3eb   : > { %v13796_v28 = vld [vmem:[%s14337_s26 + $0x1a8] ss:$600 sps:$4 sm:$0xff]  }
 0x3ec   : > { %10577 = vmatpush1.bf16.xpose.msra.mxu0 %v12888_v24  ;;  %v683_v24 = vld [vmem:[%s14337_s26 + $0x660] sm:$0x11] }
 0x3ed   : > { %10617 = vmatpush1.bf16.xpose.msra.mxu1 %v12890_v25  ;;  %10654 = vmatprep.subr.bf16.mxu0 %v13777_v29  ;;  %v6993_v25 = vcombine.high %v6991_v22, %v6991_v22  ;;  %v13799_v29 = vld [vmem:[%s14337_s26 + $0x1b0] ss:$600 sps:$4 sm:$0xff]   ;;  %v12903_v31 = vcombine.high %v683_v24, %v683_v24 }
 0x3ee   : > { %10694 = vmatprep.subr.bf16.mxu1 %v13780_v30  ;;  %v12901_v30 = vcombine.high %v682_v23, %v682_v23 }
 0x3ef   : > { %v7021_v33 = vrot.slane %v6993_v25, %v14007_v6 }
 0x3f1   : > { %v7025_v59 = vcombine.high %v7021_v33, %v7021_v33 }
 0x3f3   : > { %10607 = vmatmul.mubr.bf16.vlgmr.msra.gmra.mrb[244].mxu0 %v6925_v35 }
 0x3f4   : > { %10647 = vmatmul.mubr.bf16.vlgmr.msra.gmra.mrb[244].mxu1 %v6951_v36  ;;  %10655 = vmatpush1.bf16.xpose.msra.mxu0 %v13775_v37 }
 0x3f5   : > { %10695 = vmatpush1.bf16.xpose.msra.mxu1 %v13778_v38  ;;  %10656 = vmatprep.subr.bf16.mxu0 %v12893_v39  ;;  %v474_v39 = vld [vmem:[%s15436_s0 + $0x70] sm:$0xff] }
 0x3f6   : > { %10696 = vmatprep.subr.bf16.mxu1 %v12895_v40  ;;  %v9568_v43 = vpop.f32.mrb[192].mxu0  ;;  %10686 = vmatprep.mubr.bf16.mxu0 %v6975_v41 }
 0x3f7   : > { %v9608_v44 = vpop.f32.mrb[192].mxu1  ;;  %10726 = vmatprep.mubr.bf16.mxu1 %v6972_v42  ;;  %v9569_v45 = vadd.f32 %v9568_v43, %v9529_v26  ;;  %v9570_v46 = vpop.f32.mrb[193].mxu0  ;;  %v6974_v26 = vcombine.high %v6958_v63, %v6958_v63  ;;  %v12900_v42 = vcombine.low %v682_v23, %v682_v23  ;;  %v12902_v43 = vcombine.low %v683_v24, %v683_v24 }
 0x3f8   : > { %v9610_v47 = vpop.f32.mrb[193].mxu1  ;;  %v9571_v49 = vpop.f32.mrb[194].mxu0 }
 0x3f9   : > { %v9611_v50 = vpop.f32.mrb[194].mxu1  ;;  %v9609_v53 = vadd.f32 %v9608_v44, %v9569_v45  ;;  %v9572_v54 = vpop.f32.mrb[195].mxu0  ;;  %v13809_v47 = vld [vmem:[%s14337_s26 + $0x1bc] ss:$600 sps:$4 sm:$0xff]   ;;  %v7033_v49 = vrot.slane %v474_v39, %v14007_v6 }
 0x3fa   : > { %v9612_v55 = vpop.f32.mrb[195].mxu1  ;;  %v684_v50 = vld [vmem:[%s14337_s26 + $0x668] sm:$0x11]  ;;  %v7007_v54 = vrot.slane %v6991_v22, %v14007_v6 }
 0x3fb   : > { %v13807_v55 = vld [vmem:[%s14337_s26 + $0x1b8] ss:$600 sps:$4 sm:$0xff]  }
 0x3fc   : > { %10657 = vmatpush1.bf16.xpose.msra.mxu0 %v12892_v51  ;;  %v685_v51 = vld [vmem:[%s14337_s26 + $0x670] sm:$0x11] }
 0x3fd   : > { %10697 = vmatpush1.bf16.xpose.msra.mxu1 %v12894_v52  ;;  %10734 = vmatprep.subr.bf16.mxu0 %v13788_v56  ;;  %v7041_v52 = vcombine.high %v7033_v49, %v7033_v49  ;;  %v13810_v56 = vld [vmem:[%s14337_s26 + $0x1c0] ss:$600 sps:$4 sm:$0xff]   ;;  %v12907_v58 = vcombine.high %v685_v51, %v685_v51 }
 0x3fe   : > { %10774 = vmatprep.subr.bf16.mxu1 %v13791_v57  ;;  %v12905_v57 = vcombine.high %v684_v50, %v684_v50 }
 0x3ff   : > { %v7063_v60 = vrot.slane %v7041_v52, %v14007_v6 }
 0x401   : > { %v7073_v23 = vcombine.high %v7063_v60, %v7063_v60 }
 0x403   : > { %10687 = vmatmul.mubr.bf16.vlgmr.msra.gmra.mrb[248].mxu0 %v6973_v62 }
 0x404   : > { %10727 = vmatmul.mubr.bf16.vlgmr.msra.gmra.mrb[248].mxu1 %v6958_v63  ;;  %10735 = vmatpush1.bf16.xpose.msra.mxu0 %v13786_v0  ;;  %v7026_v63 = vcombine.high %v474_v39, %v474_v39  ;;  %v13833_v39 = vld [vmem:[%s14337_s26 + $0x1e4] ss:$600 sps:$4 sm:$0xff]  }
 0x405   : > { %10775 = vmatpush1.bf16.xpose.msra.mxu1 %v13789_v1  ;;  %10736 = vmatprep.subr.bf16.mxu0 %v12897_v2 }
 0x406   : > { %10776 = vmatprep.subr.bf16.mxu1 %v12899_v3  ;;  %v9648_v7 = vpop.f32.mrb[196].mxu0  ;;  %10766 = vmatprep.mubr.bf16.mxu0 %v6976_v4 }
 0x407   : > { %v9688_v8 = vpop.f32.mrb[196].mxu1  ;;  %10806 = vmatprep.mubr.bf16.mxu1 %v7014_v5  ;;  %v9649_v10 = vadd.f32 %v9648_v7, %v9609_v53  ;;  %v9650_v11 = vpop.f32.mrb[197].mxu0  ;;  %v7022_v53 = vcombine.high %v7000_v27, %v7000_v27  ;;  %v12904_v5 = vcombine.low %v684_v50, %v684_v50  ;;  %v12906_v7 = vcombine.low %v685_v51, %v685_v51 }
 0x408   : > { %v9690_v12 = vpop.f32.mrb[197].mxu1  ;;  %v9651_v13 = vpop.f32.mrb[198].mxu0  ;;  %v13819_v11 = vld [vmem:[%s14337_s26 + $0x1cc] ss:$600 sps:$4 sm:$0xff]  }
 0x409   : > { %v9691_v14 = vpop.f32.mrb[198].mxu1  ;;  %v9689_v17 = vadd.f32 %v9688_v8, %v9649_v10  ;;  %v9652_v18 = vpop.f32.mrb[199].mxu0  ;;  %v13822_v12 = vld [vmem:[%s14337_s26 + $0x1d4] ss:$600 sps:$4 sm:$0xff]   ;;  %v7040_v13 = vrot.slane %v7026_v63, %v14007_v6 }
 0x40a   : > { %v9692_v19 = vpop.f32.mrb[199].mxu1  ;;  %v686_v14 = vld [vmem:[%s14337_s26 + $0x678] sm:$0x11]  ;;  %v7049_v18 = vrot.slane %v7033_v49, %v14007_v6 }
 0x40b   : > { %v13817_v19 = vld [vmem:[%s14337_s26 + $0x1c8] ss:$600 sps:$4 sm:$0xff]  }
 0x40c   : > { %10737 = vmatpush1.bf16.xpose.msra.mxu0 %v12896_v15  ;;  %v687_v15 = vld [vmem:[%s14337_s26 + $0x680] sm:$0x11] }
 0x40d   : > { %10777 = vmatpush1.bf16.xpose.msra.mxu1 %v12898_v16  ;;  %10814 = vmatprep.subr.bf16.mxu0 %v13798_v20  ;;  %v7042_v16 = vcombine.high %v7040_v13, %v7040_v13  ;;  %v13820_v20 = vld [vmem:[%s14337_s26 + $0x1d0] ss:$600 sps:$4 sm:$0xff]   ;;  %v12911_v22 = vcombine.high %v687_v15, %v687_v15 }
 0x40e   : > { %10854 = vmatprep.subr.bf16.mxu1 %v13801_v21  ;;  %v12909_v21 = vcombine.high %v686_v14, %v686_v14 }
 0x40f   : > { %v7070_v24 = vrot.slane %v7042_v16, %v14007_v6 }
 0x411   : > { %v7074_v50 = vcombine.high %v7070_v24, %v7070_v24 }
 0x413   : > { %10767 = vmatmul.mubr.bf16.vlgmr.msra.gmra.mrb[252].mxu0 %v6974_v26 }
 0x414   : > { %10807 = vmatmul.mubr.bf16.vlgmr.msra.gmra.mrb[252].mxu1 %v7000_v27  ;;  %10815 = vmatpush1.bf16.xpose.msra.mxu0 %v13796_v28 }
 0x415   : > { %10855 = vmatpush1.bf16.xpose.msra.mxu1 %v13799_v29  ;;  %10816 = vmatprep.subr.bf16.mxu0 %v12901_v30  ;;  %v475_v30 = vld [vmem:[%s15436_s0 + $0x78] sm:$0xff] }
 0x416   : > { %10856 = vmatprep.subr.bf16.mxu1 %v12903_v31  ;;  %v9728_v34 = vpop.f32.mrb[200].mxu0  ;;  %10846 = vmatprep.mubr.bf16.mxu0 %v7024_v32 }
 0x417   : > { %v9768_v35 = vpop.f32.mrb[200].mxu1  ;;  %10886 = vmatprep.mubr.bf16.mxu1 %v7021_v33  ;;  %v9729_v36 = vadd.f32 %v9728_v34, %v9689_v17  ;;  %v9730_v37 = vpop.f32.mrb[201].mxu0  ;;  %v7023_v17 = vcombine.high %v7007_v54, %v7007_v54  ;;  %v12908_v33 = vcombine.low %v686_v14, %v686_v14  ;;  %v12910_v34 = vcombine.low %v687_v15, %v687_v15 }
 0x418   : > { %v9770_v38 = vpop.f32.mrb[201].mxu1  ;;  %v9731_v40 = vpop.f32.mrb[202].mxu0 }
 0x419   : > { %v9771_v41 = vpop.f32.mrb[202].mxu1  ;;  %v9769_v44 = vadd.f32 %v9768_v35, %v9729_v36  ;;  %v9732_v45 = vpop.f32.mrb[203].mxu0  ;;  %v13830_v38 = vld [vmem:[%s14337_s26 + $0x1dc] ss:$600 sps:$4 sm:$0xff]   ;;  %v7082_v40 = vrot.slane %v475_v30, %v14007_v6 }
 0x41a   : > { %v9772_v46 = vpop.f32.mrb[203].mxu1  ;;  %v688_v41 = vld [vmem:[%s14337_s26 + $0x688] sm:$0x11]  ;;  %v7056_v45 = vrot.slane %v7040_v13, %v14007_v6 }
 0x41b   : > { %v13828_v46 = vld [vmem:[%s14337_s26 + $0x1d8] ss:$600 sps:$4 sm:$0xff]  }
 0x41c   : > { %10817 = vmatpush1.bf16.xpose.msra.mxu0 %v12900_v42  ;;  %v689_v42 = vld [vmem:[%s14337_s26 + $0x690] sm:$0x11] }
 0x41d   : > { %10857 = vmatpush1.bf16.xpose.msra.mxu1 %v12902_v43  ;;  %10894 = vmatprep.subr.bf16.mxu0 %v13809_v47  ;;  %v7090_v43 = vcombine.high %v7082_v40, %v7082_v40  ;;  %v13831_v47 = vld [vmem:[%s14337_s26 + $0x1e0] ss:$600 sps:$4 sm:$0xff]   ;;  %v12915_v49 = vcombine.high %v689_v42, %v689_v42 }
 0x41e   : > { %10934 = vmatprep.subr.bf16.mxu1 %v13812_v48  ;;  %v12913_v48 = vcombine.high %v688_v41, %v688_v41 }
 0x41f   : > { %v7112_v51 = vrot.slane %v7090_v43, %v14007_v6 }
 0x421   : > { %v7122_v14 = vcombine.high %v7112_v51, %v7112_v51 }
 0x423   : > { %10847 = vmatmul.mubr.bf16.vlgmr.msra.gmra.mrb[0].mxu0 %v7022_v53 }
 0x424   : > { %10887 = vmatmul.mubr.bf16.vlgmr.msra.gmra.mrb[0].mxu1 %v7007_v54  ;;  %10895 = vmatpush1.bf16.xpose.msra.mxu0 %v13807_v55  ;;  %v7075_v54 = vcombine.high %v475_v30, %v475_v30  ;;  %v13854_v30 = vld [vmem:[%s14337_s26 + $0x204] ss:$600 sps:$4 sm:$0xff]  }
 0x425   : > { %10935 = vmatpush1.bf16.xpose.msra.mxu1 %v13810_v56  ;;  %10896 = vmatprep.subr.bf16.mxu0 %v12905_v57 }
 0x426   : > { %10936 = vmatprep.subr.bf16.mxu1 %v12907_v58  ;;  %v9808_v61 = vpop.f32.mrb[204].mxu0  ;;  %10926 = vmatprep.mubr.bf16.mxu0 %v7025_v59 }
 0x427   : > { %v9848_v62 = vpop.f32.mrb[204].mxu1  ;;  %10966 = vmatprep.mubr.bf16.mxu1 %v7063_v60  ;;  %v9809_v0 = vadd.f32 %v9808_v61, %v9769_v44  ;;  %v9810_v1 = vpop.f32.mrb[205].mxu0  ;;  %v7071_v44 = vcombine.high %v7049_v18, %v7049_v18  ;;  %v12912_v60 = vcombine.low %v688_v41, %v688_v41  ;;  %v12914_v61 = vcombine.low %v689_v42, %v689_v42 }
 0x428   : > { %v9850_v2 = vpop.f32.mrb[205].mxu1  ;;  %v9811_v3 = vpop.f32.mrb[206].mxu0  ;;  %v13840_v1 = vld [vmem:[%s14337_s26 + $0x1ec] ss:$600 sps:$4 sm:$0xff]  }
 0x429   : > { %v9851_v4 = vpop.f32.mrb[206].mxu1  ;;  %v9849_v8 = vadd.f32 %v9848_v62, %v9809_v0  ;;  %v9812_v9 = vpop.f32.mrb[207].mxu0  ;;  %v13843_v2 = vld [vmem:[%s14337_s26 + $0x1f4] ss:$600 sps:$4 sm:$0xff]   ;;  %v7089_v3 = vrot.slane %v7075_v54, %v14007_v6 }
 0x42a   : > { %v9852_v10 = vpop.f32.mrb[207].mxu1  ;;  %v690_v4 = vld [vmem:[%s14337_s26 + $0x698] sm:$0x11]  ;;  %v7098_v9 = vrot.slane %v7082_v40, %v14007_v6 }
 0x42b   : > { %v13838_v10 = vld [vmem:[%s14337_s26 + $0x1e8] ss:$600 sps:$4 sm:$0xff]  }
 0x42c   : > { %10897 = vmatpush1.bf16.xpose.msra.mxu0 %v12904_v5  ;;  %v691_v5 = vld [vmem:[%s14337_s26 + $0x6a0] sm:$0x11] }
 0x42d   : > { %10937 = vmatpush1.bf16.xpose.msra.mxu1 %v12906_v7  ;;  %10974 = vmatprep.subr.bf16.mxu0 %v13819_v11  ;;  %v7091_v7 = vcombine.high %v7089_v3, %v7089_v3  ;;  %v13841_v11 = vld [vmem:[%s14337_s26 + $0x1f0] ss:$600 sps:$4 sm:$0xff]   ;;  %v12919_v13 = vcombine.high %v691_v5, %v691_v5 }
 0x42e   : > { %11014 = vmatprep.subr.bf16.mxu1 %v13822_v12  ;;  %v12917_v12 = vcombine.high %v690_v4, %v690_v4 }
 0x42f   : > { %v7119_v15 = vrot.slane %v7091_v7, %v14007_v6 }
 0x431   : > { %v7123_v41 = vcombine.high %v7119_v15, %v7119_v15 }
 0x433   : > { %10927 = vmatmul.mubr.bf16.vlgmr.msra.gmra.mrb[4].mxu0 %v7023_v17 }
 0x434   : > { %10967 = vmatmul.mubr.bf16.vlgmr.msra.gmra.mrb[4].mxu1 %v7049_v18  ;;  %10975 = vmatpush1.bf16.xpose.msra.mxu0 %v13817_v19 }
 0x435   : > { %11015 = vmatpush1.bf16.xpose.msra.mxu1 %v13820_v20  ;;  %10976 = vmatprep.subr.bf16.mxu0 %v12909_v21  ;;  %v476_v21 = vld [vmem:[%s15436_s0 + $0x80] sm:$0xff] }
 0x436   : > { %11016 = vmatprep.subr.bf16.mxu1 %v12911_v22  ;;  %v9888_v25 = vpop.f32.mrb[208].mxu0  ;;  %11006 = vmatprep.mubr.bf16.mxu0 %v7073_v23 }
 0x437   : > { %v9928_v26 = vpop.f32.mrb[208].mxu1  ;;  %11046 = vmatprep.mubr.bf16.mxu1 %v7070_v24  ;;  %v9889_v27 = vadd.f32 %v9888_v25, %v9849_v8  ;;  %v9890_v28 = vpop.f32.mrb[209].mxu0  ;;  %v7072_v8 = vcombine.high %v7056_v45, %v7056_v45  ;;  %v12916_v24 = vcombine.low %v690_v4, %v690_v4  ;;  %v12918_v25 = vcombine.low %v691_v5, %v691_v5 }
 0x438   : > { %v9930_v29 = vpop.f32.mrb[209].mxu1  ;;  %v9891_v31 = vpop.f32.mrb[210].mxu0 }
 0x439   : > { %v9931_v32 = vpop.f32.mrb[210].mxu1  ;;  %v9929_v35 = vadd.f32 %v9928_v26, %v9889_v27  ;;  %v9892_v36 = vpop.f32.mrb[211].mxu0  ;;  %v13851_v29 = vld [vmem:[%s14337_s26 + $0x1fc] ss:$600 sps:$4 sm:$0xff]   ;;  %v7131_v31 = vrot.slane %v476_v21, %v14007_v6 }
 0x43a   : > { %v9932_v37 = vpop.f32.mrb[211].mxu1  ;;  %v692_v32 = vld [vmem:[%s14337_s26 + $0x6a8] sm:$0x11]  ;;  %v7105_v36 = vrot.slane %v7089_v3, %v14007_v6 }
 0x43b   : > { %v13849_v37 = vld [vmem:[%s14337_s26 + $0x1f8] ss:$600 sps:$4 sm:$0xff]  }
 0x43c   : > { %10977 = vmatpush1.bf16.xpose.msra.mxu0 %v12908_v33  ;;  %v693_v33 = vld [vmem:[%s14337_s26 + $0x6b0] sm:$0x11] }
 0x43d   : > { %11017 = vmatpush1.bf16.xpose.msra.mxu1 %v12910_v34  ;;  %11054 = vmatprep.subr.bf16.mxu0 %v13830_v38  ;;  %v7139_v34 = vcombine.high %v7131_v31, %v7131_v31  ;;  %v13852_v38 = vld [vmem:[%s14337_s26 + $0x200] ss:$600 sps:$4 sm:$0xff]   ;;  %v12923_v40 = vcombine.high %v693_v33, %v693_v33 }
 0x43e   : > { %11094 = vmatprep.subr.bf16.mxu1 %v13833_v39  ;;  %v12921_v39 = vcombine.high %v692_v32, %v692_v32 }
 0x43f   : > { %v7161_v42 = vrot.slane %v7139_v34, %v14007_v6 }
 0x441   : > { %v7171_v4 = vcombine.high %v7161_v42, %v7161_v42 }
 0x443   : > { %11007 = vmatmul.mubr.bf16.vlgmr.msra.gmra.mrb[8].mxu0 %v7071_v44 }
 0x444   : > { %11047 = vmatmul.mubr.bf16.vlgmr.msra.gmra.mrb[8].mxu1 %v7056_v45  ;;  %11055 = vmatpush1.bf16.xpose.msra.mxu0 %v13828_v46  ;;  %v7124_v45 = vcombine.high %v476_v21, %v476_v21  ;;  %v13875_v21 = vld [vmem:[%s14337_s26 + $0x224] ss:$600 sps:$4 sm:$0xff]  }
 0x445   : > { %11095 = vmatpush1.bf16.xpose.msra.mxu1 %v13831_v47  ;;  %11056 = vmatprep.subr.bf16.mxu0 %v12913_v48 }
 0x446   : > { %11096 = vmatprep.subr.bf16.mxu1 %v12915_v49  ;;  %v9968_v52 = vpop.f32.mrb[212].mxu0  ;;  %11086 = vmatprep.mubr.bf16.mxu0 %v7074_v50 }
 0x447   : > { %v10008_v53 = vpop.f32.mrb[212].mxu1  ;;  %11126 = vmatprep.mubr.bf16.mxu1 %v7112_v51  ;;  %v9969_v55 = vadd.f32 %v9968_v52, %v9929_v35  ;;  %v9970_v56 = vpop.f32.mrb[213].mxu0  ;;  %v7120_v35 = vcombine.high %v7098_v9, %v7098_v9  ;;  %v12920_v51 = vcombine.low %v692_v32, %v692_v32  ;;  %v12922_v52 = vcombine.low %v693_v33, %v693_v33 }
 0x448   : > { %v10010_v57 = vpop.f32.mrb[213].mxu1  ;;  %v9971_v58 = vpop.f32.mrb[214].mxu0  ;;  %v13861_v56 = vld [vmem:[%s14337_s26 + $0x20c] ss:$600 sps:$4 sm:$0xff]  }
 0x449   : > { %v10011_v59 = vpop.f32.mrb[214].mxu1  ;;  %v10009_v62 = vadd.f32 %v10008_v53, %v9969_v55  ;;  %v9972_v63 = vpop.f32.mrb[215].mxu0  ;;  %v13864_v57 = vld [vmem:[%s14337_s26 + $0x214] ss:$600 sps:$4 sm:$0xff]   ;;  %v7138_v58 = vrot.slane %v7124_v45, %v14007_v6 }
 0x44a   : > { %v10012_v0 = vpop.f32.mrb[215].mxu1  ;;  %v694_v59 = vld [vmem:[%s14337_s26 + $0x6b8] sm:$0x11]  ;;  %v7147_v63 = vrot.slane %v7131_v31, %v14007_v6 }
 0x44b   : > { %v13859_v0 = vld [vmem:[%s14337_s26 + $0x208] ss:$600 sps:$4 sm:$0xff]  }
 0x44c   : > { %11057 = vmatpush1.bf16.xpose.msra.mxu0 %v12912_v60  ;;  %v695_v60 = vld [vmem:[%s14337_s26 + $0x6c0] sm:$0x11] }
 0x44d   : > { %11097 = vmatpush1.bf16.xpose.msra.mxu1 %v12914_v61  ;;  %11134 = vmatprep.subr.bf16.mxu0 %v13840_v1  ;;  %v7140_v61 = vcombine.high %v7138_v58, %v7138_v58  ;;  %v13862_v1 = vld [vmem:[%s14337_s26 + $0x210] ss:$600 sps:$4 sm:$0xff]   ;;  %v12927_v3 = vcombine.high %v695_v60, %v695_v60 }
 0x44e   : > { %11174 = vmatprep.subr.bf16.mxu1 %v13843_v2  ;;  %v12925_v2 = vcombine.high %v694_v59, %v694_v59 }
 0x44f   : > { %v7168_v5 = vrot.slane %v7140_v61, %v14007_v6 }
 0x451   : > { %v7172_v32 = vcombine.high %v7168_v5, %v7168_v5 }
 0x453   : > { %11087 = vmatmul.mubr.bf16.vlgmr.msra.gmra.mrb[12].mxu0 %v7072_v8 }
 0x454   : > { %11127 = vmatmul.mubr.bf16.vlgmr.msra.gmra.mrb[12].mxu1 %v7098_v9  ;;  %11135 = vmatpush1.bf16.xpose.msra.mxu0 %v13838_v10 }
 0x455   : > { %11175 = vmatpush1.bf16.xpose.msra.mxu1 %v13841_v11  ;;  %11136 = vmatprep.subr.bf16.mxu0 %v12917_v12  ;;  %v477_v12 = vld [vmem:[%s15436_s0 + $0x88] sm:$0xff] }
 0x456   : > { %11176 = vmatprep.subr.bf16.mxu1 %v12919_v13  ;;  %v10048_v16 = vpop.f32.mrb[216].mxu0  ;;  %11166 = vmatprep.mubr.bf16.mxu0 %v7122_v14 }
 0x457   : > { %v10088_v17 = vpop.f32.mrb[216].mxu1  ;;  %11206 = vmatprep.mubr.bf16.mxu1 %v7119_v15  ;;  %v10049_v18 = vadd.f32 %v10048_v16, %v10009_v62  ;;  %v10050_v19 = vpop.f32.mrb[217].mxu0  ;;  %v7121_v62 = vcombine.high %v7105_v36, %v7105_v36  ;;  %v12924_v15 = vcombine.low %v694_v59, %v694_v59  ;;  %v12926_v16 = vcombine.low %v695_v60, %v695_v60 }
 0x458   : > { %v10090_v20 = vpop.f32.mrb[217].mxu1  ;;  %v10051_v22 = vpop.f32.mrb[218].mxu0 }
 0x459   : > { %v10091_v23 = vpop.f32.mrb[218].mxu1  ;;  %v10089_v26 = vadd.f32 %v10088_v17, %v10049_v18  ;;  %v10052_v27 = vpop.f32.mrb[219].mxu0  ;;  %v13872_v20 = vld [vmem:[%s14337_s26 + $0x21c] ss:$600 sps:$4 sm:$0xff]   ;;  %v7180_v22 = vrot.slane %v477_v12, %v14007_v6 }
 0x45a   : > { %v10092_v28 = vpop.f32.mrb[219].mxu1  ;;  %v696_v23 = vld [vmem:[%s14337_s26 + $0x6c8] sm:$0x11]  ;;  %v7154_v27 = vrot.slane %v7138_v58, %v14007_v6 }
 0x45b   : > { %v13870_v28 = vld [vmem:[%s14337_s26 + $0x218] ss:$600 sps:$4 sm:$0xff]  }
 0x45c   : > { %11137 = vmatpush1.bf16.xpose.msra.mxu0 %v12916_v24  ;;  %v697_v24 = vld [vmem:[%s14337_s26 + $0x6d0] sm:$0x11] }
 0x45d   : > { %11177 = vmatpush1.bf16.xpose.msra.mxu1 %v12918_v25  ;;  %11214 = vmatprep.subr.bf16.mxu0 %v13851_v29  ;;  %v7188_v25 = vcombine.high %v7180_v22, %v7180_v22  ;;  %v13873_v29 = vld [vmem:[%s14337_s26 + $0x220] ss:$600 sps:$4 sm:$0xff]   ;;  %v12931_v31 = vcombine.high %v697_v24, %v697_v24 }
 0x45e   : > { %11254 = vmatprep.subr.bf16.mxu1 %v13854_v30  ;;  %v12929_v30 = vcombine.high %v696_v23, %v696_v23 }
 0x45f   : > { %v7210_v33 = vrot.slane %v7188_v25, %v14007_v6 }
 0x461   : > { %v7220_v59 = vcombine.high %v7210_v33, %v7210_v33 }
 0x463   : > { %11167 = vmatmul.mubr.bf16.vlgmr.msra.gmra.mrb[16].mxu0 %v7120_v35 }
 0x464   : > { %11207 = vmatmul.mubr.bf16.vlgmr.msra.gmra.mrb[16].mxu1 %v7105_v36  ;;  %11215 = vmatpush1.bf16.xpose.msra.mxu0 %v13849_v37  ;;  %v7173_v36 = vcombine.high %v477_v12, %v477_v12  ;;  %v13896_v12 = vld [vmem:[%s14337_s26 + $0x244] ss:$600 sps:$4 sm:$0xff]  }
 0x465   : > { %11255 = vmatpush1.bf16.xpose.msra.mxu1 %v13852_v38  ;;  %11216 = vmatprep.subr.bf16.mxu0 %v12921_v39 }
 0x466   : > { %11256 = vmatprep.subr.bf16.mxu1 %v12923_v40  ;;  %v10128_v43 = vpop.f32.mrb[220].mxu0  ;;  %11246 = vmatprep.mubr.bf16.mxu0 %v7123_v41 }
 0x467   : > { %v10168_v44 = vpop.f32.mrb[220].mxu1  ;;  %11286 = vmatprep.mubr.bf16.mxu1 %v7161_v42  ;;  %v10129_v46 = vadd.f32 %v10128_v43, %v10089_v26  ;;  %v10130_v47 = vpop.f32.mrb[221].mxu0  ;;  %v7169_v26 = vcombine.high %v7147_v63, %v7147_v63  ;;  %v12928_v42 = vcombine.low %v696_v23, %v696_v23  ;;  %v12930_v43 = vcombine.low %v697_v24, %v697_v24 }
 0x468   : > { %v10170_v48 = vpop.f32.mrb[221].mxu1  ;;  %v10131_v49 = vpop.f32.mrb[222].mxu0  ;;  %v13882_v47 = vld [vmem:[%s14337_s26 + $0x22c] ss:$600 sps:$4 sm:$0xff]  }
 0x469   : > { %v10171_v50 = vpop.f32.mrb[222].mxu1  ;;  %v10169_v53 = vadd.f32 %v10168_v44, %v10129_v46  ;;  %v10132_v54 = vpop.f32.mrb[223].mxu0  ;;  %v13885_v48 = vld [vmem:[%s14337_s26 + $0x234] ss:$600 sps:$4 sm:$0xff]   ;;  %v7187_v49 = vrot.slane %v7173_v36, %v14007_v6 }
 0x46a   : > { %v10172_v55 = vpop.f32.mrb[223].mxu1  ;;  %v698_v50 = vld [vmem:[%s14337_s26 + $0x6d8] sm:$0x11]  ;;  %v7196_v54 = vrot.slane %v7180_v22, %v14007_v6 }
 0x46b   : > { %v13880_v55 = vld [vmem:[%s14337_s26 + $0x228] ss:$600 sps:$4 sm:$0xff]  }
 0x46c   : > { %11217 = vmatpush1.bf16.xpose.msra.mxu0 %v12920_v51  ;;  %v699_v51 = vld [vmem:[%s14337_s26 + $0x6e0] sm:$0x11] }
 0x46d   : > { %11257 = vmatpush1.bf16.xpose.msra.mxu1 %v12922_v52  ;;  %11294 = vmatprep.subr.bf16.mxu0 %v13861_v56  ;;  %v7189_v52 = vcombine.high %v7187_v49, %v7187_v49  ;;  %v13883_v56 = vld [vmem:[%s14337_s26 + $0x230] ss:$600 sps:$4 sm:$0xff]   ;;  %v12935_v58 = vcombine.high %v699_v51, %v699_v51 }
 0x46e   : > { %11334 = vmatprep.subr.bf16.mxu1 %v13864_v57  ;;  %v12933_v57 = vcombine.high %v698_v50, %v698_v50 }
 0x46f   : > { %v7217_v60 = vrot.slane %v7189_v52, %v14007_v6 }
 0x471   : > { %v7221_v23 = vcombine.high %v7217_v60, %v7217_v60 }
 0x473   : > { %11247 = vmatmul.mubr.bf16.vlgmr.msra.gmra.mrb[20].mxu0 %v7121_v62 }
 0x474   : > { %11287 = vmatmul.mubr.bf16.vlgmr.msra.gmra.mrb[20].mxu1 %v7147_v63  ;;  %11295 = vmatpush1.bf16.xpose.msra.mxu0 %v13859_v0 }
 0x475   : > { %11335 = vmatpush1.bf16.xpose.msra.mxu1 %v13862_v1  ;;  %11296 = vmatprep.subr.bf16.mxu0 %v12925_v2  ;;  %v478_v2 = vld [vmem:[%s15436_s0 + $0x90] sm:$0x3f] }
 0x476   : > { %11336 = vmatprep.subr.bf16.mxu1 %v12927_v3  ;;  %v10208_v7 = vpop.f32.mrb[224].mxu0  ;;  %11326 = vmatprep.mubr.bf16.mxu0 %v7171_v4 }
 0x477   : > { %v10248_v8 = vpop.f32.mrb[224].mxu1  ;;  %11366 = vmatprep.mubr.bf16.mxu1 %v7168_v5  ;;  %v10209_v9 = vadd.f32 %v10208_v7, %v10169_v53  ;;  %v10210_v10 = vpop.f32.mrb[225].mxu0  ;;  %v7170_v53 = vcombine.high %v7154_v27, %v7154_v27  ;;  %v12932_v5 = vcombine.low %v698_v50, %v698_v50  ;;  %v12934_v7 = vcombine.low %v699_v51, %v699_v51 }
 0x478   : > { %v10250_v11 = vpop.f32.mrb[225].mxu1  ;;  %v10211_v13 = vpop.f32.mrb[226].mxu0 }
 0x479   : > { %v10251_v14 = vpop.f32.mrb[226].mxu1  ;;  %v10249_v17 = vadd.f32 %v10248_v8, %v10209_v9  ;;  %v10212_v18 = vpop.f32.mrb[227].mxu0  ;;  %v13893_v11 = vld [vmem:[%s14337_s26 + $0x23c] ss:$600 sps:$4 sm:$0xff]   ;;  %v7229_v13 = vrot.slane %v478_v2, %v14007_v6 }
 0x47a   : > { %v10252_v19 = vpop.f32.mrb[227].mxu1  ;;  %v700_v14 = vld [vmem:[%s14337_s26 + $0x6e8] sm:$0x11]  ;;  %v7203_v18 = vrot.slane %v7187_v49, %v14007_v6 }
 0x47b   : > { %v13891_v19 = vld [vmem:[%s14337_s26 + $0x238] ss:$600 sps:$4 sm:$0xff]  }
 0x47c   : > { %11297 = vmatpush1.bf16.xpose.msra.mxu0 %v12924_v15  ;;  %v701_v15 = vld [vmem:[%s14337_s26 + $0x6f0] sm:$0x11] }
 0x47d   : > { %11337 = vmatpush1.bf16.xpose.msra.mxu1 %v12926_v16  ;;  %11374 = vmatprep.subr.bf16.mxu0 %v13872_v20  ;;  %v7237_v16 = vcombine.high %v7229_v13, %v7229_v13  ;;  %v13894_v20 = vld [vmem:[%s14337_s26 + $0x240] ss:$600 sps:$4 sm:$0xff]   ;;  %v12939_v22 = vcombine.high %v701_v15, %v701_v15 }
 0x47e   : > { %11414 = vmatprep.subr.bf16.mxu1 %v13875_v21  ;;  %v12937_v21 = vcombine.high %v700_v14, %v700_v14 }
 0x47f   : > { %v7259_v24 = vrot.slane %v7237_v16, %v14007_v6 }
 0x481   : > { %v7268_v50 = vcombine.high %v7259_v24, %v7259_v24 }
 0x483   : > { %11327 = vmatmul.mubr.bf16.vlgmr.msra.gmra.mrb[24].mxu0 %v7169_v26 }
 0x484   : > { %11367 = vmatmul.mubr.bf16.vlgmr.msra.gmra.mrb[24].mxu1 %v7154_v27  ;;  %11375 = vmatpush1.bf16.xpose.msra.mxu0 %v13870_v28  ;;  %v7222_v27 = vcombine.high %v478_v2, %v478_v2 }
 0x485   : > { %11415 = vmatpush1.bf16.xpose.msra.mxu1 %v13873_v29  ;;  %11376 = vmatprep.subr.bf16.mxu0 %v12929_v30 }
 0x486   : > { %11416 = vmatprep.subr.bf16.mxu1 %v12931_v31  ;;  %v10288_v34 = vpop.f32.mrb[228].mxu0  ;;  %11406 = vmatprep.mubr.bf16.mxu0 %v7172_v32 }
 0x487   : > { %v10328_v35 = vpop.f32.mrb[228].mxu1  ;;  %11446 = vmatprep.mubr.bf16.mxu1 %v7210_v33  ;;  %v10289_v37 = vadd.f32 %v10288_v34, %v10249_v17  ;;  %v10290_v38 = vpop.f32.mrb[229].mxu0  ;;  %v7218_v17 = vcombine.high %v7196_v54, %v7196_v54  ;;  %v12936_v33 = vcombine.low %v700_v14, %v700_v14  ;;  %v12938_v34 = vcombine.low %v701_v15, %v701_v15 }
 0x488   : > { %v10330_v39 = vpop.f32.mrb[229].mxu1  ;;  %v10291_v40 = vpop.f32.mrb[230].mxu0  ;;  %v13903_v38 = vld [vmem:[%s14337_s26 + $0x24c] ss:$600 sps:$4 sm:$0xff]  }
 0x489   : > { %v10331_v41 = vpop.f32.mrb[230].mxu1  ;;  %v10329_v44 = vadd.f32 %v10328_v35, %v10289_v37  ;;  %v10292_v45 = vpop.f32.mrb[231].mxu0  ;;  %v13906_v39 = vld [vmem:[%s14337_s26 + $0x254] ss:$600 sps:$4 sm:$0xff]   ;;  %v7236_v40 = vrot.slane %v7222_v27, %v14007_v6 }
 0x48a   : > { %v10332_v46 = vpop.f32.mrb[231].mxu1  ;;  %v702_v41 = vld [vmem:[%s14337_s26 + $0x6f8] sm:$0x11]  ;;  %v7245_v45 = vrot.slane %v7229_v13, %v14007_v6 }
 0x48b   : > { %v13901_v46 = vld [vmem:[%s14337_s26 + $0x248] ss:$600 sps:$4 sm:$0xff]  }
 0x48c   : > { %11377 = vmatpush1.bf16.xpose.msra.mxu0 %v12928_v42  ;;  %v703_v42 = vld [vmem:[%s14337_s26 + $0x700] sm:$0x11] }
 0x48d   : > { %11417 = vmatpush1.bf16.xpose.msra.mxu1 %v12930_v43  ;;  %11454 = vmatprep.subr.bf16.mxu0 %v13882_v47  ;;  %v7238_v43 = vcombine.high %v7236_v40, %v7236_v40  ;;  %v13904_v47 = vld [vmem:[%s14337_s26 + $0x250] ss:$600 sps:$4 sm:$0xff]   ;;  %v12943_v49 = vcombine.high %v703_v42, %v703_v42 }
 0x48e   : > { %11494 = vmatprep.subr.bf16.mxu1 %v13885_v48  ;;  %v12941_v48 = vcombine.high %v702_v41, %v702_v41 }
 0x48f   : > { %v7266_v51 = vrot.slane %v7238_v43, %v14007_v6 }
 0x493   : > { %11407 = vmatmul.mubr.bf16.vlgmr.msra.gmra.mrb[28].mxu0 %v7170_v53 }
 0x494   : > { %11447 = vmatmul.mubr.bf16.vlgmr.msra.gmra.mrb[28].mxu1 %v7196_v54  ;;  %11455 = vmatpush1.bf16.xpose.msra.mxu0 %v13880_v55 }
 0x495   : > { %11495 = vmatpush1.bf16.xpose.msra.mxu1 %v13883_v56  ;;  %11456 = vmatprep.subr.bf16.mxu0 %v12933_v57 }
 0x496   : > { %11496 = vmatprep.subr.bf16.mxu1 %v12935_v58  ;;  %v10368_v61 = vpop.f32.mrb[232].mxu0  ;;  %11486 = vmatprep.mubr.bf16.mxu0 %v7220_v59  ;;  %v12940_v59 = vcombine.low %v702_v41, %v702_v41 }
 0x497   : > { %v10408_v62 = vpop.f32.mrb[232].mxu1  ;;  %11526 = vmatprep.mubr.bf16.mxu1 %v7217_v60  ;;  %v10369_v63 = vadd.f32 %v10368_v61, %v10329_v44  ;;  %v10370_v0 = vpop.f32.mrb[233].mxu0  ;;  %v7219_v44 = vcombine.high %v7203_v18, %v7203_v18  ;;  %v12942_v60 = vcombine.low %v703_v42, %v703_v42 }
 0x498   : > { %v10410_v1 = vpop.f32.mrb[233].mxu1  ;;  %v10371_v3 = vpop.f32.mrb[234].mxu0  ;;  %v7267_v0 = vcombine.high %v7245_v45, %v7245_v45 }
 0x499   : > { %v10411_v4 = vpop.f32.mrb[234].mxu1  ;;  %v10409_v8 = vadd.f32 %v10408_v62, %v10369_v63  ;;  %v10372_v9 = vpop.f32.mrb[235].mxu0  ;;  %v7252_v1 = vrot.slane %v7236_v40, %v14007_v6 }
 0x49a   : > { %v10412_v10 = vpop.f32.mrb[235].mxu1 }
 0x49c   : > { %11457 = vmatpush1.bf16.xpose.msra.mxu0 %v12932_v5 }
 0x49d   : > { %11497 = vmatpush1.bf16.xpose.msra.mxu1 %v12934_v7  ;;  %11534 = vmatprep.subr.bf16.mxu0 %v13893_v11 }
 0x49e   : > { %11574 = vmatprep.subr.bf16.mxu1 %v13896_v12 }
 0x4a3   : > { %11487 = vmatmul.mubr.bf16.vlgmr.msra.gmra.mrb[32].mxu0 %v7218_v17 }
 0x4a4   : > { %11527 = vmatmul.mubr.bf16.vlgmr.msra.gmra.mrb[32].mxu1 %v7203_v18  ;;  %11535 = vmatpush1.bf16.xpose.msra.mxu0 %v13891_v19 }
 0x4a5   : > { %11575 = vmatpush1.bf16.xpose.msra.mxu1 %v13894_v20  ;;  %11536 = vmatprep.subr.bf16.mxu0 %v12937_v21 }
 0x4a6   : > { %11576 = vmatprep.subr.bf16.mxu1 %v12939_v22  ;;  %v10448_v25 = vpop.f32.mrb[236].mxu0  ;;  %11566 = vmatprep.mubr.bf16.mxu0 %v7221_v23 }
 0x4a7   : > { %v10488_v26 = vpop.f32.mrb[236].mxu1  ;;  %11606 = vmatprep.mubr.bf16.mxu1 %v7259_v24  ;;  %v10449_v28 = vadd.f32 %v10448_v25, %v10409_v8  ;;  %v10450_v29 = vpop.f32.mrb[237].mxu0 }
 0x4a8   : > { %v10490_v30 = vpop.f32.mrb[237].mxu1  ;;  %v10451_v31 = vpop.f32.mrb[238].mxu0 }
 0x4a9   : > { %v10491_v32 = vpop.f32.mrb[238].mxu1  ;;  %v10489_v35 = vadd.f32 %v10488_v26, %v10449_v28  ;;  %v10452_v36 = vpop.f32.mrb[239].mxu0 }
 0x4aa   : > { %v10492_v37 = vpop.f32.mrb[239].mxu1 }
 0x4ac   : > { %11537 = vmatpush1.bf16.xpose.msra.mxu0 %v12936_v33 }
 0x4ad   : > { %11577 = vmatpush1.bf16.xpose.msra.mxu1 %v12938_v34  ;;  %11614 = vmatprep.subr.bf16.mxu0 %v13903_v38 }
 0x4ae   : > { %11654 = vmatprep.subr.bf16.mxu1 %v13906_v39 }
 0x4b3   : > { %11567 = vmatmul.mubr.bf16.vlgmr.msra.gmra.mrb[36].mxu0 %v7219_v44 }
 0x4b4   : > { %11607 = vmatmul.mubr.bf16.vlgmr.msra.gmra.mrb[36].mxu1 %v7245_v45  ;;  %11615 = vmatpush1.bf16.xpose.msra.mxu0 %v13901_v46 }
 0x4b5   : > { %11655 = vmatpush1.bf16.xpose.msra.mxu1 %v13904_v47  ;;  %11616 = vmatprep.subr.bf16.mxu0 %v12941_v48 }
 0x4b6   : > { %11656 = vmatprep.subr.bf16.mxu1 %v12943_v49  ;;  %v10528_v52 = vpop.f32.mrb[240].mxu0  ;;  %11646 = vmatprep.mubr.bf16.mxu0 %v7268_v50 }
 0x4b7   : > { %v10568_v53 = vpop.f32.mrb[240].mxu1  ;;  %11686 = vmatprep.mubr.bf16.mxu1 %v7266_v51  ;;  %v10529_v54 = vadd.f32 %v10528_v52, %v10489_v35  ;;  %v10530_v55 = vpop.f32.mrb[241].mxu0 }
 0x4b8   : > { %v10570_v56 = vpop.f32.mrb[241].mxu1  ;;  %v10531_v57 = vpop.f32.mrb[242].mxu0 }
 0x4b9   : > { %v10571_v58 = vpop.f32.mrb[242].mxu1  ;;  %v10569_v61 = vadd.f32 %v10568_v53, %v10529_v54  ;;  %v10532_v62 = vpop.f32.mrb[243].mxu0 }
 0x4ba   : > { %v10572_v63 = vpop.f32.mrb[243].mxu1 }
 0x4bc   : > { %11617 = vmatpush1.bf16.xpose.msra.mxu0 %v12940_v59 }
 0x4bd   : > { %11657 = vmatpush1.bf16.xpose.msra.mxu1 %v12942_v60 }
 0x4c3   : > { %11647 = vmatmul.mubr.bf16.vlgmr.msra.gmra.mrb[40].mxu0 %v7267_v0 }
 0x4c4   : > { %11687 = vmatmul.mubr.bf16.vlgmr.msra.gmra.mrb[40].mxu1 %v7252_v1 }
 0x4c6   : > { %v10608_v2 = vpop.f32.mrb[244].mxu0 }
 0x4c7   : > { %v10648_v3 = vpop.f32.mrb[244].mxu1  ;;  %v10609_v4 = vadd.f32 %v10608_v2, %v10569_v61  ;;  %v10610_v5 = vpop.f32.mrb[245].mxu0 }
 0x4c8   : > { %v10650_v7 = vpop.f32.mrb[245].mxu1  ;;  %v10611_v8 = vpop.f32.mrb[246].mxu0 }
 0x4c9   : > { %v10651_v9 = vpop.f32.mrb[246].mxu1  ;;  %v10649_v10 = vadd.f32 %v10648_v3, %v10609_v4  ;;  %v10612_v11 = vpop.f32.mrb[247].mxu0 }
 0x4ca   : > { %v10652_v12 = vpop.f32.mrb[247].mxu1 }
 0x4d6   : > { %v10688_v13 = vpop.f32.mrb[248].mxu0 }
 0x4d7   : > { %v10728_v14 = vpop.f32.mrb[248].mxu1  ;;  %v10689_v15 = vadd.f32 %v10688_v13, %v10649_v10  ;;  %v10690_v16 = vpop.f32.mrb[249].mxu0 }
 0x4d8   : > { %v10730_v17 = vpop.f32.mrb[249].mxu1  ;;  %v10691_v18 = vpop.f32.mrb[250].mxu0 }
 0x4d9   : > { %v10731_v19 = vpop.f32.mrb[250].mxu1  ;;  %v10729_v6 = vadd.f32 %v10728_v14, %v10689_v15  ;;  %v10692_v20 = vpop.f32.mrb[251].mxu0 }
 0x4da   : > { %v10732_v21 = vpop.f32.mrb[251].mxu1 }
 0x4e6   : > { %v10768_v22 = vpop.f32.mrb[252].mxu0 }
 0x4e7   : > { %v10808_v23 = vpop.f32.mrb[252].mxu1  ;;  %v10769_v24 = vadd.f32 %v10768_v22, %v10729_v6  ;;  %v10770_v25 = vpop.f32.mrb[253].mxu0 }
 0x4e8   : > { %v10810_v26 = vpop.f32.mrb[253].mxu1  ;;  %v10771_v27 = vpop.f32.mrb[254].mxu0 }
 0x4e9   : > { %v10811_v28 = vpop.f32.mrb[254].mxu1  ;;  %v10809_v29 = vadd.f32 %v10808_v23, %v10769_v24  ;;  %v10772_v30 = vpop.f32.mrb[255].mxu0 }
 0x4ea   : > { %v10812_v31 = vpop.f32.mrb[255].mxu1 }
 0x4f6   : > { %v10848_v32 = vpop.f32.mrb[0].mxu0 }
 0x4f7   : > { %v10888_v33 = vpop.f32.mrb[0].mxu1  ;;  %v10849_v34 = vadd.f32 %v10848_v32, %v10809_v29  ;;  %v10850_v35 = vpop.f32.mrb[1].mxu0 }
 0x4f8   : > { %v10890_v36 = vpop.f32.mrb[1].mxu1  ;;  %v10851_v37 = vpop.f32.mrb[2].mxu0 }
 0x4f9   : > { %v10891_v38 = vpop.f32.mrb[2].mxu1  ;;  %v10889_v39 = vadd.f32 %v10888_v33, %v10849_v34  ;;  %v10852_v40 = vpop.f32.mrb[3].mxu0 }
 0x4fa   : > { %v10892_v41 = vpop.f32.mrb[3].mxu1 }
 0x506   : > { %v10928_v42 = vpop.f32.mrb[4].mxu0 }
 0x507   : > { %v10968_v43 = vpop.f32.mrb[4].mxu1  ;;  %v10929_v44 = vadd.f32 %v10928_v42, %v10889_v39  ;;  %v10930_v45 = vpop.f32.mrb[5].mxu0 }
 0x508   : > { %v10970_v46 = vpop.f32.mrb[5].mxu1  ;;  %v10931_v47 = vpop.f32.mrb[6].mxu0 }
 0x509   : > { %v10971_v48 = vpop.f32.mrb[6].mxu1  ;;  %v10969_v49 = vadd.f32 %v10968_v43, %v10929_v44  ;;  %v10932_v50 = vpop.f32.mrb[7].mxu0 }
 0x50a   : > { %v10972_v51 = vpop.f32.mrb[7].mxu1 }
 0x516   : > { %v11008_v52 = vpop.f32.mrb[8].mxu0 }
 0x517   : > { %v11048_v53 = vpop.f32.mrb[8].mxu1  ;;  %v11009_v54 = vadd.f32 %v11008_v52, %v10969_v49  ;;  %v11010_v55 = vpop.f32.mrb[9].mxu0 }
 0x518   : > { %v11050_v56 = vpop.f32.mrb[9].mxu1  ;;  %v11011_v57 = vpop.f32.mrb[10].mxu0 }
 0x519   : > { %v11051_v58 = vpop.f32.mrb[10].mxu1  ;;  %v11049_v59 = vadd.f32 %v11048_v53, %v11009_v54  ;;  %v11012_v60 = vpop.f32.mrb[11].mxu0 }
 0x51a   : > { %v11052_v61 = vpop.f32.mrb[11].mxu1 }
 0x526   : > { %v11088_v62 = vpop.f32.mrb[12].mxu0 }
 0x527   : > { %v11128_v63 = vpop.f32.mrb[12].mxu1  ;;  %v11089_v0 = vadd.f32 %v11088_v62, %v11049_v59  ;;  %v11090_v1 = vpop.f32.mrb[13].mxu0 }
 0x528   : > { %v11130_v2 = vpop.f32.mrb[13].mxu1  ;;  %v11091_v3 = vpop.f32.mrb[14].mxu0 }
 0x529   : > { %v11131_v4 = vpop.f32.mrb[14].mxu1  ;;  %v11129_v5 = vadd.f32 %v11128_v63, %v11089_v0  ;;  %v11092_v7 = vpop.f32.mrb[15].mxu0 }
 0x52a   : > { %v11132_v8 = vpop.f32.mrb[15].mxu1 }
 0x536   : > { %v11168_v9 = vpop.f32.mrb[16].mxu0 }
 0x537   : > { %v11208_v10 = vpop.f32.mrb[16].mxu1  ;;  %v11169_v11 = vadd.f32 %v11168_v9, %v11129_v5  ;;  %v11170_v12 = vpop.f32.mrb[17].mxu0 }
 0x538   : > { %v11210_v13 = vpop.f32.mrb[17].mxu1  ;;  %v11171_v14 = vpop.f32.mrb[18].mxu0 }
 0x539   : > { %v11211_v15 = vpop.f32.mrb[18].mxu1  ;;  %v11209_v16 = vadd.f32 %v11208_v10, %v11169_v11  ;;  %v11172_v17 = vpop.f32.mrb[19].mxu0  ;;  %v12944_v10 = vld [vmem:[%s449_s18] ss:$0 sm:$0xff] }
 0x53a   : > { %v11212_v18 = vpop.f32.mrb[19].mxu1  ;;  %v11746_v17 = vld [vmem:[%s15440_s4] sm:$0xff] (!%p12945_p4) }
 0x53b   : > { %v11747_v18 = vld [vmem:[%s15440_s4 + $0x8] sm:$0xff] (!%p12945_p4) }
 0x546   : > { %v11248_v19 = vpop.f32.mrb[20].mxu0 }
 0x547   : > { %v11288_v6 = vpop.f32.mrb[20].mxu1  ;;  %v11249_v20 = vadd.f32 %v11248_v19, %v11209_v16  ;;  %v11250_v21 = vpop.f32.mrb[21].mxu0  ;;  %v11748_v19 = vld [vmem:[%s15440_s4 + $0x10] sm:$0xff] (!%p12945_p4) }
 0x548   : > { %v11290_v22 = vpop.f32.mrb[21].mxu1  ;;  %v11251_v23 = vpop.f32.mrb[22].mxu0  ;;  %v11749_v21 = vld [vmem:[%s15440_s4 + $0x18] sm:$0xff] (!%p12945_p4) }
 0x549   : > { %v11291_v24 = vpop.f32.mrb[22].mxu1  ;;  %v11289_v25 = vadd.f32 %v11288_v6, %v11249_v20  ;;  %v11252_v26 = vpop.f32.mrb[23].mxu0  ;;  %v13921_v6 = vmov (!%p12945_p4), 0.0|0.0   ;;  %v12952_v20 = vpack.c.bf16 (!%p12945_p4), %v11747_v18, %v11746_v17  ;;  %v12955_v22 = vpack.c.bf16 (!%p12945_p4), %v11749_v21, %v11748_v19  ;;  %v11750_v23 = vld [vmem:[%s15440_s4 + $0x20] sm:$0xff] (!%p12945_p4)  ;;  %v11734_v17 = vld [vmem:[%s15438_s2 + $0xd0] sm:$0xff] (!%p12945_p4)  ;;  %v11717_v18 = vld [vmem:[%s15438_s2 + $0x48] sm:$0xff] (!%p12945_p4) }
 0x54a   : > { %v11292_v27 = vpop.f32.mrb[23].mxu1  ;;  %12951 = vmatprep.subr.bf16.mxu0 (!%p12945_p4), %v13921_v6  ;;  %13047 = vmatprep.subr.bf16.mxu1 (!%p12945_p4), %v13921_v6  ;;  %v11751_v24 = vld [vmem:[%s15440_s4 + $0x28] sm:$0xff] (!%p12945_p4)  ;;  %v11752_v26 = vld [vmem:[%s15440_s4 + $0x30] sm:$0xff] (!%p12945_p4)  ;;  %v11719_v21 = vld [vmem:[%s15438_s2 + $0x58] sm:$0xff] (!%p12945_p4) }
 0x54b   : > { %12953 = vmatpush1.bf16.msra.mxu0 (!%p12945_p4), %v12952_v20  ;;  %13063 = vmatpush1.bf16.msra.mxu1 (!%p12945_p4), %v12952_v20  ;;  %v11753_v27 = vld [vmem:[%s15440_s4 + $0x38] sm:$0xff] (!%p12945_p4)  ;;  %v11737_v19 = vld [vmem:[%s15438_s2 + $0xe8] sm:$0xff] (!%p12945_p4)  ;;  %v11736_v20 = vld [vmem:[%s15438_s2 + $0xe0] sm:$0xff] (!%p12945_p4) }
 0x54c   : > { %12954 = vmatprep.subr.bf16.mxu0 (!%p12945_p4), %v13921_v6  ;;  %13048 = vmatprep.subr.bf16.mxu1 (!%p12945_p4), %v13921_v6 }
 0x54f   : > { %12956 = vmatpush1.bf16.msra.mxu0 (!%p12945_p4), %v12955_v22  ;;  %13064 = vmatpush1.bf16.msra.mxu1 (!%p12945_p4), %v12955_v22  ;;  %v11739_v22 = vld [vmem:[%s15438_s2 + $0xf8] sm:$0xff] (!%p12945_p4) }
 0x550   : > { %12957 = vmatprep.subr.bf16.mxu0 (!%p12945_p4), %v13921_v6  ;;  %13049 = vmatprep.subr.bf16.mxu1 (!%p12945_p4), %v13921_v6 }
 0x556   : > { %v11328_v28 = vpop.f32.mrb[24].mxu0 }
 0x557   : > { %v11368_v29 = vpop.f32.mrb[24].mxu1  ;;  %v11329_v30 = vadd.f32 %v11328_v28, %v11289_v25  ;;  %v11330_v31 = vpop.f32.mrb[25].mxu0  ;;  %v12958_v25 = vpack.c.bf16 (!%p12945_p4), %v11751_v24, %v11750_v23  ;;  %v11709_v28 = vld [vmem:[%s15438_s2 + $0x8] sm:$0xff] (!%p12945_p4)  ;;  %v11718_v23 = vld [vmem:[%s15438_s2 + $0x50] sm:$0xff] (!%p12945_p4) }
 0x558   : > { %v11370_v32 = vpop.f32.mrb[25].mxu1  ;;  %v11331_v33 = vpop.f32.mrb[26].mxu0  ;;  %v11754_v31 = vld [vmem:[%s15440_s4 + $0x40] sm:$0xff] (!%p12945_p4)  ;;  %11849 = vmatprep.mubr.f32.mxu0 (!%p12945_p4), %v11709_v28  ;;  %v11738_v24 = vld [vmem:[%s15438_s2 + $0xf0] sm:$0xff] (!%p12945_p4) }
 0x559   : > { %v11371_v34 = vpop.f32.mrb[26].mxu1  ;;  %v11369_v35 = vadd.f32 %v11368_v29, %v11329_v30  ;;  %v11332_v36 = vpop.f32.mrb[27].mxu0  ;;  %12959 = vmatpush1.bf16.msra.mxu0 (!%p12945_p4), %v12958_v25  ;;  %13065 = vmatpush1.bf16.msra.mxu1 (!%p12945_p4), %v12958_v25  ;;  %v12961_v29 = vpack.c.bf16 (!%p12945_p4), %v11753_v27, %v11752_v26  ;;  %v11729_v30 = vld [vmem:[%s15438_s2 + $0xa8] sm:$0xff] (!%p12945_p4)  ;;  %v11720_v27 = vld [vmem:[%s15438_s2 + $0x60] sm:$0xff] (!%p12945_p4) }
 0x55a   : > { %v11372_v37 = vpop.f32.mrb[27].mxu1  ;;  %12960 = vmatprep.subr.bf16.mxu0 (!%p12945_p4), %v13921_v6  ;;  %13050 = vmatprep.subr.bf16.mxu1 (!%p12945_p4), %v13921_v6  ;;  %v11755_v32 = vld [vmem:[%s15440_s4 + $0x48] sm:$0xff] (!%p12945_p4)  ;;  %v11756_v34 = vld [vmem:[%s15440_s4 + $0x50] sm:$0xff] (!%p12945_p4)  ;;  %v11740_v28 = vld [vmem:[%s15438_s2 + $0x100] sm:$0xff] (!%p12945_p4) }
 0x55b   : > { %11899 = vmatprep.mubr.f32.mxu1 (!%p12945_p4), %v11729_v30  ;;  %v12964_v33 = vpack.c.bf16 (!%p12945_p4), %v11755_v32, %v11754_v31  ;;  %v11758_v37 = vld [vmem:[%s15440_s4 + $0x60] sm:$0xff] (!%p12945_p4)  ;;  %v11721_v25 = vld [vmem:[%s15438_s2 + $0x68] sm:$0xff] (!%p12945_p4)  ;;  %v11743_v30 = vld [vmem:[%s15438_s2 + $0x118] sm:$0xff] (!%p12945_p4) }
 0x55c   : > { %v11741_v26 = vld [vmem:[%s15438_s2 + $0x108] sm:$0xff] (!%p12945_p4)  ;;  %v11722_v31 = vld [vmem:[%s15438_s2 + $0x70] sm:$0xff] (!%p12945_p4) }
 0x55d   : > { %12962 = vmatpush1.bf16.msra.mxu0 (!%p12945_p4), %v12961_v29  ;;  %13066 = vmatpush1.bf16.msra.mxu1 (!%p12945_p4), %v12961_v29  ;;  %v11723_v29 = vld [vmem:[%s15438_s2 + $0x78] sm:$0xff] (!%p12945_p4)  ;;  %v11742_v32 = vld [vmem:[%s15438_s2 + $0x110] sm:$0xff] (!%p12945_p4) }
 0x55e   : > { %12963 = vmatprep.subr.bf16.mxu0 (!%p12945_p4), %v13921_v6  ;;  %13051 = vmatprep.subr.bf16.mxu1 (!%p12945_p4), %v13921_v6 }
 0x561   : > { %12965 = vmatpush1.bf16.msra.mxu0 (!%p12945_p4), %v12964_v33  ;;  %13067 = vmatpush1.bf16.msra.mxu1 (!%p12945_p4), %v12964_v33  ;;  %v11725_v33 = vld [vmem:[%s15438_s2 + $0x88] sm:$0xff] (!%p12945_p4) }
 0x562   : > { %12966 = vmatprep.subr.bf16.mxu0 (!%p12945_p4), %v13921_v6  ;;  %13052 = vmatprep.subr.bf16.mxu1 (!%p12945_p4), %v13921_v6 }
 0x566   : > { %v11408_v38 = vpop.f32.mrb[28].mxu0 }
 0x567   : > { %v11448_v39 = vpop.f32.mrb[28].mxu1  ;;  %v11409_v40 = vadd.f32 %v11408_v38, %v11369_v35  ;;  %v11410_v41 = vpop.f32.mrb[29].mxu0  ;;  %v11757_v35 = vld [vmem:[%s15440_s4 + $0x58] sm:$0xff] (!%p12945_p4)  ;;  %v11759_v38 = vld [vmem:[%s15440_s4 + $0x68] sm:$0xff] (!%p12945_p4) }
 0x568   : > { %v11450_v42 = vpop.f32.mrb[29].mxu1  ;;  %v11411_v43 = vpop.f32.mrb[30].mxu0  ;;  %v12967_v36 = vpack.c.bf16 (!%p12945_p4), %v11757_v35, %v11756_v34  ;;  %v11761_v41 = vld [vmem:[%s15440_s4 + $0x78] sm:$0xff] (!%p12945_p4)  ;;  %v11745_v34 = vld [vmem:[%s15438_s2 + $0x128] sm:$0x3f] (!%p12945_p4)  ;;  %v11724_v35 = vld [vmem:[%s15438_s2 + $0x80] sm:$0xff] (!%p12945_p4) }
 0x569   : > { %v11451_v44 = vpop.f32.mrb[30].mxu1  ;;  %v11449_v45 = vadd.f32 %v11448_v39, %v11409_v40  ;;  %v11412_v46 = vpop.f32.mrb[31].mxu0  ;;  %v12970_v39 = vpack.c.bf16 (!%p12945_p4), %v11759_v38, %v11758_v37  ;;  %v11760_v40 = vld [vmem:[%s15440_s4 + $0x70] sm:$0xff] (!%p12945_p4)  ;;  %v11762_v43 = vld [vmem:[%s15440_s4 + $0x80] sm:$0xff] (!%p12945_p4)  ;;  %v11727_v37 = vld [vmem:[%s15438_s2 + $0x98] sm:$0xff] (!%p12945_p4) }
 0x56a   : > { %v11452_v47 = vpop.f32.mrb[31].mxu1  ;;  %12968 = vmatpush1.bf16.msra.mxu0 (!%p12945_p4), %v12967_v36  ;;  %13068 = vmatpush1.bf16.msra.mxu1 (!%p12945_p4), %v12967_v36  ;;  %v12973_v42 = vpack.c.bf16 (!%p12945_p4), %v11761_v41, %v11760_v40  ;;  %v11763_v44 = vld [vmem:[%s15440_s4 + $0x88] sm:$0xff] (!%p12945_p4)  ;;  %v11764_v46 = vld [vmem:[%s15440_s4 + $0x90] sm:$0xff] (!%p12945_p4)  ;;  %v11744_v36 = vld [vmem:[%s15438_s2 + $0x120] sm:$0x3f] (!%p12945_p4) }
 0x56b   : > { %12969 = vmatprep.subr.bf16.mxu0 (!%p12945_p4), %v13921_v6  ;;  %13053 = vmatprep.subr.bf16.mxu1 (!%p12945_p4), %v13921_v6  ;;  %v11765_v47 = vld [vmem:[%s15440_s4 + $0x98] sm:$0xff] (!%p12945_p4)  ;;  %v11726_v38 = vld [vmem:[%s15438_s2 + $0x90] sm:$0xff] (!%p12945_p4) }
 0x56e   : > { %12971 = vmatpush1.bf16.msra.mxu0 (!%p12945_p4), %v12970_v39  ;;  %13069 = vmatpush1.bf16.msra.mxu1 (!%p12945_p4), %v12970_v39  ;;  %v15071_v39 = vld [vmem:[%s15441_s5] ss:$0 sm:$0xff] (!%p12945_p4) }
 0x56f   : > { %12972 = vmatprep.subr.bf16.mxu0 (!%p12945_p4), %v13921_v6  ;;  %13054 = vmatprep.subr.bf16.mxu1 (!%p12945_p4), %v13921_v6 }
 0x572   : > { %12974 = vmatpush1.bf16.msra.mxu0 (!%p12945_p4), %v12973_v42  ;;  %13070 = vmatpush1.bf16.msra.mxu1 (!%p12945_p4), %v12973_v42 }
 0x573   : > { %12975 = vmatprep.subr.bf16.mxu0 (!%p12945_p4), %v13921_v6  ;;  %13055 = vmatprep.subr.bf16.mxu1 (!%p12945_p4), %v13921_v6 }
 0x576   : > { %v11488_v48 = vpop.f32.mrb[32].mxu0 }
 0x577   : > { %v11528_v49 = vpop.f32.mrb[32].mxu1  ;;  %v11489_v50 = vadd.f32 %v11488_v48, %v11449_v45  ;;  %v11490_v51 = vpop.f32.mrb[33].mxu0  ;;  %v12976_v45 = vpack.c.bf16 (!%p12945_p4), %v11763_v44, %v11762_v43  ;;  %v12979_v48 = vpack.c.bf16 (!%p12945_p4), %v11765_v47, %v11764_v46 }
 0x578   : > { %v11530_v52 = vpop.f32.mrb[33].mxu1  ;;  %v11491_v53 = vpop.f32.mrb[34].mxu0 }
 0x579   : > { %v11531_v54 = vpop.f32.mrb[34].mxu1  ;;  %v11529_v55 = vadd.f32 %v11528_v49, %v11489_v50  ;;  %v11492_v56 = vpop.f32.mrb[35].mxu0  ;;  %12977 = vmatpush1.bf16.msra.mxu0 (!%p12945_p4), %v12976_v45  ;;  %13071 = vmatpush1.bf16.msra.mxu1 (!%p12945_p4), %v12976_v45  ;;  %v11766_v49 = vld [vmem:[%s15440_s4 + $0xa0] sm:$0xff] (!%p12945_p4)  ;;  %v11767_v50 = vld [vmem:[%s15440_s4 + $0xa8] sm:$0xff] (!%p12945_p4)  ;;  %v11768_v52 = vld [vmem:[%s15440_s4 + $0xb0] sm:$0xff] (!%p12945_p4) }
 0x57a   : > { %v11532_v57 = vpop.f32.mrb[35].mxu1  ;;  %12978 = vmatprep.subr.bf16.mxu0 (!%p12945_p4), %v13921_v6  ;;  %13056 = vmatprep.subr.bf16.mxu1 (!%p12945_p4), %v13921_v6  ;;  %v12982_v51 = vpack.c.bf16 (!%p12945_p4), %v11767_v50, %v11766_v49  ;;  %v11769_v53 = vld [vmem:[%s15440_s4 + $0xb8] sm:$0xff] (!%p12945_p4)  ;;  %v11771_v56 = vld [vmem:[%s15440_s4 + $0xc8] sm:$0xff] (!%p12945_p4) }
 0x57b   : > { %v12985_v54 = vpack.c.bf16 (!%p12945_p4), %v11769_v53, %v11768_v52 }
 0x57d   : > { %12980 = vmatpush1.bf16.msra.mxu0 (!%p12945_p4), %v12979_v48  ;;  %13072 = vmatpush1.bf16.msra.mxu1 (!%p12945_p4), %v12979_v48 }
 0x57e   : > { %12981 = vmatprep.subr.bf16.mxu0 (!%p12945_p4), %v13921_v6  ;;  %13057 = vmatprep.subr.bf16.mxu1 (!%p12945_p4), %v13921_v6 }
 0x581   : > { %12983 = vmatpush1.bf16.msra.mxu0 (!%p12945_p4), %v12982_v51  ;;  %13073 = vmatpush1.bf16.msra.mxu1 (!%p12945_p4), %v12982_v51 }
 0x582   : > { %12984 = vmatprep.subr.bf16.mxu0 (!%p12945_p4), %v13921_v6  ;;  %13058 = vmatprep.subr.bf16.mxu1 (!%p12945_p4), %v13921_v6 }
 0x585   : > { %12986 = vmatpush1.bf16.msra.mxu0 (!%p12945_p4), %v12985_v54  ;;  %13074 = vmatpush1.bf16.msra.mxu1 (!%p12945_p4), %v12985_v54 }
 0x586   : > { %v11568_v58 = vpop.f32.mrb[36].mxu0  ;;  %12987 = vmatprep.subr.bf16.mxu0 (!%p12945_p4), %v13921_v6  ;;  %13059 = vmatprep.subr.bf16.mxu1 (!%p12945_p4), %v13921_v6 }
 0x587   : > { %v11608_v59 = vpop.f32.mrb[36].mxu1  ;;  %v11569_v60 = vadd.f32 %v11568_v58, %v11529_v55  ;;  %v11570_v61 = vpop.f32.mrb[37].mxu0  ;;  %v11770_v55 = vld [vmem:[%s15440_s4 + $0xc0] sm:$0xff] (!%p12945_p4)  ;;  %v11772_v58 = vld [vmem:[%s15440_s4 + $0xd0] sm:$0xff] (!%p12945_p4) }
 0x588   : > { %v11610_v62 = vpop.f32.mrb[37].mxu1  ;;  %v11571_v63 = vpop.f32.mrb[38].mxu0  ;;  %v12988_v57 = vpack.c.bf16 (!%p12945_p4), %v11771_v56, %v11770_v55  ;;  %v11774_v61 = vld [vmem:[%s15440_s4 + $0xe0] sm:$0xff] (!%p12945_p4) }
 0x589   : > { %v11611_v0 = vpop.f32.mrb[38].mxu1  ;;  %v11609_v1 = vadd.f32 %v11608_v59, %v11569_v60  ;;  %v11572_v2 = vpop.f32.mrb[39].mxu0  ;;  %v11773_v59 = vld [vmem:[%s15440_s4 + $0xd8] sm:$0xff] (!%p12945_p4)  ;;  %v11775_v62 = vld [vmem:[%s15440_s4 + $0xe8] sm:$0xff] (!%p12945_p4) }
 0x58a   : > { %v11612_v3 = vpop.f32.mrb[39].mxu1  ;;  %12989 = vmatpush1.bf16.msra.mxu0 (!%p12945_p4), %v12988_v57  ;;  %13075 = vmatpush1.bf16.msra.mxu1 (!%p12945_p4), %v12988_v57  ;;  %v12991_v60 = vpack.c.bf16 (!%p12945_p4), %v11773_v59, %v11772_v58  ;;  %v12994_v63 = vpack.c.bf16 (!%p12945_p4), %v11775_v62, %v11774_v61  ;;  %v11776_v0 = vld [vmem:[%s15440_s4 + $0xf0] sm:$0xff] (!%p12945_p4) }
 0x58b   : > { %12990 = vmatprep.subr.bf16.mxu0 (!%p12945_p4), %v13921_v6  ;;  %13060 = vmatprep.subr.bf16.mxu1 (!%p12945_p4), %v13921_v6  ;;  %v11708_v3 = vld [vmem:[%s15438_s2] sm:$0xff] (!%p12945_p4) }
 0x58e   : > { %12992 = vmatpush1.bf16.msra.mxu0 (!%p12945_p4), %v12991_v60  ;;  %13076 = vmatpush1.bf16.msra.mxu1 (!%p12945_p4), %v12991_v60 }
 0x58f   : > { %12993 = vmatprep.subr.bf16.mxu0 (!%p12945_p4), %v13921_v6  ;;  %13061 = vmatprep.subr.bf16.mxu1 (!%p12945_p4), %v13921_v6 }
 0x592   : > { %12995 = vmatpush1.bf16.msra.mxu0 (!%p12945_p4), %v12994_v63  ;;  %13077 = vmatpush1.bf16.msra.mxu1 (!%p12945_p4), %v12994_v63 }
 0x593   : > { %12996 = vmatprep.subr.bf16.mxu0 (!%p12945_p4), %v13921_v6  ;;  %13062 = vmatprep.subr.bf16.mxu1 (!%p12945_p4), %v13921_v6  ;;  %v11716_v6 = vld [vmem:[%s15438_s2 + $0x40] sm:$0xff] (!%p12945_p4) }
 0x596   : > { %v11648_v4 = vpop.f32.mrb[40].mxu0 }
 0x597   : > { %v11688_v5 = vpop.f32.mrb[40].mxu1  ;;  %v11649_v7 = vadd.f32 %v11648_v4, %v11609_v1  ;;  %v11650_v8 = vpop.f32.mrb[41].mxu0  ;;  %11707 = sbr.rel (%p12945_p4) target bundleno = 1688 (0x698), region = 68  ;;  %v11777_v1 = vld [vmem:[%s15440_s4 + $0xf8] sm:$0xff] (!%p12945_p4)  ;;  %v11728_v4 = vld [vmem:[%s15438_s2 + $0xa0] sm:$0xff] (!%p12945_p4) }
 0x598   : > { %v11690_v9 = vpop.f32.mrb[41].mxu1  ;;  %v11651_v11 = vpop.f32.mrb[42].mxu0  ;;  %v12997_v2 = vpack.c.bf16 (!%p12945_p4), %v11777_v1, %v11776_v0  ;;  %v11710_v8 = vld [vmem:[%s15438_s2 + $0x10] sm:$0xff] (!%p12945_p4) }
 0x599   : > { %v11691_v12 = vpop.f32.mrb[42].mxu1  ;;  %v11689_v13 = vadd.f32 %v11688_v5, %v11649_v7  ;;  %v11652_v14 = vpop.f32.mrb[43].mxu0  ;;  %v11711_v5 = vld [vmem:[%s15438_s2 + $0x18] sm:$0xff] (!%p12945_p4)  ;;  %v11730_v9 = vld [vmem:[%s15438_s2 + $0xb0] sm:$0xff] (!%p12945_p4)  ;;  %v11733_v11 = vld [vmem:[%s15438_s2 + $0xc8] sm:$0xff] (!%p12945_p4) }
 0x59a   : > { %v11692_v15 = vpop.f32.mrb[43].mxu1  ;;  %12998 = vmatpush1.bf16.msra.mxu0 (!%p12945_p4), %v12997_v2  ;;  %13078 = vmatpush1.bf16.msra.mxu1 (!%p12945_p4), %v12997_v2  ;;  %v11731_v7 = vld [vmem:[%s15438_s2 + $0xb8] sm:$0xff] (!%p12945_p4)  ;;  %v11712_v12 = vld [vmem:[%s15438_s2 + $0x20] sm:$0xff] (!%p12945_p4) }
 0x59b   : > { %v11701_v16 = vadd.f32 %v12944_v10, %v11689_v13  ;;  %v11713_v10 = vld [vmem:[%s15438_s2 + $0x28] sm:$0xff] (!%p12945_p4)  ;;  %v11732_v13 = vld [vmem:[%s15438_s2 + $0xc0] sm:$0xff] (!%p12945_p4)  ;;  %v11715_v14 = vld [vmem:[%s15438_s2 + $0x38] sm:$0xff] (!%p12945_p4) }
 0x59c   : > { %v11735_v15 = vld [vmem:[%s15438_s2 + $0xd8] sm:$0xff] (!%p12945_p4) }
 0x59d   : > { %11703 = vst.msk [vmem:[%s458_s25] sm:$0x3] %vm11702_vm0, %v11701_v16  ;;  %11850 = vmatmul.mubr.f32.vlgmr.msra.gmra.mrb[0].mxu0 (!%p12945_p4), %v11708_v3  ;;  %11900 = vmatmul.mubr.f32.vlgmr.msra.gmra.mrb[0].mxu1 (!%p12945_p4), %v11728_v4  ;;  %v11714_v16 = vld [vmem:[%s15438_s2 + $0x30] sm:$0xff] (!%p12945_p4) }
 0x59e   : > { %11854 = vmatprep.mubr.f32.mxu0 %v11711_v5  ;;  %11904 = vmatprep.mubr.f32.mxu1 %v11731_v7 }
 0x5a1   : > { %11855 = vmatmul.mubr.f32.gmra.mrb[2].mxu0 %v11710_v8  ;;  %11905 = vmatmul.mubr.f32.gmra.mrb[2].mxu1 %v11730_v9 }
 0x5a2   : > { %11859 = vmatprep.mubr.f32.mxu0 %v11713_v10  ;;  %11909 = vmatprep.mubr.f32.mxu1 %v11733_v11 }
 0x5a5   : > { %11860 = vmatmul.mubr.f32.gmra.mrb[4].mxu0 %v11712_v12  ;;  %11910 = vmatmul.mubr.f32.gmra.mrb[4].mxu1 %v11732_v13 }
 0x5a6   : > { %11864 = vmatprep.mubr.f32.mxu0 %v11715_v14  ;;  %11914 = vmatprep.mubr.f32.mxu1 %v11735_v15 }
 0x5a9   : > { %11865 = vmatmul.mubr.f32.gmra.mrb[6].mxu0 %v11714_v16  ;;  %11915 = vmatmul.mubr.f32.gmra.mrb[6].mxu1 %v11734_v17 }
 0x5aa   : > { %11869 = vmatprep.mubr.f32.mxu0 %v11717_v18  ;;  %11919 = vmatprep.mubr.f32.mxu1 %v11737_v19 }
 0x5ad   : > { %11870 = vmatmul.mubr.f32.gmra.mrb[8].mxu0 %v11716_v6  ;;  %11920 = vmatmul.mubr.f32.gmra.mrb[8].mxu1 %v11736_v20 }
 0x5ae   : > { %11874 = vmatprep.mubr.f32.mxu0 %v11719_v21  ;;  %11924 = vmatprep.mubr.f32.mxu1 %v11739_v22 }
 0x5b1   : > { %11875 = vmatmul.mubr.f32.gmra.mrb[10].mxu0 %v11718_v23  ;;  %11925 = vmatmul.mubr.f32.gmra.mrb[10].mxu1 %v11738_v24 }
 0x5b2   : > { %11879 = vmatprep.mubr.f32.mxu0 %v11721_v25  ;;  %11929 = vmatprep.mubr.f32.mxu1 %v11741_v26 }
 0x5b5   : > { %11880 = vmatmul.mubr.f32.gmra.mrb[12].mxu0 %v11720_v27  ;;  %11930 = vmatmul.mubr.f32.gmra.mrb[12].mxu1 %v11740_v28 }
 0x5b6   : > { %11884 = vmatprep.mubr.f32.mxu0 %v11723_v29  ;;  %11934 = vmatprep.mubr.f32.mxu1 %v11743_v30 }
 0x5b9   : > { %11885 = vmatmul.mubr.f32.gmra.mrb[14].mxu0 %v11722_v31  ;;  %11935 = vmatmul.mubr.f32.gmra.mrb[14].mxu1 %v11742_v32 }
 0x5ba   : > { %11889 = vmatprep.mubr.f32.mxu0 %v11725_v33  ;;  %11939 = vmatprep.mubr.f32.mxu1 %v11745_v34 }
 0x5bd   : > { %11890 = vmatmul.mubr.f32.gmra.mrb[16].mxu0 %v11724_v35  ;;  %11940 = vmatmul.mubr.f32.gmra.mrb[16].mxu1 %v11744_v36 }
 0x5be   : > { %11894 = vmatprep.mubr.f32.mxu0 %v11727_v37 }
 0x5c1   : > { %11895 = vmatmul.mubr.f32.gmra.mrb[18].mxu0 %v11726_v38 }
 0x670   : > { %v11851_v40 = vpop.f32.mrb[0].mxu0  ;;  %v11901_v41 = vpop.f32.mrb[0].mxu1 }
 0x671   : > { %v11852_v42 = vadd.f32 %v15071_v39, %v11851_v40  ;;  %v11853_v43 = vpop.f32.mrb[1].mxu0  ;;  %v11902_v44 = vadd.f32 %v15071_v39, %v11901_v41  ;;  %v11903_v45 = vpop.f32.mrb[1].mxu1 }
 0x673   : > { %11946 = vst.msk [vmem:[%s14019_s15] sm:$0xff] %vm11945_vm1, %v11852_v42  ;;  %11956 = vst.msk [vmem:[%s14019_s15 + $0x50] sm:$0xff] %vm11945_vm1, %v11902_v44 }
 0x674   : > { %v11856_v46 = vpop.f32.mrb[2].mxu0  ;;  %v11906_v47 = vpop.f32.mrb[2].mxu1 }
 0x675   : > { %v11857_v48 = vadd.f32 %v15071_v39, %v11856_v46  ;;  %v11858_v49 = vpop.f32.mrb[3].mxu0  ;;  %v11907_v50 = vadd.f32 %v15071_v39, %v11906_v47  ;;  %v11908_v51 = vpop.f32.mrb[3].mxu1 }
 0x677   : > { %11947 = vst.msk [vmem:[%s14019_s15 + $0x8] sm:$0xff] %vm11945_vm1, %v11857_v48  ;;  %11957 = vst.msk [vmem:[%s14019_s15 + $0x58] sm:$0xff] %vm11945_vm1, %v11907_v50 }
 0x678   : > { %v11861_v52 = vpop.f32.mrb[4].mxu0  ;;  %v11911_v53 = vpop.f32.mrb[4].mxu1 }
 0x679   : > { %v11862_v54 = vadd.f32 %v15071_v39, %v11861_v52  ;;  %v11863_v55 = vpop.f32.mrb[5].mxu0  ;;  %v11912_v56 = vadd.f32 %v15071_v39, %v11911_v53  ;;  %v11913_v57 = vpop.f32.mrb[5].mxu1 }
 0x67b   : > { %11948 = vst.msk [vmem:[%s14019_s15 + $0x10] sm:$0xff] %vm11945_vm1, %v11862_v54  ;;  %11958 = vst.msk [vmem:[%s14019_s15 + $0x60] sm:$0xff] %vm11945_vm1, %v11912_v56 }
 0x67c   : > { %v11866_v58 = vpop.f32.mrb[6].mxu0  ;;  %v11916_v59 = vpop.f32.mrb[6].mxu1 }
 0x67d   : > { %v11867_v60 = vadd.f32 %v15071_v39, %v11866_v58  ;;  %v11868_v61 = vpop.f32.mrb[7].mxu0  ;;  %v11917_v62 = vadd.f32 %v15071_v39, %v11916_v59  ;;  %v11918_v63 = vpop.f32.mrb[7].mxu1 }
 0x67f   : > { %11949 = vst.msk [vmem:[%s14019_s15 + $0x18] sm:$0xff] %vm11945_vm1, %v11867_v60  ;;  %11959 = vst.msk [vmem:[%s14019_s15 + $0x68] sm:$0xff] %vm11945_vm1, %v11917_v62 }
 0x680   : > { %v11871_v0 = vpop.f32.mrb[8].mxu0  ;;  %v11921_v1 = vpop.f32.mrb[8].mxu1 }
 0x681   : > { %v11872_v2 = vadd.f32 %v15071_v39, %v11871_v0  ;;  %v11873_v3 = vpop.f32.mrb[9].mxu0  ;;  %v11922_v4 = vadd.f32 %v15071_v39, %v11921_v1  ;;  %v11923_v5 = vpop.f32.mrb[9].mxu1 }
 0x683   : > { %11950 = vst.msk [vmem:[%s14019_s15 + $0x20] sm:$0xff] %vm11945_vm1, %v11872_v2  ;;  %11960 = vst.msk [vmem:[%s14019_s15 + $0x70] sm:$0xff] %vm11945_vm1, %v11922_v4 }
 0x684   : > { %v11876_v7 = vpop.f32.mrb[10].mxu0  ;;  %v11926_v8 = vpop.f32.mrb[10].mxu1 }
 0x685   : > { %v11877_v9 = vadd.f32 %v15071_v39, %v11876_v7  ;;  %v11878_v10 = vpop.f32.mrb[11].mxu0  ;;  %v11927_v11 = vadd.f32 %v15071_v39, %v11926_v8  ;;  %v11928_v12 = vpop.f32.mrb[11].mxu1 }
 0x687   : > { %11951 = vst.msk [vmem:[%s14019_s15 + $0x28] sm:$0xff] %vm11945_vm1, %v11877_v9  ;;  %11961 = vst.msk [vmem:[%s14019_s15 + $0x78] sm:$0xff] %vm11945_vm1, %v11927_v11 }
 0x688   : > { %v11881_v13 = vpop.f32.mrb[12].mxu0  ;;  %v11931_v14 = vpop.f32.mrb[12].mxu1 }
 0x689   : > { %v11882_v15 = vadd.f32 %v15071_v39, %v11881_v13  ;;  %v11883_v16 = vpop.f32.mrb[13].mxu0  ;;  %v11932_v17 = vadd.f32 %v15071_v39, %v11931_v14  ;;  %v11933_v18 = vpop.f32.mrb[13].mxu1 }
 0x68b   : > { %11952 = vst.msk [vmem:[%s14019_s15 + $0x30] sm:$0xff] %vm11945_vm1, %v11882_v15  ;;  %11962 = vst.msk [vmem:[%s14019_s15 + $0x80] sm:$0xff] %vm11945_vm1, %v11932_v17 }
 0x68c   : > { %v11886_v19 = vpop.f32.mrb[14].mxu0  ;;  %v11936_v6 = vpop.f32.mrb[14].mxu1 }
 0x68d   : > { %v11887_v20 = vadd.f32 %v15071_v39, %v11886_v19  ;;  %v11888_v21 = vpop.f32.mrb[15].mxu0  ;;  %v11937_v22 = vadd.f32 %v15071_v39, %v11936_v6  ;;  %v11938_v23 = vpop.f32.mrb[15].mxu1 }
 0x68f   : > { %11953 = vst.msk [vmem:[%s14019_s15 + $0x38] sm:$0xff] %vm11945_vm1, %v11887_v20  ;;  %11963 = vst.msk [vmem:[%s14019_s15 + $0x88] sm:$0xff] %vm11945_vm1, %v11937_v22 }
 0x690   : > { %v11891_v24 = vpop.f32.mrb[16].mxu0  ;;  %v11941_v25 = vpop.f32.mrb[16].mxu1 }
 0x691   : > { %v11892_v26 = vadd.f32 %v15071_v39, %v11891_v24  ;;  %v11893_v27 = vpop.f32.mrb[17].mxu0  ;;  %v11942_v28 = vadd.f32 %v15071_v39, %v11941_v25  ;;  %v11943_v29 = vpop.f32.mrb[17].mxu1 }
 0x693   : > { %11954 = vst.msk [vmem:[%s14019_s15 + $0x40] sm:$0xff] %vm11945_vm1, %v11892_v26 }
 0x694   : > { %11965 = vst.msk [vmem:[%s14019_s15 + $0x90] sm:$0x3f] %vm11964_vm2, %v11942_v28  ;;  %v11896_v30 = vpop.f32.mrb[18].mxu0 }
 0x695   : > { %v11897_v31 = vadd.f32 %v15071_v39, %v11896_v30  ;;  %v11898_v32 = vpop.f32.mrb[19].mxu0 }
 0x697   : > { %11955 = vst.msk [vmem:[%s14019_s15 + $0x48] sm:$0xff] %vm11945_vm1, %v11897_v31 }
 0x698 PF: > { %p12947_p5 = scmp.ne.s32.totalorder %s13994_s22, 1 }
 0x699   : > { %v12008_v33 = vld [vmem:[%s15442_s6] sm:$0xff] (!%p12947_p5)  ;;  %v12009_v34 = vld [vmem:[%s15442_s6 + $0x8] sm:$0xff] (!%p12947_p5)  ;;  %v12010_v35 = vld [vmem:[%s15442_s6 + $0x10] sm:$0xff] (!%p12947_p5)  ;;  %v13922_v36 = vmov (!%p12947_p5), 0.0|0.0   ;;  %vm12207_vm3 = vcmask (!%p12947_p5), 31744   ;;  %vm12226_vm4 = vcmask (!%p12947_p5), 29696  }
 0x69a   : > { %11969 = sbr.rel (%p12947_p5) target bundleno = 2006 (0x7d6), region = 72  ;;  %12999 = vmatprep.subr.bf16.mxu0 (!%p12947_p5), %v13922_v36  ;;  %v13000_v37 = vpack.c.bf16 (!%p12947_p5), %v12009_v34, %v12008_v33  ;;  %13079 = vmatprep.subr.bf16.mxu1 (!%p12947_p5), %v13922_v36  ;;  %v12011_v38 = vld [vmem:[%s15442_s6 + $0x18] sm:$0xff] (!%p12947_p5)  ;;  %v12012_v40 = vld [vmem:[%s15442_s6 + $0x20] sm:$0xff] (!%p12947_p5)  ;;  %v12013_v41 = vld [vmem:[%s15442_s6 + $0x28] sm:$0xff] (!%p12947_p5) }
 0x69b   : > { %v13003_v39 = vpack.c.bf16 (!%p12947_p5), %v12011_v38, %v12010_v35  ;;  %v13006_v42 = vpack.c.bf16 (!%p12947_p5), %v12013_v41, %v12012_v40  ;;  %v12014_v43 = vld [vmem:[%s15442_s6 + $0x30] sm:$0xff] (!%p12947_p5)  ;;  %v12015_v44 = vld [vmem:[%s15442_s6 + $0x38] sm:$0xff] (!%p12947_p5)  ;;  %v11971_v45 = vld [vmem:[%s15439_s3 + $0x8] sm:$0xff] (!%p12947_p5) }
 0x69c   : > { %13001 = vmatpush1.bf16.msra.mxu0 (!%p12947_p5), %v13000_v37  ;;  %13095 = vmatpush1.bf16.msra.mxu1 (!%p12947_p5), %v13000_v37  ;;  %v13009_v46 = vpack.c.bf16 (!%p12947_p5), %v12015_v44, %v12014_v43  ;;  %v11991_v47 = vld [vmem:[%s15439_s3 + $0xa8] sm:$0xff] (!%p12947_p5)  ;;  %v12016_v48 = vld [vmem:[%s15442_s6 + $0x40] sm:$0xff] (!%p12947_p5)  ;;  %v12018_v51 = vld [vmem:[%s15442_s6 + $0x50] sm:$0xff] (!%p12947_p5) }
 0x69d   : > { %13002 = vmatprep.subr.bf16.mxu0 (!%p12947_p5), %v13922_v36  ;;  %13080 = vmatprep.subr.bf16.mxu1 (!%p12947_p5), %v13922_v36  ;;  %v12017_v49 = vld [vmem:[%s15442_s6 + $0x48] sm:$0xff] (!%p12947_p5)  ;;  %v12019_v52 = vld [vmem:[%s15442_s6 + $0x58] sm:$0xff] (!%p12947_p5)  ;;  %v12020_v54 = vld [vmem:[%s15442_s6 + $0x60] sm:$0xff] (!%p12947_p5) }
 0x69e   : > { %12111 = vmatprep.mubr.f32.mxu0 (!%p12947_p5), %v11971_v45  ;;  %12161 = vmatprep.mubr.f32.mxu1 (!%p12947_p5), %v11991_v47  ;;  %v13012_v50 = vpack.c.bf16 (!%p12947_p5), %v12017_v49, %v12016_v48  ;;  %v13015_v53 = vpack.c.bf16 (!%p12947_p5), %v12019_v52, %v12018_v51  ;;  %v12021_v55 = vld [vmem:[%s15442_s6 + $0x68] sm:$0xff] (!%p12947_p5)  ;;  %v12022_v57 = vld [vmem:[%s15442_s6 + $0x70] sm:$0xff] (!%p12947_p5)  ;;  %v12023_v58 = vld [vmem:[%s15442_s6 + $0x78] sm:$0xff] (!%p12947_p5) }
 0x69f   : > { %v13018_v56 = vpack.c.bf16 (!%p12947_p5), %v12021_v55, %v12020_v54  ;;  %v13021_v59 = vpack.c.bf16 (!%p12947_p5), %v12023_v58, %v12022_v57  ;;  %v12024_v60 = vld [vmem:[%s15442_s6 + $0x80] sm:$0xff] (!%p12947_p5)  ;;  %v12025_v61 = vld [vmem:[%s15442_s6 + $0x88] sm:$0xff] (!%p12947_p5)  ;;  %v12026_v63 = vld [vmem:[%s15442_s6 + $0x90] sm:$0xff] (!%p12947_p5) }
 0x6a0   : > { %13004 = vmatpush1.bf16.msra.mxu0 (!%p12947_p5), %v13003_v39  ;;  %13096 = vmatpush1.bf16.msra.mxu1 (!%p12947_p5), %v13003_v39  ;;  %v13024_v62 = vpack.c.bf16 (!%p12947_p5), %v12025_v61, %v12024_v60  ;;  %v12027_v0 = vld [vmem:[%s15442_s6 + $0x98] sm:$0xff] (!%p12947_p5)  ;;  %v12028_v2 = vld [vmem:[%s15442_s6 + $0xa0] sm:$0xff] (!%p12947_p5)  ;;  %v12029_v3 = vld [vmem:[%s15442_s6 + $0xa8] sm:$0xff] (!%p12947_p5) }
 0x6a1   : > { %13005 = vmatprep.subr.bf16.mxu0 %v13922_v36  ;;  %13081 = vmatprep.subr.bf16.mxu1 %v13922_v36  ;;  %v13027_v1 = vpack.c.bf16 %v12027_v0, %v12026_v63  ;;  %v13030_v4 = vpack.c.bf16 %v12029_v3, %v12028_v2  ;;  %v12030_v5 = vld [vmem:[%s15442_s6 + $0xb0] sm:$0xff]  ;;  %v12031_v7 = vld [vmem:[%s15442_s6 + $0xb8] sm:$0xff]  ;;  %v12032_v9 = vld [vmem:[%s15442_s6 + $0xc0] sm:$0xff] }
 0x6a2   : > { %v13033_v8 = vpack.c.bf16 %v12031_v7, %v12030_v5  ;;  %v12033_v10 = vld [vmem:[%s15442_s6 + $0xc8] sm:$0xff]  ;;  %v12034_v12 = vld [vmem:[%s15442_s6 + $0xd0] sm:$0xff]  ;;  %v12035_v13 = vld [vmem:[%s15442_s6 + $0xd8] sm:$0xff] }
 0x6a3   : > { %v13036_v11 = vpack.c.bf16 %v12033_v10, %v12032_v9  ;;  %v13039_v14 = vpack.c.bf16 %v12035_v13, %v12034_v12  ;;  %v12036_v15 = vld [vmem:[%s15442_s6 + $0xe0] sm:$0xff]  ;;  %v12037_v16 = vld [vmem:[%s15442_s6 + $0xe8] sm:$0xff]  ;;  %v12038_v18 = vld [vmem:[%s15442_s6 + $0xf0] sm:$0xff] }
 0x6a4   : > { %13007 = vmatpush1.bf16.msra.mxu0 %v13006_v42  ;;  %13097 = vmatpush1.bf16.msra.mxu1 %v13006_v42  ;;  %v13042_v17 = vpack.c.bf16 %v12037_v16, %v12036_v15  ;;  %v12039_v19 = vld [vmem:[%s15442_s6 + $0xf8] sm:$0xff]  ;;  %v11970_v20 = vld [vmem:[%s15439_s3] sm:$0xff]  ;;  %v11972_v24 = vld [vmem:[%s15439_s3 + $0x10] sm:$0xff] }
 0x6a5   : > { %13008 = vmatprep.subr.bf16.mxu0 %v13922_v36  ;;  %13082 = vmatprep.subr.bf16.mxu1 %v13922_v36  ;;  %v13045_v6 = vpack.c.bf16 %v12039_v19, %v12038_v18  ;;  %v11990_v21 = vld [vmem:[%s15439_s3 + $0xa0] sm:$0xff]  ;;  %v11973_v22 = vld [vmem:[%s15439_s3 + $0x18] sm:$0xff]  ;;  %v11992_v25 = vld [vmem:[%s15439_s3 + $0xb0] sm:$0xff] }
 0x6a6   : > { %v11993_v23 = vld [vmem:[%s15439_s3 + $0xb8] sm:$0xff]  ;;  %v11975_v26 = vld [vmem:[%s15439_s3 + $0x28] sm:$0xff]  ;;  %v11974_v28 = vld [vmem:[%s15439_s3 + $0x20] sm:$0xff] }
 0x6a7   : > { %v11995_v27 = vld [vmem:[%s15439_s3 + $0xc8] sm:$0xff]  ;;  %v11994_v29 = vld [vmem:[%s15439_s3 + $0xc0] sm:$0xff]  ;;  %v11977_v30 = vld [vmem:[%s15439_s3 + $0x38] sm:$0xff] }
 0x6a8   : > { %13010 = vmatpush1.bf16.msra.mxu0 %v13009_v46  ;;  %13098 = vmatpush1.bf16.msra.mxu1 %v13009_v46  ;;  %v11997_v31 = vld [vmem:[%s15439_s3 + $0xd8] sm:$0xff]  ;;  %v11976_v32 = vld [vmem:[%s15439_s3 + $0x30] sm:$0xff]  ;;  %v11979_v34 = vld [vmem:[%s15439_s3 + $0x48] sm:$0xff] }
 0x6a9   : > { %13011 = vmatprep.subr.bf16.mxu0 %v13922_v36  ;;  %13083 = vmatprep.subr.bf16.mxu1 %v13922_v36  ;;  %v11996_v33 = vld [vmem:[%s15439_s3 + $0xd0] sm:$0xff]  ;;  %v11999_v35 = vld [vmem:[%s15439_s3 + $0xe8] sm:$0xff]  ;;  %v11998_v37 = vld [vmem:[%s15439_s3 + $0xe0] sm:$0xff] }
 0x6aa   : > { %v11981_v38 = vld [vmem:[%s15439_s3 + $0x58] sm:$0xff]  ;;  %v11980_v40 = vld [vmem:[%s15439_s3 + $0x50] sm:$0xff]  ;;  %v11983_v42 = vld [vmem:[%s15439_s3 + $0x68] sm:$0xff] }
 0x6ab   : > { %v12001_v39 = vld [vmem:[%s15439_s3 + $0xf8] sm:$0xff]  ;;  %v12000_v41 = vld [vmem:[%s15439_s3 + $0xf0] sm:$0xff]  ;;  %v12003_v43 = vld [vmem:[%s15439_s3 + $0x108] sm:$0xff] }
 0x6ac   : > { %13013 = vmatpush1.bf16.msra.mxu0 %v13012_v50  ;;  %13099 = vmatpush1.bf16.msra.mxu1 %v13012_v50  ;;  %v11982_v44 = vld [vmem:[%s15439_s3 + $0x60] sm:$0xff]  ;;  %v11985_v46 = vld [vmem:[%s15439_s3 + $0x78] sm:$0xff]  ;;  %v11984_v48 = vld [vmem:[%s15439_s3 + $0x70] sm:$0xff] }
 0x6ad   : > { %13014 = vmatprep.subr.bf16.mxu0 %v13922_v36  ;;  %13084 = vmatprep.subr.bf16.mxu1 %v13922_v36  ;;  %v12002_v45 = vld [vmem:[%s15439_s3 + $0x100] sm:$0xff]  ;;  %v12005_v47 = vld [vmem:[%s15439_s3 + $0x118] sm:$0xff]  ;;  %v12004_v49 = vld [vmem:[%s15439_s3 + $0x110] sm:$0xff] }
 0x6ae   : > { %v11987_v50 = vld [vmem:[%s15439_s3 + $0x88] sm:$0xff]  ;;  %v11986_v52 = vld [vmem:[%s15439_s3 + $0x80] sm:$0xff]  ;;  %v11989_v54 = vld [vmem:[%s15439_s3 + $0x98] sm:$0xff] }
 0x6af   : > { %v12007_v51 = vld [vmem:[%s15439_s3 + $0x128] sm:$0x3f]  ;;  %v11988_v55 = vld [vmem:[%s15439_s3 + $0x90] sm:$0xff] }
 0x6b0   : > { %13016 = vmatpush1.bf16.msra.mxu0 %v13015_v53  ;;  %13100 = vmatpush1.bf16.msra.mxu1 %v13015_v53  ;;  %v12006_v53 = vld [vmem:[%s15439_s3 + $0x120] sm:$0x3f] }
 0x6b1   : > { %13017 = vmatprep.subr.bf16.mxu0 %v13922_v36  ;;  %13085 = vmatprep.subr.bf16.mxu1 %v13922_v36 }
 0x6b4   : > { %13019 = vmatpush1.bf16.msra.mxu0 %v13018_v56  ;;  %13101 = vmatpush1.bf16.msra.mxu1 %v13018_v56  ;;  %v15375_v56 = vld [vmem:[%s15443_s7] ss:$0 sm:$0xff] }
 0x6b5   : > { %13020 = vmatprep.subr.bf16.mxu0 %v13922_v36  ;;  %13086 = vmatprep.subr.bf16.mxu1 %v13922_v36 }
 0x6b8   : > { %13022 = vmatpush1.bf16.msra.mxu0 %v13021_v59  ;;  %13102 = vmatpush1.bf16.msra.mxu1 %v13021_v59 }
 0x6b9   : > { %13023 = vmatprep.subr.bf16.mxu0 %v13922_v36  ;;  %13087 = vmatprep.subr.bf16.mxu1 %v13922_v36 }
 0x6bc   : > { %13025 = vmatpush1.bf16.msra.mxu0 %v13024_v62  ;;  %13103 = vmatpush1.bf16.msra.mxu1 %v13024_v62 }
 0x6bd   : > { %13026 = vmatprep.subr.bf16.mxu0 %v13922_v36  ;;  %13088 = vmatprep.subr.bf16.mxu1 %v13922_v36 }
 0x6c0   : > { %13028 = vmatpush1.bf16.msra.mxu0 %v13027_v1  ;;  %13104 = vmatpush1.bf16.msra.mxu1 %v13027_v1 }
 0x6c1   : > { %13029 = vmatprep.subr.bf16.mxu0 %v13922_v36  ;;  %13089 = vmatprep.subr.bf16.mxu1 %v13922_v36 }
 0x6c4   : > { %13031 = vmatpush1.bf16.msra.mxu0 %v13030_v4  ;;  %13105 = vmatpush1.bf16.msra.mxu1 %v13030_v4 }
 0x6c5   : > { %13032 = vmatprep.subr.bf16.mxu0 %v13922_v36  ;;  %13090 = vmatprep.subr.bf16.mxu1 %v13922_v36 }
 0x6c8   : > { %13034 = vmatpush1.bf16.msra.mxu0 %v13033_v8  ;;  %13106 = vmatpush1.bf16.msra.mxu1 %v13033_v8 }
 0x6c9   : > { %13035 = vmatprep.subr.bf16.mxu0 %v13922_v36  ;;  %13091 = vmatprep.subr.bf16.mxu1 %v13922_v36 }
 0x6cc   : > { %13037 = vmatpush1.bf16.msra.mxu0 %v13036_v11  ;;  %13107 = vmatpush1.bf16.msra.mxu1 %v13036_v11 }
 0x6cd   : > { %13038 = vmatprep.subr.bf16.mxu0 %v13922_v36  ;;  %13092 = vmatprep.subr.bf16.mxu1 %v13922_v36 }
 0x6d0   : > { %13040 = vmatpush1.bf16.msra.mxu0 %v13039_v14  ;;  %13108 = vmatpush1.bf16.msra.mxu1 %v13039_v14 }
 0x6d1   : > { %13041 = vmatprep.subr.bf16.mxu0 %v13922_v36  ;;  %13093 = vmatprep.subr.bf16.mxu1 %v13922_v36 }
 0x6d4   : > { %13043 = vmatpush1.bf16.msra.mxu0 %v13042_v17  ;;  %13109 = vmatpush1.bf16.msra.mxu1 %v13042_v17 }
 0x6d5   : > { %13044 = vmatprep.subr.bf16.mxu0 %v13922_v36  ;;  %13094 = vmatprep.subr.bf16.mxu1 %v13922_v36  ;;  %v11978_v36 = vld [vmem:[%s15439_s3 + $0x40] sm:$0xff] }
 0x6d8   : > { %13046 = vmatpush1.bf16.msra.mxu0 %v13045_v6  ;;  %13110 = vmatpush1.bf16.msra.mxu1 %v13045_v6 }
 0x6db   : > { %12112 = vmatmul.mubr.f32.vlgmr.msra.gmra.mrb[0].mxu0 %v11970_v20  ;;  %12162 = vmatmul.mubr.f32.vlgmr.msra.gmra.mrb[0].mxu1 %v11990_v21 }
 0x6dc   : > { %12116 = vmatprep.mubr.f32.mxu0 %v11973_v22  ;;  %12166 = vmatprep.mubr.f32.mxu1 %v11993_v23 }
 0x6df   : > { %12117 = vmatmul.mubr.f32.gmra.mrb[2].mxu0 %v11972_v24  ;;  %12167 = vmatmul.mubr.f32.gmra.mrb[2].mxu1 %v11992_v25 }
 0x6e0   : > { %12121 = vmatprep.mubr.f32.mxu0 %v11975_v26  ;;  %12171 = vmatprep.mubr.f32.mxu1 %v11995_v27 }
 0x6e3   : > { %12122 = vmatmul.mubr.f32.gmra.mrb[4].mxu0 %v11974_v28  ;;  %12172 = vmatmul.mubr.f32.gmra.mrb[4].mxu1 %v11994_v29 }
 0x6e4   : > { %12126 = vmatprep.mubr.f32.mxu0 %v11977_v30  ;;  %12176 = vmatprep.mubr.f32.mxu1 %v11997_v31 }
 0x6e7   : > { %12127 = vmatmul.mubr.f32.gmra.mrb[6].mxu0 %v11976_v32  ;;  %12177 = vmatmul.mubr.f32.gmra.mrb[6].mxu1 %v11996_v33 }
 0x6e8   : > { %12131 = vmatprep.mubr.f32.mxu0 %v11979_v34  ;;  %12181 = vmatprep.mubr.f32.mxu1 %v11999_v35 }
 0x6eb   : > { %12132 = vmatmul.mubr.f32.gmra.mrb[8].mxu0 %v11978_v36  ;;  %12182 = vmatmul.mubr.f32.gmra.mrb[8].mxu1 %v11998_v37 }
 0x6ec   : > { %12136 = vmatprep.mubr.f32.mxu0 %v11981_v38  ;;  %12186 = vmatprep.mubr.f32.mxu1 %v12001_v39 }
 0x6ef   : > { %12137 = vmatmul.mubr.f32.gmra.mrb[10].mxu0 %v11980_v40  ;;  %12187 = vmatmul.mubr.f32.gmra.mrb[10].mxu1 %v12000_v41 }
 0x6f0   : > { %12141 = vmatprep.mubr.f32.mxu0 %v11983_v42  ;;  %12191 = vmatprep.mubr.f32.mxu1 %v12003_v43 }
 0x6f3   : > { %12142 = vmatmul.mubr.f32.gmra.mrb[12].mxu0 %v11982_v44  ;;  %12192 = vmatmul.mubr.f32.gmra.mrb[12].mxu1 %v12002_v45 }
 0x6f4   : > { %12146 = vmatprep.mubr.f32.mxu0 %v11985_v46  ;;  %12196 = vmatprep.mubr.f32.mxu1 %v12005_v47 }
 0x6f7   : > { %12147 = vmatmul.mubr.f32.gmra.mrb[14].mxu0 %v11984_v48  ;;  %12197 = vmatmul.mubr.f32.gmra.mrb[14].mxu1 %v12004_v49 }
 0x6f8   : > { %12151 = vmatprep.mubr.f32.mxu0 %v11987_v50  ;;  %12201 = vmatprep.mubr.f32.mxu1 %v12007_v51 }
 0x6fb   : > { %12152 = vmatmul.mubr.f32.gmra.mrb[16].mxu0 %v11986_v52  ;;  %12202 = vmatmul.mubr.f32.gmra.mrb[16].mxu1 %v12006_v53 }
 0x6fc   : > { %12156 = vmatprep.mubr.f32.mxu0 %v11989_v54 }
 0x6ff   : > { %12157 = vmatmul.mubr.f32.gmra.mrb[18].mxu0 %v11988_v55 }
 0x7ae   : > { %v12113_v57 = vpop.f32.mrb[0].mxu0  ;;  %v12163_v58 = vpop.f32.mrb[0].mxu1 }
 0x7af   : > { %v12114_v59 = vadd.f32 %v15375_v56, %v12113_v57  ;;  %v12115_v60 = vpop.f32.mrb[1].mxu0  ;;  %v12164_v61 = vadd.f32 %v15375_v56, %v12163_v58  ;;  %v12165_v62 = vpop.f32.mrb[1].mxu1 }
 0x7b1   : > { %12208 = vst.msk [vmem:[%s14019_s15] sm:$0xff] %vm12207_vm3, %v12114_v59  ;;  %12218 = vst.msk [vmem:[%s14019_s15 + $0x50] sm:$0xff] %vm12207_vm3, %v12164_v61 }
 0x7b2   : > { %v12118_v63 = vpop.f32.mrb[2].mxu0  ;;  %v12168_v0 = vpop.f32.mrb[2].mxu1 }
 0x7b3   : > { %v12119_v1 = vadd.f32 %v15375_v56, %v12118_v63  ;;  %v12120_v2 = vpop.f32.mrb[3].mxu0  ;;  %v12169_v3 = vadd.f32 %v15375_v56, %v12168_v0  ;;  %v12170_v4 = vpop.f32.mrb[3].mxu1 }
 0x7b5   : > { %12209 = vst.msk [vmem:[%s14019_s15 + $0x8] sm:$0xff] %vm12207_vm3, %v12119_v1  ;;  %12219 = vst.msk [vmem:[%s14019_s15 + $0x58] sm:$0xff] %vm12207_vm3, %v12169_v3 }
 0x7b6   : > { %v12123_v5 = vpop.f32.mrb[4].mxu0  ;;  %v12173_v7 = vpop.f32.mrb[4].mxu1 }
 0x7b7   : > { %v12124_v8 = vadd.f32 %v15375_v56, %v12123_v5  ;;  %v12125_v9 = vpop.f32.mrb[5].mxu0  ;;  %v12174_v10 = vadd.f32 %v15375_v56, %v12173_v7  ;;  %v12175_v11 = vpop.f32.mrb[5].mxu1 }
 0x7b9   : > { %12210 = vst.msk [vmem:[%s14019_s15 + $0x10] sm:$0xff] %vm12207_vm3, %v12124_v8  ;;  %12220 = vst.msk [vmem:[%s14019_s15 + $0x60] sm:$0xff] %vm12207_vm3, %v12174_v10 }
 0x7ba   : > { %v12128_v12 = vpop.f32.mrb[6].mxu0  ;;  %v12178_v13 = vpop.f32.mrb[6].mxu1 }
 0x7bb   : > { %v12129_v14 = vadd.f32 %v15375_v56, %v12128_v12  ;;  %v12130_v15 = vpop.f32.mrb[7].mxu0  ;;  %v12179_v16 = vadd.f32 %v15375_v56, %v12178_v13  ;;  %v12180_v17 = vpop.f32.mrb[7].mxu1 }
 0x7bd   : > { %12211 = vst.msk [vmem:[%s14019_s15 + $0x18] sm:$0xff] %vm12207_vm3, %v12129_v14  ;;  %12221 = vst.msk [vmem:[%s14019_s15 + $0x68] sm:$0xff] %vm12207_vm3, %v12179_v16 }
 0x7be   : > { %v12133_v18 = vpop.f32.mrb[8].mxu0  ;;  %v12183_v19 = vpop.f32.mrb[8].mxu1 }
 0x7bf   : > { %v12134_v6 = vadd.f32 %v15375_v56, %v12133_v18  ;;  %v12135_v20 = vpop.f32.mrb[9].mxu0  ;;  %v12184_v21 = vadd.f32 %v15375_v56, %v12183_v19  ;;  %v12185_v22 = vpop.f32.mrb[9].mxu1 }
 0x7c1   : > { %12212 = vst.msk [vmem:[%s14019_s15 + $0x20] sm:$0xff] %vm12207_vm3, %v12134_v6  ;;  %12222 = vst.msk [vmem:[%s14019_s15 + $0x70] sm:$0xff] %vm12207_vm3, %v12184_v21 }
 0x7c2   : > { %v12138_v23 = vpop.f32.mrb[10].mxu0  ;;  %v12188_v24 = vpop.f32.mrb[10].mxu1 }
 0x7c3   : > { %v12139_v25 = vadd.f32 %v15375_v56, %v12138_v23  ;;  %v12140_v26 = vpop.f32.mrb[11].mxu0  ;;  %v12189_v27 = vadd.f32 %v15375_v56, %v12188_v24  ;;  %v12190_v28 = vpop.f32.mrb[11].mxu1 }
 0x7c5   : > { %12213 = vst.msk [vmem:[%s14019_s15 + $0x28] sm:$0xff] %vm12207_vm3, %v12139_v25  ;;  %12223 = vst.msk [vmem:[%s14019_s15 + $0x78] sm:$0xff] %vm12207_vm3, %v12189_v27 }
 0x7c6   : > { %v12143_v29 = vpop.f32.mrb[12].mxu0  ;;  %v12193_v30 = vpop.f32.mrb[12].mxu1 }
 0x7c7   : > { %v12144_v31 = vadd.f32 %v15375_v56, %v12143_v29  ;;  %v12145_v32 = vpop.f32.mrb[13].mxu0  ;;  %v12194_v33 = vadd.f32 %v15375_v56, %v12193_v30  ;;  %v12195_v34 = vpop.f32.mrb[13].mxu1 }
 0x7c9   : > { %12214 = vst.msk [vmem:[%s14019_s15 + $0x30] sm:$0xff] %vm12207_vm3, %v12144_v31  ;;  %12224 = vst.msk [vmem:[%s14019_s15 + $0x80] sm:$0xff] %vm12207_vm3, %v12194_v33 }
 0x7ca   : > { %v12148_v35 = vpop.f32.mrb[14].mxu0  ;;  %v12198_v36 = vpop.f32.mrb[14].mxu1 }
 0x7cb   : > { %v12149_v37 = vadd.f32 %v15375_v56, %v12148_v35  ;;  %v12150_v38 = vpop.f32.mrb[15].mxu0  ;;  %v12199_v39 = vadd.f32 %v15375_v56, %v12198_v36  ;;  %v12200_v40 = vpop.f32.mrb[15].mxu1 }
 0x7cd   : > { %12215 = vst.msk [vmem:[%s14019_s15 + $0x38] sm:$0xff] %vm12207_vm3, %v12149_v37  ;;  %12225 = vst.msk [vmem:[%s14019_s15 + $0x88] sm:$0xff] %vm12207_vm3, %v12199_v39 }
 0x7ce   : > { %v12153_v41 = vpop.f32.mrb[16].mxu0  ;;  %v12203_v42 = vpop.f32.mrb[16].mxu1 }
 0x7cf   : > { %v12154_v43 = vadd.f32 %v15375_v56, %v12153_v41  ;;  %v12155_v44 = vpop.f32.mrb[17].mxu0  ;;  %v12204_v45 = vadd.f32 %v15375_v56, %v12203_v42  ;;  %v12205_v46 = vpop.f32.mrb[17].mxu1 }
 0x7d1   : > { %12216 = vst.msk [vmem:[%s14019_s15 + $0x40] sm:$0xff] %vm12207_vm3, %v12154_v43 }
 0x7d2   : > { %12227 = vst.msk [vmem:[%s14019_s15 + $0x90] sm:$0x3f] %vm12226_vm4, %v12204_v45  ;;  %v12158_v47 = vpop.f32.mrb[18].mxu0 }
 0x7d3   : > { %v12159_v48 = vadd.f32 %v15375_v56, %v12158_v47  ;;  %v12160_v49 = vpop.f32.mrb[19].mxu0 }
 0x7d5   : > { %12217 = vst.msk [vmem:[%s14019_s15 + $0x48] sm:$0xff] %vm12207_vm3, %v12159_v48 }
 0x7d6 PF: > { %s23_s21 = sadd.s32 1, %s13918_s21  }
 0x7d7   : > { %p20_p6 = scmp.ge.s32.totalorder %s23_s21, 4  }
 0x7d9   :  { %22 = sbr.rel (!%p20_p6) target bundleno = 1 (0x1), region = 120 }

</bundles_post_ra>
